<compile_context>
chip_gen: v7x
topology: tpu7x:2x2x1
jax: 0.10.0
libtpu: 0.0.40
codegen_flags: <defaults>
</compile_context>

<pallas_src>
import functools

import jax
import jax.numpy as jnp
from jax.experimental import pallas as pl
from jax.experimental.pallas import tpu as pltpu

SELU_ALPHA = 1.6732632423543772
SELU_SCALE = 1.0507009873554805
BN_EPS = 1e-5


def _selu(x):
    # TODO(synk): forward-only where/exp; guard with exp(min(x,0)) if a VJP is added.
    return SELU_SCALE * jnp.where(x > 0, x, SELU_ALPHA * (jnp.exp(x) - 1.0))


def _round_up(n, m):
    return ((n + m - 1) // m) * m


def _default_act_dtype():
    """bf16 activation math on chips with bf16 VALU/EUP (v6e, v7x, ...);
    f32 on v5 and older (bf16 elementwise would unpack/repack and lose)."""
    try:
        kind = jax.devices()[0].device_kind.lower()
    except Exception:
        return jnp.float32
    if any(tag in kind for tag in ("v2", "v3", "v4", "v5")):
        return jnp.float32
    return jnp.bfloat16


def _choose_tile_b(batch, *, max_tile_b=1024, unit=256):
    """Largest tile (multiple of `unit`) <= max_tile_b, keeping grid length >= 2
    whenever the batch spans more than one unit (both v7x TCs get work)."""
    n_units = max(1, pl.cdiv(batch, unit))
    if n_units <= 1:
        return unit
    max_units = max(1, max_tile_b // unit)
    grid_len = max(2, pl.cdiv(n_units, max_units))
    tile_units = pl.cdiv(n_units, grid_len)
    return tile_units * unit


# ---------------------------------------------------------------------------
# Kernel: one (TILE_B, F) bf16 batch tile -> one (1, TILE_B) sigmoid output row.
# ---------------------------------------------------------------------------
def _mlp_kernel(x_ref,
                w1, t1, w12, t12,
                w2, t2, w22, t22,
                w3, t3, w32, t32,
                wo, bo,
                out_ref, *, act_dtype):
    f32 = jnp.float32
    bf16 = jnp.bfloat16

    def layer(a, w_ref, t_ref):
        # bf16 x bf16 MXU matmul with f32 accumulation; BN scales are pre-folded
        # into the weight columns, so only the +shift (act_dtype) remains.
        y = jnp.dot(a.astype(bf16), w_ref[...], preferred_element_type=f32)
        return y.astype(act_dtype) + t_ref[...]

    x = x_ref[...]                           # (TB, F) bf16; input_bn folded into w1/t1

    # ---- block 1: fused [fc1 | projection1] matmul ----
    y = layer(x, w1, t1)                     # (TB, 512)
    h = _selu(y[:, :256])                    # fc1 + bn1 + selu   (dropout = identity)
    id1 = y[:, 256:]                         # projection1 (+ bias via t1)
    x = _selu(layer(h, w12, t12)) + id1      # fc2 + bn2 + selu + residual -> (TB, 256)

    # ---- block 2 ----
    y = layer(x, w2, t2)                     # (TB, 256)
    h = _selu(y[:, :128])
    id2 = y[:, 128:]
    x = _selu(layer(h, w22, t22)) + id2      # (TB, 128)

    # ---- block 3 ----
    # (y[:, 64:] starts mid lane-tile; padding w3 to avoid the lane shift costs
    #  more VALU/EUP than the idle-XLU shift it removes, so keep it compact.)
    y = layer(x, w3, t3)                     # (TB, 128)
    h = _selu(y[:, :64])
    id3 = y[:, 64:]
    x = _selu(layer(h, w32, t32)) + id3      # (TB, 64)

    # ---- output head: (1,64) @ (TB,64)^T on the MXU -> lane-dense (1, TB) ----
    logits = jax.lax.dot_general(
        wo[...], x.astype(bf16),
        dimension_numbers=(((1,), (1,)), ((), ())),
        preferred_element_type=f32)
    out_ref[...] = jax.nn.sigmoid(logits + bo[...])


_PARAM_ORDER = [
    "w1", "t1", "w12", "t12",
    "w2", "t2", "w22", "t22",
    "w3", "t3", "w32", "t32",
    "wo", "bo",
]


def improved_nn_forward(x, params, *, tile_b=None, act_dtype=None, max_tile_b=1024):
    """x: (B, input_size) float32.  params: dict of pre-folded arrays."""
    b, feat = x.shape
    if act_dtype is None:
        act_dtype = _default_act_dtype()
    if tile_b is None:
        tile_b = _choose_tile_b(b, max_tile_b=max_tile_b)
    assert tile_b % 128 == 0, "tile_b must be a multiple of 128 (lane-dense output)"

    padded_b = _round_up(b, tile_b)
    x = x.astype(jnp.bfloat16)               # bf16 input DMA (input_bn folded into w1)
    if padded_b != b:
        x = jnp.pad(x, ((0, padded_b - b), (0, 0)))
    grid = (padded_b // tile_b,)

    # Shifts in the activation dtype; weights stay bf16, head bias f32.
    args = []
    for k in _PARAM_ORDER:
        v = params[k]
        if k.startswith("t"):
            v = v.astype(act_dtype)
        args.append(v)

    def resident_spec(p):
        # Whole array, constant block index -> fetched once, VMEM-resident.
        return pl.BlockSpec(p.shape, lambda i: (0, 0))

    in_specs = [pl.BlockSpec((tile_b, feat), lambda i: (i, 0))]
    in_specs += [resident_spec(p) for p in args]
    out_spec = pl.BlockSpec((1, tile_b), lambda i: (0, i))   # lane-dense output row

    out = pl.pallas_call(
        functools.partial(_mlp_kernel, act_dtype=jnp.dtype(act_dtype)),
        out_shape=jax.ShapeDtypeStruct((1, padded_b), jnp.float32),
        grid=grid,
        in_specs=in_specs,
        out_specs=out_spec,
        compiler_params=pltpu.CompilerParams(
            dimension_semantics=("parallel",),   # megacore-shard batch on v7x
            vmem_limit_bytes=32 * 1024 * 1024,   # safe on v5e (16 MiB default) and v7x (64 MiB phys)
        ),
    )(x, *args)
    return out[0, :b].reshape(b, 1)


# ---------------------------------------------------------------------------
# Deterministic parameter construction (PyTorch-shaped, then folded / fused).
# ---------------------------------------------------------------------------
def make_params(key, input_size):
    dims = {
        "block1_fc1": (input_size, 256),
        "block1_fc2": (256, 256),
        "projection1": (input_size, 256),
        "block2_fc1": (256, 128),
        "block2_fc2": (128, 128),
        "projection2": (256, 128),
        "block3_fc1": (128, 64),
        "block3_fc2": (64, 64),
        "projection3": (128, 64),
        "output_fc": (64, 1),
    }
    bn_dims = {
        "input_bn": input_size,
        "block1_bn1": 256, "block1_bn2": 256,
        "block2_bn1": 128, "block2_bn2": 128,
        "block3_bn1": 64, "block3_bn2": 64,
    }

    keys = jax.random.split(key, 2 * len(dims) + 4 * len(bn_dims))
    kit = iter(keys)

    lin = {}
    for name, (din, dout) in dims.items():
        w = jax.random.normal(next(kit), (din, dout), jnp.float32) * 0.05
        b = jax.random.normal(next(kit), (1, dout), jnp.float32) * 0.05
        lin[name] = (w, b)

    bn = {}
    for name, d in bn_dims.items():
        gamma = 1.0 + 0.1 * jax.random.normal(next(kit), (1, d), jnp.float32)
        beta = 0.1 * jax.random.normal(next(kit), (1, d), jnp.float32)
        mean = 0.1 * jax.random.normal(next(kit), (1, d), jnp.float32)
        var = jnp.abs(jax.random.normal(next(kit), (1, d), jnp.float32)) + 0.5
        bn[name] = (gamma, beta, mean, var)

    def bn_affine(name):
        gamma, beta, mean, var = bn[name]
        s = gamma / jnp.sqrt(var + BN_EPS)
        t = beta - mean * s
        return s, t

    def fc_bn(fc_name, bn_name):
        # BN(x @ W + b) = (x @ W) * s + (b * s + t_bn)
        w, b = lin[fc_name]
        s, t_bn = bn_affine(bn_name)
        return w, s, b * s + t_bn

    bf16 = jnp.bfloat16
    p = {}

    # ---- block 1: fuse [fc1 | projection1], fold BN output scales into the
    #      weight columns, then fold input_bn (scale + shift) into w1/t1. ----
    s0, t0 = bn_affine("input_bn")
    w_fc, s_fc, t_fc = fc_bn("block1_fc1", "block1_bn1")
    w_pr, b_pr = lin["projection1"]
    w_scaled = jnp.concatenate([w_fc * s_fc, w_pr], axis=1)   # (F, 512), scales folded
    t_cat = jnp.concatenate([t_fc, b_pr], axis=1)             # (1, 512)
    p["w1"] = (s0.T * w_scaled).astype(bf16)                  # diag(s0) @ W, bf16 weights
    p["t1"] = t0 @ w_scaled + t_cat                           # f32 shift

    w, s, t = fc_bn("block1_fc2", "block1_bn2")
    p["w12"], p["t12"] = (w * s).astype(bf16), t

    # ---- block 2 ----
    w_fc, s_fc, t_fc = fc_bn("block2_fc1", "block2_bn1")
    w_pr, b_pr = lin["projection2"]
    p["w2"] = jnp.concatenate([w_fc * s_fc, w_pr], axis=1).astype(bf16)   # (256, 256)
    p["t2"] = jnp.concatenate([t_fc, b_pr], axis=1)

    w, s, t = fc_bn("block2_fc2", "block2_bn2")
    p["w22"], p["t22"] = (w * s).astype(bf16), t

    # ---- block 3 ----
    w_fc, s_fc, t_fc = fc_bn("block3_fc1", "block3_bn1")
    w_pr, b_pr = lin["projection3"]
    p["w3"] = jnp.concatenate([w_fc * s_fc, w_pr], axis=1).astype(bf16)   # (128, 128)
    p["t3"] = jnp.concatenate([t_fc, b_pr], axis=1)

    w, s, t = fc_bn("block3_fc2", "block3_bn2")
    p["w32"], p["t32"] = (w * s).astype(bf16), t

    # ---- output head ----
    wo, bo = lin["output_fc"]                 # (64, 1), (1, 1)
    p["wo"] = wo.T.astype(bf16)               # (1, 64) row for the transposed head matmul
    p["bo"] = bo.reshape(1, 1)                 # f32
    return p


def reference_forward(x, p, *, act_dtype=jnp.float32):
    """Pure-JAX reference mirroring the kernel math (same folded bf16 weights,
    same bf16 matmul inputs / f32 accumulation, same activation dtype)."""
    f32, bf16 = jnp.float32, jnp.bfloat16

    def layer(a, w, t):
        y = jnp.dot(a.astype(bf16), w, preferred_element_type=f32)
        return y.astype(act_dtype) + t.astype(act_dtype)

    x = x.astype(bf16)

    y = layer(x, p["w1"], p["t1"])
    h = _selu(y[:, :256]); id1 = y[:, 256:]
    x = _selu(layer(h, p["w12"], p["t12"])) + id1

    y = layer(x, p["w2"], p["t2"])
    h = _selu(y[:, :128]); id2 = y[:, 128:]
    x = _selu(layer(h, p["w22"], p["t22"])) + id2

    y = layer(x, p["w3"], p["t3"])
    h = _selu(y[:, :64]); id3 = y[:, 64:]
    x = _selu(layer(h, p["w32"], p["t32"])) + id3

    logits = jnp.dot(x.astype(bf16), p["wo"].T, preferred_element_type=f32) + p["bo"]
    return jax.nn.sigmoid(logits)


if __name__ == "__main__":
    input_size = 32  # X_oot.shape[1] analogue

    key = jax.random.PRNGKey(0)
    k_x1, k_x2, k_p = jax.random.split(key, 3)
    params = make_params(k_p, input_size)

    # 1) Small batch (single 256-row tile), f32 activation math, tight tolerance.
    x1 = jax.random.normal(k_x1, (8, input_size), jnp.float32)
    out1 = jax.block_until_ready(
        improved_nn_forward(x1, params, act_dtype=jnp.float32))
    ref1 = reference_forward(x1, params, act_dtype=jnp.float32)
    assert out1.shape == (8, 1)
    assert jnp.allclose(out1, ref1, atol=1e-3, rtol=1e-3), "mismatch vs reference (batch=8)"

    # 2) Multi-tile grid (520 rows -> two 512-row tiles), auto tile size and
    #    auto activation dtype (bf16 on v6e/v7x, f32 on v5 and older).
    act = _default_act_dtype()
    x2 = jax.random.normal(k_x2, (520, input_size), jnp.float32)
    out2 = jax.block_until_ready(improved_nn_forward(x2, params))
    ref2 = reference_forward(x2, params, act_dtype=act)
    assert out2.shape == (520, 1)
    # bf16 elementwise math means kernel-vs-XLA may differ by a few bf16 ulps
    # propagated through 6 layers; sigmoid keeps that well under 2.5e-2.
    tol = 1e-3 if jnp.dtype(act) == jnp.dtype(jnp.float32) else 2.5e-2
    assert jnp.allclose(out2, ref2, atol=tol, rtol=tol), "mismatch vs reference (batch=520)"

    print("KERNEL_OK")
</pallas_src>

<mosaic_0001>
module attributes {stable_mosaic.version = 11 : i64} {
  func.func @_mlp_kernel(%arg0: i32, %arg1: memref<256x32xbf16, #tpu.memory_space<vmem>>, %arg2: memref<32x512xbf16, #tpu.memory_space<vmem>>, %arg3: memref<1x512xf32, #tpu.memory_space<vmem>>, %arg4: memref<256x256xbf16, #tpu.memory_space<vmem>>, %arg5: memref<1x256xf32, #tpu.memory_space<vmem>>, %arg6: memref<256x256xbf16, #tpu.memory_space<vmem>>, %arg7: memref<1x256xf32, #tpu.memory_space<vmem>>, %arg8: memref<128x128xbf16, #tpu.memory_space<vmem>>, %arg9: memref<1x128xf32, #tpu.memory_space<vmem>>, %arg10: memref<128x128xbf16, #tpu.memory_space<vmem>>, %arg11: memref<1x128xf32, #tpu.memory_space<vmem>>, %arg12: memref<64x64xbf16, #tpu.memory_space<vmem>>, %arg13: memref<1x64xf32, #tpu.memory_space<vmem>>, %arg14: memref<1x64xbf16, #tpu.memory_space<vmem>>, %arg15: memref<1x1xf32, #tpu.memory_space<vmem>>, %arg16: memref<1x256xf32, #tpu.memory_space<vmem>>) attributes {dimension_semantics = [#tpu.dimension_semantics<parallel>], iteration_bounds = array<i64: 1>, scalar_prefetch = 0 : i64, scratch_operands = 0 : i64, tpu.core_type = #tpu.core_type<tc>, window_params = [{transform_indices = @transform_0, window_bounds = array<i64: 256, 32>}, {pipeline_mode = #tpu.pipeline_mode<synchronous>, transform_indices = @transform_1, window_bounds = array<i64: 32, 512>}, {pipeline_mode = #tpu.pipeline_mode<synchronous>, transform_indices = @transform_2, window_bounds = array<i64: 1, 512>}, {pipeline_mode = #tpu.pipeline_mode<synchronous>, transform_indices = @transform_3, window_bounds = array<i64: 256, 256>}, {pipeline_mode = #tpu.pipeline_mode<synchronous>, transform_indices = @transform_4, window_bounds = array<i64: 1, 256>}, {pipeline_mode = #tpu.pipeline_mode<synchronous>, transform_indices = @transform_5, window_bounds = array<i64: 256, 256>}, {pipeline_mode = #tpu.pipeline_mode<synchronous>, transform_indices = @transform_6, window_bounds = array<i64: 1, 256>}, {pipeline_mode = #tpu.pipeline_mode<synchronous>, transform_indices = @transform_7, window_bounds = array<i64: 128, 128>}, {pipeline_mode = #tpu.pipeline_mode<synchronous>, transform_indices = @transform_8, window_bounds = array<i64: 1, 128>}, {pipeline_mode = #tpu.pipeline_mode<synchronous>, transform_indices = @transform_9, window_bounds = array<i64: 128, 128>}, {pipeline_mode = #tpu.pipeline_mode<synchronous>, transform_indices = @transform_10, window_bounds = array<i64: 1, 128>}, {pipeline_mode = #tpu.pipeline_mode<synchronous>, transform_indices = @transform_11, window_bounds = array<i64: 64, 64>}, {pipeline_mode = #tpu.pipeline_mode<synchronous>, transform_indices = @transform_12, window_bounds = array<i64: 1, 64>}, {pipeline_mode = #tpu.pipeline_mode<synchronous>, transform_indices = @transform_13, window_bounds = array<i64: 1, 64>}, {pipeline_mode = #tpu.pipeline_mode<synchronous>, transform_indices = @transform_14, window_bounds = array<i64: 1, 1>}, {transform_indices = @transform_15, window_bounds = array<i64: 1, 256>}]} {
    %c0 = arith.constant 0 : index
    %c0_0 = arith.constant 0 : index
    %0 = vector.load %arg1[%c0, %c0_0] : memref<256x32xbf16, #tpu.memory_space<vmem>>, vector<256x32xbf16>
    %c0_1 = arith.constant 0 : index
    %c0_2 = arith.constant 0 : index
    %1 = vector.load %arg2[%c0_1, %c0_2] : memref<32x512xbf16, #tpu.memory_space<vmem>>, vector<32x512xbf16>
    %cst = arith.constant dense<0.000000e+00> : vector<256x512xf32>
    %2 = tpu.matmul %0, %1, %cst {dimension_numbers = #tpu.dot_dimension_numbers<[1], [0], [0], [1], [0, 0, 1, 1], [], []>} : vector<256x32xbf16>, vector<32x512xbf16>, vector<256x512xf32> -> vector<256x512xf32>
    %c0_3 = arith.constant 0 : index
    %c0_4 = arith.constant 0 : index
    %3 = vector.load %arg3[%c0_3, %c0_4] : memref<1x512xf32, #tpu.memory_space<vmem>>, vector<1x512xf32>
    %4 = vector.broadcast %3 : vector<1x512xf32> to vector<256x512xf32>
    %5 = arith.addf %2, %4 : vector<256x512xf32>
    %6 = vector.extract_strided_slice %5 {offsets = [0, 0], sizes = [256, 256], strides = [1, 1]} : vector<256x512xf32> to vector<256x256xf32>
    %cst_5 = arith.constant 0.000000e+00 : f32
    %7 = vector.broadcast %cst_5 : f32 to vector<256x256xf32>
    %8 = arith.cmpf ogt, %6, %7 : vector<256x256xf32>
    %9 = math.exp %6 : vector<256x256xf32>
    %cst_6 = arith.constant 1.000000e+00 : f32
    %10 = vector.broadcast %cst_6 : f32 to vector<256x256xf32>
    %11 = arith.subf %9, %10 : vector<256x256xf32>
    %cst_7 = arith.constant 1.67326319 : f32
    %12 = vector.broadcast %cst_7 : f32 to vector<256x256xf32>
    %13 = arith.mulf %12, %11 : vector<256x256xf32>
    %14 = arith.select %8, %6, %13 : vector<256x256xi1>, vector<256x256xf32>
    %cst_8 = arith.constant 1.05070102 : f32
    %15 = vector.broadcast %cst_8 : f32 to vector<256x256xf32>
    %16 = arith.mulf %15, %14 : vector<256x256xf32>
    %17 = vector.extract_strided_slice %5 {offsets = [0, 256], sizes = [256, 256], strides = [1, 1]} : vector<256x512xf32> to vector<256x256xf32>
    %18 = arith.truncf %16 : vector<256x256xf32> to vector<256x256xbf16>
    %c0_9 = arith.constant 0 : index
    %c0_10 = arith.constant 0 : index
    %19 = vector.load %arg4[%c0_9, %c0_10] : memref<256x256xbf16, #tpu.memory_space<vmem>>, vector<256x256xbf16>
    %cst_11 = arith.constant dense<0.000000e+00> : vector<256x256xf32>
    %20 = tpu.matmul %18, %19, %cst_11 {dimension_numbers = #tpu.dot_dimension_numbers<[1], [0], [0], [1], [0, 0, 1, 1], [], []>} : vector<256x256xbf16>, vector<256x256xbf16>, vector<256x256xf32> -> vector<256x256xf32>
    %c0_12 = arith.constant 0 : index
    %c0_13 = arith.constant 0 : index
    %21 = vector.load %arg5[%c0_12, %c0_13] : memref<1x256xf32, #tpu.memory_space<vmem>>, vector<1x256xf32>
    %22 = vector.broadcast %21 : vector<1x256xf32> to vector<256x256xf32>
    %23 = arith.addf %20, %22 : vector<256x256xf32>
    %cst_14 = arith.constant 0.000000e+00 : f32
    %24 = vector.broadcast %cst_14 : f32 to vector<256x256xf32>
    %25 = arith.cmpf ogt, %23, %24 : vector<256x256xf32>
    %26 = math.exp %23 : vector<256x256xf32>
    %cst_15 = arith.constant 1.000000e+00 : f32
    %27 = vector.broadcast %cst_15 : f32 to vector<256x256xf32>
    %28 = arith.subf %26, %27 : vector<256x256xf32>
    %cst_16 = arith.constant 1.67326319 : f32
    %29 = vector.broadcast %cst_16 : f32 to vector<256x256xf32>
    %30 = arith.mulf %29, %28 : vector<256x256xf32>
    %31 = arith.select %25, %23, %30 : vector<256x256xi1>, vector<256x256xf32>
    %cst_17 = arith.constant 1.05070102 : f32
    %32 = vector.broadcast %cst_17 : f32 to vector<256x256xf32>
    %33 = arith.mulf %32, %31 : vector<256x256xf32>
    %34 = arith.addf %33, %17 : vector<256x256xf32>
    %35 = arith.truncf %34 : vector<256x256xf32> to vector<256x256xbf16>
    %c0_18 = arith.constant 0 : index
    %c0_19 = arith.constant 0 : index
    %36 = vector.load %arg6[%c0_18, %c0_19] : memref<256x256xbf16, #tpu.memory_space<vmem>>, vector<256x256xbf16>
    %cst_20 = arith.constant dense<0.000000e+00> : vector<256x256xf32>
    %37 = tpu.matmul %35, %36, %cst_20 {dimension_numbers = #tpu.dot_dimension_numbers<[1], [0], [0], [1], [0, 0, 1, 1], [], []>} : vector<256x256xbf16>, vector<256x256xbf16>, vector<256x256xf32> -> vector<256x256xf32>
    %c0_21 = arith.constant 0 : index
    %c0_22 = arith.constant 0 : index
    %38 = vector.load %arg7[%c0_21, %c0_22] : memref<1x256xf32, #tpu.memory_space<vmem>>, vector<1x256xf32>
    %39 = vector.broadcast %38 : vector<1x256xf32> to vector<256x256xf32>
    %40 = arith.addf %37, %39 : vector<256x256xf32>
    %41 = vector.extract_strided_slice %40 {offsets = [0, 0], sizes = [256, 128], strides = [1, 1]} : vector<256x256xf32> to vector<256x128xf32>
    %cst_23 = arith.constant 0.000000e+00 : f32
    %42 = vector.broadcast %cst_23 : f32 to vector<256x128xf32>
    %43 = arith.cmpf ogt, %41, %42 : vector<256x128xf32>
    %44 = math.exp %41 : vector<256x128xf32>
    %cst_24 = arith.constant 1.000000e+00 : f32
    %45 = vector.broadcast %cst_24 : f32 to vector<256x128xf32>
    %46 = arith.subf %44, %45 : vector<256x128xf32>
    %cst_25 = arith.constant 1.67326319 : f32
    %47 = vector.broadcast %cst_25 : f32 to vector<256x128xf32>
    %48 = arith.mulf %47, %46 : vector<256x128xf32>
    %49 = arith.select %43, %41, %48 : vector<256x128xi1>, vector<256x128xf32>
    %cst_26 = arith.constant 1.05070102 : f32
    %50 = vector.broadcast %cst_26 : f32 to vector<256x128xf32>
    %51 = arith.mulf %50, %49 : vector<256x128xf32>
    %52 = vector.extract_strided_slice %40 {offsets = [0, 128], sizes = [256, 128], strides = [1, 1]} : vector<256x256xf32> to vector<256x128xf32>
    %53 = arith.truncf %51 : vector<256x128xf32> to vector<256x128xbf16>
    %c0_27 = arith.constant 0 : index
    %c0_28 = arith.constant 0 : index
    %54 = vector.load %arg8[%c0_27, %c0_28] : memref<128x128xbf16, #tpu.memory_space<vmem>>, vector<128x128xbf16>
    %cst_29 = arith.constant dense<0.000000e+00> : vector<256x128xf32>
    %55 = tpu.matmul %53, %54, %cst_29 {dimension_numbers = #tpu.dot_dimension_numbers<[1], [0], [0], [1], [0, 0, 1, 1], [], []>} : vector<256x128xbf16>, vector<128x128xbf16>, vector<256x128xf32> -> vector<256x128xf32>
    %c0_30 = arith.constant 0 : index
    %c0_31 = arith.constant 0 : index
    %56 = vector.load %arg9[%c0_30, %c0_31] : memref<1x128xf32, #tpu.memory_space<vmem>>, vector<1x128xf32>
    %57 = vector.broadcast %56 : vector<1x128xf32> to vector<256x128xf32>
    %58 = arith.addf %55, %57 : vector<256x128xf32>
    %cst_32 = arith.constant 0.000000e+00 : f32
    %59 = vector.broadcast %cst_32 : f32 to vector<256x128xf32>
    %60 = arith.cmpf ogt, %58, %59 : vector<256x128xf32>
    %61 = math.exp %58 : vector<256x128xf32>
    %cst_33 = arith.constant 1.000000e+00 : f32
    %62 = vector.broadcast %cst_33 : f32 to vector<256x128xf32>
    %63 = arith.subf %61, %62 : vector<256x128xf32>
    %cst_34 = arith.constant 1.67326319 : f32
    %64 = vector.broadcast %cst_34 : f32 to vector<256x128xf32>
    %65 = arith.mulf %64, %63 : vector<256x128xf32>
    %66 = arith.select %60, %58, %65 : vector<256x128xi1>, vector<256x128xf32>
    %cst_35 = arith.constant 1.05070102 : f32
    %67 = vector.broadcast %cst_35 : f32 to vector<256x128xf32>
    %68 = arith.mulf %67, %66 : vector<256x128xf32>
    %69 = arith.addf %68, %52 : vector<256x128xf32>
    %70 = arith.truncf %69 : vector<256x128xf32> to vector<256x128xbf16>
    %c0_36 = arith.constant 0 : index
    %c0_37 = arith.constant 0 : index
    %71 = vector.load %arg10[%c0_36, %c0_37] : memref<128x128xbf16, #tpu.memory_space<vmem>>, vector<128x128xbf16>
    %cst_38 = arith.constant dense<0.000000e+00> : vector<256x128xf32>
    %72 = tpu.matmul %70, %71, %cst_38 {dimension_numbers = #tpu.dot_dimension_numbers<[1], [0], [0], [1], [0, 0, 1, 1], [], []>} : vector<256x128xbf16>, vector<128x128xbf16>, vector<256x128xf32> -> vector<256x128xf32>
    %c0_39 = arith.constant 0 : index
    %c0_40 = arith.constant 0 : index
    %73 = vector.load %arg11[%c0_39, %c0_40] : memref<1x128xf32, #tpu.memory_space<vmem>>, vector<1x128xf32>
    %74 = vector.broadcast %73 : vector<1x128xf32> to vector<256x128xf32>
    %75 = arith.addf %72, %74 : vector<256x128xf32>
    %76 = vector.extract_strided_slice %75 {offsets = [0, 0], sizes = [256, 64], strides = [1, 1]} : vector<256x128xf32> to vector<256x64xf32>
    %cst_41 = arith.constant 0.000000e+00 : f32
    %77 = vector.broadcast %cst_41 : f32 to vector<256x64xf32>
    %78 = arith.cmpf ogt, %76, %77 : vector<256x64xf32>
    %79 = math.exp %76 : vector<256x64xf32>
    %cst_42 = arith.constant 1.000000e+00 : f32
    %80 = vector.broadcast %cst_42 : f32 to vector<256x64xf32>
    %81 = arith.subf %79, %80 : vector<256x64xf32>
    %cst_43 = arith.constant 1.67326319 : f32
    %82 = vector.broadcast %cst_43 : f32 to vector<256x64xf32>
    %83 = arith.mulf %82, %81 : vector<256x64xf32>
    %84 = arith.select %78, %76, %83 : vector<256x64xi1>, vector<256x64xf32>
    %cst_44 = arith.constant 1.05070102 : f32
    %85 = vector.broadcast %cst_44 : f32 to vector<256x64xf32>
    %86 = arith.mulf %85, %84 : vector<256x64xf32>
    %87 = vector.extract_strided_slice %75 {offsets = [0, 64], sizes = [256, 64], strides = [1, 1]} : vector<256x128xf32> to vector<256x64xf32>
    %88 = arith.truncf %86 : vector<256x64xf32> to vector<256x64xbf16>
    %c0_45 = arith.constant 0 : index
    %c0_46 = arith.constant 0 : index
    %89 = vector.load %arg12[%c0_45, %c0_46] : memref<64x64xbf16, #tpu.memory_space<vmem>>, vector<64x64xbf16>
    %cst_47 = arith.constant dense<0.000000e+00> : vector<256x64xf32>
    %90 = tpu.matmul %88, %89, %cst_47 {dimension_numbers = #tpu.dot_dimension_numbers<[1], [0], [0], [1], [0, 0, 1, 1], [], []>} : vector<256x64xbf16>, vector<64x64xbf16>, vector<256x64xf32> -> vector<256x64xf32>
    %c0_48 = arith.constant 0 : index
    %c0_49 = arith.constant 0 : index
    %91 = vector.load %arg13[%c0_48, %c0_49] : memref<1x64xf32, #tpu.memory_space<vmem>>, vector<1x64xf32>
    %92 = vector.broadcast %91 : vector<1x64xf32> to vector<256x64xf32>
    %93 = arith.addf %90, %92 : vector<256x64xf32>
    %cst_50 = arith.constant 0.000000e+00 : f32
    %94 = vector.broadcast %cst_50 : f32 to vector<256x64xf32>
    %95 = arith.cmpf ogt, %93, %94 : vector<256x64xf32>
    %96 = math.exp %93 : vector<256x64xf32>
    %cst_51 = arith.constant 1.000000e+00 : f32
    %97 = vector.broadcast %cst_51 : f32 to vector<256x64xf32>
    %98 = arith.subf %96, %97 : vector<256x64xf32>
    %cst_52 = arith.constant 1.67326319 : f32
    %99 = vector.broadcast %cst_52 : f32 to vector<256x64xf32>
    %100 = arith.mulf %99, %98 : vector<256x64xf32>
    %101 = arith.select %95, %93, %100 : vector<256x64xi1>, vector<256x64xf32>
    %cst_53 = arith.constant 1.05070102 : f32
    %102 = vector.broadcast %cst_53 : f32 to vector<256x64xf32>
    %103 = arith.mulf %102, %101 : vector<256x64xf32>
    %104 = arith.addf %103, %87 : vector<256x64xf32>
    %c0_54 = arith.constant 0 : index
    %c0_55 = arith.constant 0 : index
    %105 = vector.load %arg14[%c0_54, %c0_55] : memref<1x64xbf16, #tpu.memory_space<vmem>>, vector<1x64xbf16>
    %106 = arith.truncf %104 : vector<256x64xf32> to vector<256x64xbf16>
    %cst_56 = arith.constant dense<0.000000e+00> : vector<1x256xf32>
    %107 = tpu.matmul %105, %106, %cst_56 {dimension_numbers = #tpu.dot_dimension_numbers<[1], [1], [0], [0], [0, 0, 1, 0], [], []>} : vector<1x64xbf16>, vector<256x64xbf16>, vector<1x256xf32> -> vector<1x256xf32>
    %c0_57 = arith.constant 0 : index
    %c0_58 = arith.constant 0 : index
    %108 = vector.load %arg15[%c0_57, %c0_58] : memref<1x1xf32, #tpu.memory_space<vmem>>, vector<1x1xf32>
    %109 = vector.broadcast %108 : vector<1x1xf32> to vector<1x256xf32>
    %110 = arith.addf %107, %109 : vector<1x256xf32>
    %111 = arith.negf %110 : vector<1x256xf32>
    %112 = math.exp %111 : vector<1x256xf32>
    %cst_59 = arith.constant 1.000000e+00 : f32
    %113 = vector.broadcast %cst_59 : f32 to vector<1x256xf32>
    %114 = arith.addf %113, %112 : vector<1x256xf32>
    %115 = arith.divf %113, %114 : vector<1x256xf32>
    %c0_60 = arith.constant 0 : index
    %c0_61 = arith.constant 0 : index
    %116 = vector.load %arg16[%c0_60, %c0_61] : memref<1x256xf32, #tpu.memory_space<vmem>>, vector<1x256xf32>
    tpu.vector_store %arg16[%c0_60, %c0_61], %115 {strides = array<i32>} : memref<1x256xf32, #tpu.memory_space<vmem>>, vector<1x256xf32>,
    return
  }
  func.func @transform_0(%arg0: i32) -> (i32, i32) {
    %c0_i32 = arith.constant 0 : i32
    %c0_i32_0 = arith.constant 0 : i32
    return %arg0, %c0_i32 : i32, i32
  }
  func.func @transform_1(%arg0: i32) -> (i32, i32) {
    %c0_i32 = arith.constant 0 : i32
    %c0_i32_0 = arith.constant 0 : i32
    %c0_i32_1 = arith.constant 0 : i32
    return %c0_i32, %c0_i32_0 : i32, i32
  }
  func.func @transform_2(%arg0: i32) -> (i32, i32) {
    %c0_i32 = arith.constant 0 : i32
    %c0_i32_0 = arith.constant 0 : i32
    %c0_i32_1 = arith.constant 0 : i32
    return %c0_i32, %c0_i32_0 : i32, i32
  }
  func.func @transform_3(%arg0: i32) -> (i32, i32) {
    %c0_i32 = arith.constant 0 : i32
    %c0_i32_0 = arith.constant 0 : i32
    %c0_i32_1 = arith.constant 0 : i32
    return %c0_i32, %c0_i32_0 : i32, i32
  }
  func.func @transform_4(%arg0: i32) -> (i32, i32) {
    %c0_i32 = arith.constant 0 : i32
    %c0_i32_0 = arith.constant 0 : i32
    %c0_i32_1 = arith.constant 0 : i32
    return %c0_i32, %c0_i32_0 : i32, i32
  }
  func.func @transform_5(%arg0: i32) -> (i32, i32) {
    %c0_i32 = arith.constant 0 : i32
    %c0_i32_0 = arith.constant 0 : i32
    %c0_i32_1 = arith.constant 0 : i32
    return %c0_i32, %c0_i32_0 : i32, i32
  }
  func.func @transform_6(%arg0: i32) -> (i32, i32) {
    %c0_i32 = arith.constant 0 : i32
    %c0_i32_0 = arith.constant 0 : i32
    %c0_i32_1 = arith.constant 0 : i32
    return %c0_i32, %c0_i32_0 : i32, i32
  }
  func.func @transform_7(%arg0: i32) -> (i32, i32) {
    %c0_i32 = arith.constant 0 : i32
    %c0_i32_0 = arith.constant 0 : i32
    %c0_i32_1 = arith.constant 0 : i32
    return %c0_i32, %c0_i32_0 : i32, i32
  }
  func.func @transform_8(%arg0: i32) -> (i32, i32) {
    %c0_i32 = arith.constant 0 : i32
    %c0_i32_0 = arith.constant 0 : i32
    %c0_i32_1 = arith.constant 0 : i32
    return %c0_i32, %c0_i32_0 : i32, i32
  }
  func.func @transform_9(%arg0: i32) -> (i32, i32) {
    %c0_i32 = arith.constant 0 : i32
    %c0_i32_0 = arith.constant 0 : i32
    %c0_i32_1 = arith.constant 0 : i32
    return %c0_i32, %c0_i32_0 : i32, i32
  }
  func.func @transform_10(%arg0: i32) -> (i32, i32) {
    %c0_i32 = arith.constant 0 : i32
    %c0_i32_0 = arith.constant 0 : i32
    %c0_i32_1 = arith.constant 0 : i32
    return %c0_i32, %c0_i32_0 : i32, i32
  }
  func.func @transform_11(%arg0: i32) -> (i32, i32) {
    %c0_i32 = arith.constant 0 : i32
    %c0_i32_0 = arith.constant 0 : i32
    %c0_i32_1 = arith.constant 0 : i32
    return %c0_i32, %c0_i32_0 : i32, i32
  }
  func.func @transform_12(%arg0: i32) -> (i32, i32) {
    %c0_i32 = arith.constant 0 : i32
    %c0_i32_0 = arith.constant 0 : i32
    %c0_i32_1 = arith.constant 0 : i32
    return %c0_i32, %c0_i32_0 : i32, i32
  }
  func.func @transform_13(%arg0: i32) -> (i32, i32) {
    %c0_i32 = arith.constant 0 : i32
    %c0_i32_0 = arith.constant 0 : i32
    %c0_i32_1 = arith.constant 0 : i32
    return %c0_i32, %c0_i32_0 : i32, i32
  }
  func.func @transform_14(%arg0: i32) -> (i32, i32) {
    %c0_i32 = arith.constant 0 : i32
    %c0_i32_0 = arith.constant 0 : i32
    %c0_i32_1 = arith.constant 0 : i32
    return %c0_i32, %c0_i32_0 : i32, i32
  }
  func.func @transform_15(%arg0: i32) -> (i32, i32) {
    %c0_i32 = arith.constant 0 : i32
    %c0_i32_0 = arith.constant 0 : i32
    return %c0_i32, %arg0 : i32, i32
  }
}

</mosaic_0001>

<bundles_post_ra>
// kernel: tpu_custom_call.1
= control target key start
LH: loop header
LB: loop body
LE: loop exit
PB: predicated region body
PF: predicated region fallthrough
CT: control target
= control target key end

     0   :  { %s8695_s0 = inlined_call_operand.vmem [shape: bf16[256,32], index: 0, kind: input, shape index: {}]   ;;  %s8696_s1 = inlined_call_operand.vmem [shape: bf16[32,512], index: 1, kind: input, shape index: {}]   ;;  %s8697_s2 = inlined_call_operand.hbm [shape: f32[1,512], index: 2, kind: input, shape index: {}]   ;;  %s8698_s3 = inlined_call_operand.hbm [shape: bf16[256,256], index: 3, kind: input, shape index: {}]   ;;  %s8699_s4 = inlined_call_operand.vmem [shape: f32[1,256], index: 4, kind: input, shape index: {}]   ;;  %s8700_s5 = inlined_call_operand.hbm [shape: bf16[256,256], index: 5, kind: input, shape index: {}]   ;;  %s8701_s6 = inlined_call_operand.hbm [shape: f32[1,256], index: 6, kind: input, shape index: {}]   ;;  %s8702_s7 = inlined_call_operand.vmem [shape: bf16[128,128], index: 7, kind: input, shape index: {}]   ;;  %s8703_s8 = inlined_call_operand.hbm [shape: f32[1,128], index: 8, kind: input, shape index: {}]   ;;  %s8704_s9 = inlined_call_operand.vmem [shape: bf16[128,128], index: 9, kind: input, shape index: {}]   ;;  %s8705_s10 = inlined_call_operand.vmem [shape: f32[1,128], index: 10, kind: input, shape index: {}]   ;;  %s8706_s11 = inlined_call_operand.hbm [shape: bf16[64,64], index: 11, kind: input, shape index: {}]   ;;  %s8707_s12 = inlined_call_operand.vmem [shape: f32[1,64], index: 12, kind: input, shape index: {}]   ;;  %s8708_s13 = inlined_call_operand.vmem [shape: bf16[1,64], index: 13, kind: input, shape index: {}]   ;;  %s8709_s14 = inlined_call_operand.<no memory space> [shape: f32[1,1], index: 14, kind: input, shape index: {}]   ;;  %s8710_s15 = inlined_call_operand.hbm [shape: f32[1,256], index: 15, kind: output, shape index: {}]  }
   0x1   :  { %v20_v0 = vstv %s8709_s14 }
   0x2   :  { %21 = vst [vmem:[#allocation2] sm:$0x1] %v20_v0 }
   0x3   :  { %22 = vsyncpa [#allocation4], 0 }
   0x4   :  { %23 = vsyncpa [#allocation7], 0 }
   0x5   :  { %24 = vsyncpa [#allocation10], 0 }
   0x6   :  { %25 = vsyncpa [#allocation13], 0 }
   0x7   :  { %26 = vsyncpa [#allocation5], 0  ;;  %s6081_s20 = smov [#allocation6]   ;;  %s5917_s24 = scalar_lea.hbm %s8698_s3, 4096 }
   0x8   :  { %s46_s21 = sshll.u32 %s6081_s20, 4  ;;  %p5918_p0 = scmp.ne.s32.totalorder %s8698_s3, %s5917_s24  ;;  %s47_s21 = int_to_ptr.vmem [resolvable:$true] %s46_s21 }
   0x9   :  { %p5921_p1 = scmp.lt.u32.totalorder %s5917_s24, %s8698_s3 }
   0xb   :  { %p5923_p2 = pnand %p5921_p1, %p5918_p0 }
   0xd   :  { %5926 = shalt.err (!%p5923_p2)
}
   0xe   :  { %s5927_s14 = scalar_lea.vmem %s47_s21, 4096  ;;  %p5932_p4 = scmp.lt.s32.totalorder %s47_s21, %s47_s21 }
   0xf   :  { %p5928_p3 = scmp.ne.s32.totalorder %s47_s21, %s5927_s14  ;;  %p5933_p5 = scmp.lt.s32.totalorder %s5927_s14, %s5927_s14 }
  0x11   :  { %p5934_p6 = por %p5933_p5, %p5932_p4 }
  0x13   :  { %p5935_p7 = pnand %p5934_p6, %p5928_p3 }
  0x15   :  { %5938 = shalt.err (!%p5935_p7)
}
  0x16   :  { %s6082_s29 = smov 128   ;;  %s6083_s30 = smov 8  }
  0x17   :  { %52 = dma.hbm_to_vmem [thread:$0]  %s8698_s3, 4096, %s47_s21, [#allocation7], %s6082_s29, %s6082_s29, %s6083_s30  }
  0x18   :  { %s6084_s18 = smov [#allocation9]   ;;  %s6085_s20 = smov [#allocation3]  }
  0x19   :  { %s73_s19 = sshll.u32 %s6084_s18, 4  ;;  %s37_s22 = sshll.u32 %s6085_s20, 4  ;;  %s74_s19 = int_to_ptr.vmem [resolvable:$true] %s73_s19  ;;  %s38_s22 = int_to_ptr.vmem [resolvable:$true] %s37_s22 }
  0x1a   :  { %s5939_s25 = scalar_lea.hbm %s8701_s6, 32 }
  0x1b   :  { %p5940_p8 = scmp.ne.s32.totalorder %s8701_s6, %s5939_s25  ;;  %p5943_p9 = scmp.lt.u32.totalorder %s5939_s25, %s8701_s6 }
  0x1d   :  { %p5945_p10 = pnand %p5943_p9, %p5940_p8 }
  0x1f   :  { %5948 = shalt.err (!%p5945_p10)
}
  0x20   :  { %s5949_s3 = scalar_lea.vmem %s74_s19, 32  ;;  %p5954_p12 = scmp.lt.s32.totalorder %s74_s19, %s74_s19 }
  0x21   :  { %p5950_p11 = scmp.ne.s32.totalorder %s74_s19, %s5949_s3  ;;  %p5955_p13 = scmp.lt.s32.totalorder %s5949_s3, %s5949_s3 }
  0x23   :  { %p5956_p0 = por %p5955_p13, %p5954_p12 }
  0x25   :  { %p5957_p1 = pnand %p5956_p0, %p5950_p11 }
  0x27   :  { %5960 = shalt.err (!%p5957_p1)
}
  0x28   :  { %76 = dma.hbm_to_vmem [thread:$0]  %s8701_s6, 32, %s74_s19, [#allocation10]  }
  0x29   :  { %s5961_s20 = scalar_lea.hbm %s8697_s2, 64 }
  0x2a   :  { %p5962_p2 = scmp.ne.s32.totalorder %s8697_s2, %s5961_s20  ;;  %p5965_p3 = scmp.lt.u32.totalorder %s5961_s20, %s8697_s2 }
  0x2c   :  { %p5967_p4 = pnand %p5965_p3, %p5962_p2 }
  0x2e   :  { %5970 = shalt.err (!%p5967_p4)
}
  0x2f   :  { %s5971_s27 = scalar_lea.vmem %s38_s22, 64  ;;  %p5976_p6 = scmp.lt.s32.totalorder %s38_s22, %s38_s22 }
  0x30   :  { %p5972_p5 = scmp.ne.s32.totalorder %s38_s22, %s5971_s27  ;;  %p5977_p7 = scmp.lt.s32.totalorder %s5971_s27, %s5971_s27 }
  0x32   :  { %p5978_p8 = por %p5977_p7, %p5976_p6 }
  0x34   :  { %p5979_p9 = pnand %p5978_p8, %p5972_p5 }
  0x36   :  { %5982 = shalt.err (!%p5979_p9)
}
  0x37   :  { %40 = dma.hbm_to_vmem [thread:$0]  %s8697_s2, 64, %s38_s22, [#allocation4]  }
  0x38   :  { %s6086_s28 = smov [#allocation8]   ;;  %s6087_s3 = smov [#allocation11]  }
  0x39   :  { %s60_s14 = sshll.u32 %s6086_s28, 4  ;;  %s85_s21 = sshll.u32 %s6087_s3, 4  ;;  %s61_s14 = int_to_ptr.vmem [resolvable:$true] %s60_s14  ;;  %s86_s21 = int_to_ptr.vmem [resolvable:$true] %s85_s21 }
  0x3a   :  { %s5983_s18 = scalar_lea.hbm %s8700_s5, 4096 }
  0x3b   :  { %p5984_p10 = scmp.ne.s32.totalorder %s8700_s5, %s5983_s18  ;;  %p5987_p11 = scmp.lt.u32.totalorder %s5983_s18, %s8700_s5 }
  0x3d   :  { %p5989_p12 = pnand %p5987_p11, %p5984_p10 }
  0x3f   :  { %5992 = shalt.err (!%p5989_p12)
}
  0x40   :  { %s5993_s2 = scalar_lea.vmem %s61_s14, 4096  ;;  %p5998_p0 = scmp.lt.s32.totalorder %s61_s14, %s61_s14 }
  0x41   :  { %p5994_p13 = scmp.ne.s32.totalorder %s61_s14, %s5993_s2  ;;  %p5999_p1 = scmp.lt.s32.totalorder %s5993_s2, %s5993_s2 }
  0x43   :  { %p6000_p2 = por %p5999_p1, %p5998_p0 }
  0x45   :  { %p6001_p3 = pnand %p6000_p2, %p5994_p13 }
  0x47   :  { %6004 = shalt.err (!%p6001_p3)
}
  0x48   :  { %66 = dma.hbm_to_vmem [thread:$0]  %s8700_s5, 4096, %s61_s14, [#allocation7], %s6082_s29, %s6082_s29, %s6083_s30  }
  0x49   :  { %s6005_s19 = scalar_lea.hbm %s8703_s8, 16 }
  0x4a   :  { %p6006_p4 = scmp.ne.s32.totalorder %s8703_s8, %s6005_s19  ;;  %p6009_p5 = scmp.lt.u32.totalorder %s6005_s19, %s8703_s8 }
  0x4c   :  { %p6011_p6 = pnand %p6009_p5, %p6006_p4 }
  0x4e   :  { %6014 = shalt.err (!%p6011_p6)
}
  0x4f   :  { %s6015_s18 = scalar_lea.vmem %s86_s21, 16  ;;  %s6019_s20 = scalar_lea.vmem %s86_s21, 32 }
  0x50   :  { %p6016_p7 = scmp.ne.s32.totalorder %s86_s21, %s6015_s18  ;;  %p6020_p8 = scmp.lt.s32.totalorder %s86_s21, %s86_s21 }
  0x51   :  { %p6021_p9 = scmp.lt.s32.totalorder %s6019_s20, %s6015_s18 }
  0x53   :  { %p6022_p10 = por %p6021_p9, %p6020_p8 }
  0x55   :  { %p6023_p11 = pnand %p6022_p10, %p6016_p7 }
  0x57   :  { %6026 = shalt.err (!%p6023_p11)
}
  0x58   :  { %88 = dma.hbm_to_vmem [thread:$0]  %s8703_s8, 16, %s86_s21, [#allocation10]  }
  0x59   :  { %s6088_s30 = smov [#allocation12]   ;;  %s6027_s25 = scalar_lea.hbm %s8706_s11, 512 }
  0x5a   :  { %s98_s14 = sshll.u32 %s6088_s30, 4  ;;  %p6028_p12 = scmp.ne.s32.totalorder %s8706_s11, %s6027_s25  ;;  %s99_s14 = int_to_ptr.vmem [resolvable:$true] %s98_s14 }
  0x5b   :  { %p6031_p13 = scmp.lt.u32.totalorder %s6027_s25, %s8706_s11 }
  0x5d   :  { %p6033_p0 = pnand %p6031_p13, %p6028_p12 }
  0x5f   :  { %6036 = shalt.err (!%p6033_p0)
}
  0x60   :  { %s6037_s6 = scalar_lea.vmem %s99_s14, 512  ;;  %p6042_p2 = scmp.lt.s32.totalorder %s99_s14, %s99_s14 }
  0x61   :  { %p6038_p1 = scmp.ne.s32.totalorder %s99_s14, %s6037_s6  ;;  %p6043_p3 = scmp.lt.s32.totalorder %s6037_s6, %s6037_s6 }
  0x63   :  { %p6044_p4 = por %p6043_p3, %p6042_p2 }
  0x65   :  { %p6045_p5 = pnand %p6044_p4, %p6038_p1 }
  0x67   :  { %6048 = shalt.err (!%p6045_p5)
}
  0x68   :  { %s6089_s8 = smov 64   ;;  %s6090_s21 = smov 4  }
  0x69   :  { %104 = dma.hbm_to_vmem [thread:$0]  %s8706_s11, 512, %s99_s14, [#allocation13], %s6089_s8, %s6089_s8, %s6090_s21  }
  0x6a   :  { %6071 = dma.done.wait [#allocation4], 64  }
  0x6b   :  { %6072 = vsyncadd [#allocation4], 4294967232 }
  0x6c   :  { %6073 = dma.done.wait [#allocation7], 8192  }
  0x6d   :  { %6074 = vsyncadd [#allocation7], 4294959104 }
  0x6e   :  { %6075 = dma.done.wait [#allocation10], 48  }
  0x6f   :  { %6076 = vsyncadd [#allocation10], 4294967248 }
  0x70   :  { %6077 = dma.done.wait [#allocation13], 512  }
  0x71   :  { %6078 = vsyncadd [#allocation13], 4294966784  ;;  %v6091_v1 = vmov 0   ;;  %v5252_v2 = vld [vmem:[%s8696_s1 + $0x4] ss:$16 sps:$4 sm:$0xff]   ;;  %vm312_vm0 = vcmask 261120   ;;  %v8711_v58 = vlaneseq }
  0x72   :  { %393 = vmatprep.mubr.bf16.mxu0 %v6091_v1  ;;  %523 = vmatprep.mubr.bf16.mxu1 %v6091_v1  ;;  %v5254_v3 = vld [vmem:[%s8696_s1] ss:$16 sps:$4 sm:$0xff]   ;;  %v5255_v4 = vld [vmem:[%s8696_s1 + $0x24] ss:$16 sps:$4 sm:$0xff]   ;;  %v6283_v7 = vld [vmem:[%s8695_s0 + $0x8] sm:$0xff]  }
  0x73   :  { %5251 = vset.pattern.permute.xlu0 %v6091_v1  ;;  %361 = vmatprep.subr.bf16.mxu0 %v5252_v2  ;;  %v5257_v5 = vld [vmem:[%s8696_s1 + $0x20] ss:$16 sps:$4 sm:$0xff]   ;;  %v6288_v8 = vld [vmem:[%s8695_s0 + $0x68] sm:$0xff]   ;;  %v6315_v16 = vld [vmem:[%s8695_s0 + $0x78] sm:$0xff]   ;;  %v6427_v59 = vshrl.u32 %v8711_v58, 7 }
  0x74   :  { %5226 = vmatprep.subr.bf16.mxu1 %v5252_v2  ;;  %362 = vmatpush1.bf16.msra.mxu0 %v5254_v3  ;;  %v6275_v6 = vld [vmem:[%s8695_s0] sm:$0xff]   ;;  %v5276_v10 = vld [vmem:[#allocation6 + $0x4] ss:$8 sps:$4 sm:$0xff]   ;;  %v6320_v19 = vld [vmem:[%s8695_s0 + $0x18] sm:$0xff]  }
  0x75   :  { %5228 = vmatpush1.bf16.msra.mxu1 %v5254_v3  ;;  %363 = vmatprep.subr.bf16.mxu0 %v5255_v4  ;;  %v5274_v9 = vld [vmem:[#allocation6] ss:$8 sps:$4 sm:$0xff]   ;;  %v5279_v12 = vld [vmem:[#allocation6 + $0x14] ss:$8 sps:$4 sm:$0xff]   ;;  %v5277_v14 = vld [vmem:[#allocation6 + $0x10] ss:$8 sps:$4 sm:$0xff]  }
  0x76   :  { %5227 = vmatprep.subr.bf16.mxu1 %v5255_v4  ;;  %v6299_v11 = vld [vmem:[%s8695_s0 + $0x70] sm:$0xff]   ;;  %v5285_v18 = vld [vmem:[#allocation6 + $0x34] ss:$8 sps:$4 sm:$0xff]   ;;  %v6339_v29 = vld [vmem:[%s8695_s0 + $0x28] sm:$0xff]   ;;  %8716 = vst [vmem:[#allocation20_spill] sm:$0xff] %v6427_v59  ;;  %v6431_v60 = vsub.s32 0, %v6427_v59 }
  0x77   :  { %v6304_v13 = vld [vmem:[%s8695_s0 + $0x10] sm:$0xff]   ;;  %v5291_v23 = vld [vmem:[#allocation6 + $0x54] ss:$8 sps:$4 sm:$0xff]   ;;  %v5267_v42 = vld [vmem:[%s8695_s0 + $0x48] sm:$0xff]   ;;  %v6434_v62 = vsub.s32 1, %v6427_v59 }
  0x78   :  { %364 = vmatpush1.bf16.msra.mxu0 %v5257_v5  ;;  %v5282_v15 = vld [vmem:[#allocation6 + $0x24] ss:$8 sps:$4 sm:$0xff]   ;;  %v5280_v17 = vld [vmem:[#allocation6 + $0x20] ss:$8 sps:$4 sm:$0xff]   ;;  %v5283_v20 = vld [vmem:[#allocation6 + $0x30] ss:$8 sps:$4 sm:$0xff]  }
  0x79   :  { %5229 = vmatpush1.bf16.msra.mxu1 %v5257_v5  ;;  %1431 = vmatprep.subr.bf16.mxu0 %v5276_v10  ;;  %v5288_v21 = vld [vmem:[#allocation6 + $0x44] ss:$8 sps:$4 sm:$0xff]   ;;  %v5286_v22 = vld [vmem:[#allocation6 + $0x40] ss:$8 sps:$4 sm:$0xff]   ;;  %v5289_v25 = vld [vmem:[#allocation6 + $0x50] ss:$8 sps:$4 sm:$0xff]  }
  0x7a   :  { %v6331_v24 = vld [vmem:[%s8695_s0 + $0x20] sm:$0xff]   ;;  %v5294_v26 = vld [vmem:[#allocation6 + $0x64] ss:$8 sps:$4 sm:$0xff]   ;;  %v5265_v39 = vld [vmem:[%s8695_s0 + $0x38] sm:$0xff]   ;;  %8717 = vst [vmem:[#allocation21_spill] sm:$0xff] %v6431_v60 }
  0x7b   :  { %4610 = vmatmul.mubr.msk.bf16.vlgmr.msra.gmra.mrb[0].mxu0 %vm312_vm0, %v6275_v6  ;;  %v5292_v27 = vld [vmem:[#allocation6 + $0x60] ss:$8 sps:$4 sm:$0xff]   ;;  %v5297_v28 = vld [vmem:[#allocation6 + $0x74] ss:$8 sps:$4 sm:$0xff]   ;;  %v5295_v30 = vld [vmem:[#allocation6 + $0x70] ss:$8 sps:$4 sm:$0xff]  }
  0x7c   :  { %403 = vmatprep.mubr.bf16.mxu0 %v6091_v1  ;;  %4623 = vmatmul.mubr.msk.bf16.vlgmr.msra.gmra.mrb[0].mxu1 %vm312_vm0, %v6288_v8  ;;  %v5300_v31 = vld [vmem:[#allocation6 + $0x84] ss:$8 sps:$4 sm:$0xff]   ;;  %v5298_v32 = vld [vmem:[#allocation6 + $0x80] ss:$8 sps:$4 sm:$0xff]   ;;  %v5303_v33 = vld [vmem:[#allocation6 + $0x94] ss:$8 sps:$4 sm:$0xff]  }
  0x7d   :  { %533 = vmatprep.mubr.bf16.mxu1 %v6091_v1  ;;  %1432 = vmatpush1.bf16.msra.mxu0 %v5274_v9  ;;  %v6347_v34 = vld [vmem:[%s8695_s0 + $0x30] sm:$0xff]   ;;  %v5309_v38 = vld [vmem:[#allocation6 + $0xb4] ss:$8 sps:$4 sm:$0xff]   ;;  %8718 = vst [vmem:[#allocation22_spill] sm:$0xff] %v6434_v62 }
  0x7e   :  { %1433 = vmatprep.subr.bf16.mxu0 %v5279_v12  ;;  %v5301_v35 = vld [vmem:[#allocation6 + $0x90] ss:$8 sps:$4 sm:$0xff]   ;;  %v5306_v36 = vld [vmem:[#allocation6 + $0xa4] ss:$8 sps:$4 sm:$0xff]   ;;  %v5304_v37 = vld [vmem:[#allocation6 + $0xa0] ss:$8 sps:$4 sm:$0xff]  }
  0x7f   :  { %v5307_v40 = vld [vmem:[#allocation6 + $0xb0] ss:$8 sps:$4 sm:$0xff]   ;;  %v5312_v46 = vld [vmem:[#allocation6 + $0xc4] ss:$8 sps:$4 sm:$0xff]   ;;  %v5310_v47 = vld [vmem:[#allocation6 + $0xc0] ss:$8 sps:$4 sm:$0xff]  }
  0x80   :  { %v5266_v41 = vld [vmem:[%s8695_s0 + $0x40] sm:$0xff]   ;;  %v6370_v43 = vld [vmem:[%s8695_s0 + $0x50] sm:$0xff]   ;;  %v6378_v44 = vld [vmem:[%s8695_s0 + $0x58] sm:$0xff]  }
  0x81   :  { %1434 = vmatpush1.bf16.msra.mxu0 %v5277_v14  ;;  %v6386_v45 = vld [vmem:[%s8695_s0 + $0x60] sm:$0xff]   ;;  %v5318_v50 = vld [vmem:[#allocation6 + $0xe4] ss:$8 sps:$4 sm:$0xff]  }
  0x82   :  { %1435 = vmatprep.subr.bf16.mxu0 %v5282_v15  ;;  %v5315_v48 = vld [vmem:[#allocation6 + $0xd4] ss:$8 sps:$4 sm:$0xff]   ;;  %v5313_v49 = vld [vmem:[#allocation6 + $0xd0] ss:$8 sps:$4 sm:$0xff]   ;;  %v5316_v51 = vld [vmem:[#allocation6 + $0xe0] ss:$8 sps:$4 sm:$0xff]  }
  0x83   :  { %4611 = vmatmul.mubr.msk.bf16.gmra.mrb[4].mxu0 %vm312_vm0, %v6283_v7  ;;  %v5321_v52 = vld [vmem:[#allocation6 + $0xf4] ss:$8 sps:$4 sm:$0xff]   ;;  %v5319_v53 = vld [vmem:[#allocation6 + $0xf0] ss:$8 sps:$4 sm:$0xff]  }
  0x84   :  { %413 = vmatprep.mubr.bf16.mxu0 %v6091_v1  ;;  %4624 = vmatmul.mubr.msk.bf16.gmra.mrb[4].mxu1 %vm312_vm0, %v6299_v11  ;;  %v5324_v54 = vld [vmem:[%s8696_s1 + $0xc] ss:$16 sps:$4 sm:$0xff]   ;;  %v5322_v55 = vld [vmem:[%s8696_s1 + $0x8] ss:$16 sps:$4 sm:$0xff]   ;;  %v170_v61 = vld [vmem:[#allocation3] sm:$0xf] }
  0x85   :  { %543 = vmatprep.mubr.bf16.mxu1 %v6091_v1  ;;  %1436 = vmatpush1.bf16.msra.mxu0 %v5280_v17  ;;  %v5327_v56 = vld [vmem:[%s8696_s1 + $0x2c] ss:$16 sps:$4 sm:$0xff]   ;;  %v5325_v57 = vld [vmem:[%s8696_s1 + $0x28] ss:$16 sps:$4 sm:$0xff]   ;;  %v6438_v63 = vrot.slane %v170_v61, %v6431_v60  ;;  %v6442_v0 = vrot.slane %v170_v61, %v6434_v62 }
  0x86   :  { %1437 = vmatprep.subr.bf16.mxu0 %v5285_v18  ;;  %554 = vmatprep.subr.bf16.mxu1 %v5324_v54 }
  0x87   :  { %555 = vmatpush1.bf16.msra.mxu1 %v5322_v55 }
  0x88   :  { %556 = vmatprep.subr.bf16.mxu1 %v5327_v56 }
  0x89   :  { %1438 = vmatpush1.bf16.msra.mxu0 %v5283_v20 }
  0x8a   :  { %1439 = vmatprep.subr.bf16.mxu0 %v5288_v21 }
  0x8b   :  { %4612 = vmatmul.mubr.msk.bf16.gmra.mrb[8].mxu0 %vm312_vm0, %v6304_v13  ;;  %557 = vmatpush1.bf16.msra.mxu1 %v5325_v57 }
  0x8c   :  { %423 = vmatprep.mubr.bf16.mxu0 %v6091_v1  ;;  %4625 = vmatmul.mubr.msk.bf16.gmra.mrb[8].mxu1 %vm312_vm0, %v6315_v16 }
  0x8d   :  { %586 = vmatprep.mubr.bf16.mxu1 %v6091_v1  ;;  %1440 = vmatpush1.bf16.msra.mxu0 %v5286_v22 }
  0x8e   :  { %1441 = vmatprep.subr.bf16.mxu0 %v5291_v23 }
  0x91   :  { %1442 = vmatpush1.bf16.msra.mxu0 %v5289_v25 }
  0x92   :  { %1443 = vmatprep.subr.bf16.mxu0 %v5294_v26 }
  0x93   :  { %4613 = vmatmul.mubr.msk.bf16.gmra.mrb[12].mxu0 %vm312_vm0, %v6320_v19 }
  0x94   :  { %433 = vmatprep.mubr.bf16.mxu0 %v6091_v1  ;;  %4626 = vmatmul.mubr.msk.bf16.vlgmr.msra.gmra.mrb[12].mxu1 %vm312_vm0, %v6275_v6 }
  0x95   :  { %1444 = vmatpush1.bf16.msra.mxu0 %v5292_v27  ;;  %596 = vmatprep.mubr.bf16.mxu1 %v6091_v1 }
  0x96   :  { %1445 = vmatprep.subr.bf16.mxu0 %v5297_v28 }
  0x99   :  { %1446 = vmatpush1.bf16.msra.mxu0 %v5295_v30 }
  0x9a   :  { %1447 = vmatprep.subr.bf16.mxu0 %v5300_v31 }
  0x9b   :  { %4614 = vmatmul.mubr.msk.bf16.gmra.mrb[16].mxu0 %vm312_vm0, %v6331_v24 }
  0x9c   :  { %443 = vmatprep.mubr.bf16.mxu0 %v6091_v1  ;;  %4627 = vmatmul.mubr.msk.bf16.gmra.mrb[16].mxu1 %vm312_vm0, %v6283_v7 }
  0x9d   :  { %1448 = vmatpush1.bf16.msra.mxu0 %v5298_v32  ;;  %606 = vmatprep.mubr.bf16.mxu1 %v6091_v1 }
  0x9e   :  { %1449 = vmatprep.subr.bf16.mxu0 %v5303_v33 }
  0xa1   :  { %1450 = vmatpush1.bf16.msra.mxu0 %v5301_v35 }
  0xa2   :  { %1451 = vmatprep.subr.bf16.mxu0 %v5306_v36 }
  0xa3   :  { %4615 = vmatmul.mubr.msk.bf16.gmra.mrb[20].mxu0 %vm312_vm0, %v6339_v29 }
  0xa4   :  { %453 = vmatprep.mubr.bf16.mxu0 %v6091_v1  ;;  %4628 = vmatmul.mubr.msk.bf16.gmra.mrb[20].mxu1 %vm312_vm0, %v6304_v13 }
  0xa5   :  { %1452 = vmatpush1.bf16.msra.mxu0 %v5304_v37  ;;  %616 = vmatprep.mubr.bf16.mxu1 %v6091_v1 }
  0xa6   :  { %1453 = vmatprep.subr.bf16.mxu0 %v5309_v38 }
  0xa9   :  { %1454 = vmatpush1.bf16.msra.mxu0 %v5307_v40 }
  0xaa   :  { %1455 = vmatprep.subr.bf16.mxu0 %v5312_v46 }
  0xab   :  { %4616 = vmatmul.mubr.msk.bf16.gmra.mrb[24].mxu0 %vm312_vm0, %v6347_v34 }
  0xac   :  { %463 = vmatprep.mubr.bf16.mxu0 %v6091_v1  ;;  %4629 = vmatmul.mubr.msk.bf16.gmra.mrb[24].mxu1 %vm312_vm0, %v6320_v19 }
  0xad   :  { %1456 = vmatpush1.bf16.msra.mxu0 %v5310_v47  ;;  %626 = vmatprep.mubr.bf16.mxu1 %v6091_v1 }
  0xae   :  { %1457 = vmatprep.subr.bf16.mxu0 %v5315_v48 }
  0xb1   :  { %1458 = vmatpush1.bf16.msra.mxu0 %v5313_v49 }
  0xb2   :  { %1459 = vmatprep.subr.bf16.mxu0 %v5318_v50 }
  0xb3   :  { %4617 = vmatmul.mubr.msk.bf16.gmra.mrb[28].mxu0 %vm312_vm0, %v5265_v39 }
  0xb4   :  { %473 = vmatprep.mubr.bf16.mxu0 %v6091_v1  ;;  %4630 = vmatmul.mubr.msk.bf16.gmra.mrb[28].mxu1 %vm312_vm0, %v6331_v24 }
  0xb5   :  { %1460 = vmatpush1.bf16.msra.mxu0 %v5316_v51  ;;  %636 = vmatprep.mubr.bf16.mxu1 %v6091_v1 }
  0xb6   :  { %1461 = vmatprep.subr.bf16.mxu0 %v5321_v52 }
  0xb9   :  { %1462 = vmatpush1.bf16.msra.mxu0 %v5319_v53 }
  0xbb   :  { %4618 = vmatmul.mubr.msk.bf16.gmra.mrb[32].mxu0 %vm312_vm0, %v5266_v41 }
  0xbc   :  { %483 = vmatprep.mubr.bf16.mxu0 %v6091_v1  ;;  %4631 = vmatmul.mubr.msk.bf16.gmra.mrb[32].mxu1 %vm312_vm0, %v6339_v29 }
  0xbd   :  { %646 = vmatprep.mubr.bf16.mxu1 %v6091_v1 }
  0xc3   :  { %4619 = vmatmul.mubr.msk.bf16.gmra.mrb[36].mxu0 %vm312_vm0, %v5267_v42 }
  0xc4   :  { %493 = vmatprep.mubr.bf16.mxu0 %v6091_v1  ;;  %4632 = vmatmul.mubr.msk.bf16.gmra.mrb[36].mxu1 %vm312_vm0, %v6347_v34 }
  0xc5   :  { %656 = vmatprep.mubr.bf16.mxu1 %v6091_v1 }
  0xcb   :  { %4620 = vmatmul.mubr.msk.bf16.gmra.mrb[40].mxu0 %vm312_vm0, %v6370_v43 }
  0xcc   :  { %503 = vmatprep.mubr.bf16.mxu0 %v6091_v1  ;;  %4633 = vmatmul.mubr.msk.bf16.gmra.mrb[40].mxu1 %vm312_vm0, %v5265_v39 }
  0xcd   :  { %666 = vmatprep.mubr.bf16.mxu1 %v6091_v1 }
  0xd3   :  { %4621 = vmatmul.mubr.msk.bf16.gmra.mrb[44].mxu0 %vm312_vm0, %v6378_v44 }
  0xd4   :  { %513 = vmatprep.mubr.bf16.mxu0 %v6091_v1  ;;  %4634 = vmatmul.mubr.msk.bf16.gmra.mrb[44].mxu1 %vm312_vm0, %v5266_v41 }
  0xd5   :  { %676 = vmatprep.mubr.bf16.mxu1 %v6091_v1 }
  0xdb   :  { %4622 = vmatmul.mubr.msk.bf16.gmra.mrb[48].mxu0 %vm312_vm0, %v6386_v45 }
  0xdc   :  { %4635 = vmatmul.mubr.msk.bf16.gmra.mrb[48].mxu1 %vm312_vm0, %v5267_v42 }
  0xdd   :  { %686 = vmatprep.mubr.bf16.mxu1 %v6091_v1 }
  0xe4   :  { %4636 = vmatmul.mubr.msk.bf16.gmra.mrb[52].mxu1 %vm312_vm0, %v6370_v43 }
  0xe5   :  { %696 = vmatprep.mubr.bf16.mxu1 %v6091_v1 }
  0xec   :  { %4637 = vmatmul.mubr.msk.bf16.gmra.mrb[56].mxu1 %vm312_vm0, %v6378_v44 }
  0xed   :  { %706 = vmatprep.mubr.bf16.mxu1 %v6091_v1 }
  0xf4   :  { %4638 = vmatmul.mubr.msk.bf16.gmra.mrb[60].mxu1 %vm312_vm0, %v6386_v45 }
  0xf5   :  { %716 = vmatprep.mubr.bf16.mxu1 %v6091_v1 }
  0xfc   :  { %4639 = vmatmul.mubr.msk.bf16.gmra.mrb[64].mxu1 %vm312_vm0, %v6288_v8 }
  0xfd   :  { %726 = vmatprep.mubr.bf16.mxu1 %v6091_v1 }
 0x104   :  { %4640 = vmatmul.mubr.msk.bf16.gmra.mrb[68].mxu1 %vm312_vm0, %v6299_v11 }
 0x105   :  { %736 = vmatprep.mubr.bf16.mxu1 %v6091_v1 }
 0x10c   :  { %4641 = vmatmul.mubr.msk.bf16.gmra.mrb[72].mxu1 %vm312_vm0, %v6315_v16 }
 0x14e   :  { %v395_v2 = vpop.f32.mrb[0].mxu0 }
 0x14f   :  { %v6445_v3 = vadd.f32 %v395_v2, %v6438_v63  ;;  %v397_v4 = vpop.f32.mrb[1].mxu0  ;;  %v525_v17 = vpop.f32.mrb[0].mxu1 }
 0x150   :  { %v6448_v5 = vadd.f32 %v397_v4, %v6442_v0  ;;  %v399_v6 = vpop.f32.mrb[2].mxu0  ;;  %v527_v18 = vpop.f32.mrb[1].mxu1  ;;  %v6467_v23 = vadd.f32 %v525_v17, %v6438_v63 }
 0x151   :  { %v811_v7 = vmul.f32 1.442695, %v6445_v3  ;;  %v6452_v9 = vadd.f32 %v399_v6, %v6438_v63  ;;  %v401_v10 = vpop.f32.mrb[3].mxu0  ;;  %v529_v20 = vpop.f32.mrb[2].mxu1  ;;  %vm747_vm1 = vcmp.gt.f32.partialorder %v6445_v3, 0.0  ;;  %v6499_v47 = vadd.f32 %v527_v18, %v6442_v0 }
 0x152   :  { %v813_v12 = vmul.f32 1.442695, %v6448_v5  ;;  %v6456_v13 = vadd.f32 %v401_v10, %v6442_v0  ;;  %v531_v24 = vpop.f32.mrb[3].mxu1  ;;  %v915_v33 = vmul.f32 1.442695, %v6467_v23  ;;  %vm748_vm2 = vcmp.gt.f32.partialorder %v6448_v5, 0.0 }
 0x153   :  { %5396 = vpow2.f32 %v811_v7  ;;  %v815_v14 = vmul.f32 1.442695, %v6452_v9  ;;  %vm749_vm3 = vcmp.gt.f32.partialorder %v6452_v9, 0.0  ;;  %v6507_v54 = vadd.f32 %v529_v20, %v6438_v63 }
 0x154   :  { %5398 = vpow2.f32 %v813_v12  ;;  %v817_v15 = vmul.f32 1.442695, %v6456_v13  ;;  %vm750_vm4 = vcmp.gt.f32.partialorder %v6456_v13, 0.0  ;;  %v6516_v7 = vadd.f32 %v531_v24, %v6442_v0 }
 0x155   :  { %5400 = vpow2.f32 %v815_v14  ;;  %v6522_v12 = vmul.f32 1.442695, %v6499_v47  ;;  %v6533_v45 = vmul.f32 1.442695, %v6507_v54 }
 0x156   :  { %5402 = vpow2.f32 %v817_v15  ;;  %v405_v19 = vpop.f32.mrb[4].mxu0 }
 0x157   :  { %v6464_v21 = vadd.f32 %v405_v19, %v6438_v63  ;;  %v407_v22 = vpop.f32.mrb[5].mxu0  ;;  %v6486_v35 = vpop.f32.mrb[4].mxu1 }
 0x158   :  { %v6470_v25 = vadd.f32 %v407_v22, %v6442_v0  ;;  %v409_v26 = vpop.f32.mrb[6].mxu0  ;;  %v6489_v37 = vpop.f32.mrb[5].mxu1 }
 0x159   :  { %v819_v27 = vmul.f32 1.442695, %v6464_v21  ;;  %v6474_v28 = vadd.f32 %v409_v26, %v6438_v63  ;;  %v411_v29 = vpop.f32.mrb[7].mxu0  ;;  %v6493_v41 = vpop.f32.mrb[6].mxu1  ;;  %vm751_vm6 = vcmp.gt.f32.partialorder %v6464_v21, 0.0 }
 0x15a   :  { %v821_v30 = vmul.f32 1.442695, %v6470_v25  ;;  %v6478_v31 = vadd.f32 %v411_v29, %v6442_v0  ;;  %v6501_v48 = vpop.f32.mrb[7].mxu1  ;;  %vm752_vm5 = vcmp.gt.f32.partialorder %v6470_v25, 0.0  ;;  %v6553_v29 = vmul.f32 1.442695, %v6516_v7 }
 0x15b   :  { %5404 = vpow2.f32 %v819_v27  ;;  %v823_v32 = vmul.f32 1.442695, %v6474_v28  ;;  %vm753_vm8 = vcmp.gt.f32.partialorder %v6474_v28, 0.0 }
 0x15c   :  { %5406 = vpow2.f32 %v821_v30  ;;  %v825_v34 = vmul.f32 1.442695, %v6478_v31  ;;  %vm754_vm7 = vcmp.gt.f32.partialorder %v6478_v31, 0.0 }
 0x15d   :  { %v5397_v36 = vpop.eup %5396  ;;  %5408 = vpow2.f32 %v823_v32 }
 0x15e   :  { %v5399_v38 = vpop.eup %5398  ;;  %v4642_v39 = vadd.f32 -1.0, %v5397_v36  ;;  %5410 = vpow2.f32 %v825_v34  ;;  %v415_v40 = vpop.f32.mrb[8].mxu0 }
 0x15f   :  { %v5401_v42 = vpop.eup %5400  ;;  %v4643_v43 = vadd.f32 -1.0, %v5399_v38  ;;  %v6496_v44 = vadd.f32 %v415_v40, %v6438_v63  ;;  %v417_v46 = vpop.f32.mrb[9].mxu0  ;;  %5412 = vpow2.f32 %v915_v33 }
 0x160   :  { %v5403_v49 = vpop.eup %5402  ;;  %v1003_v50 = vmul.f32 1.6732632, %v4642_v39  ;;  %v4644_v51 = vadd.f32 -1.0, %v5401_v42  ;;  %v6504_v52 = vadd.f32 %v417_v46, %v6442_v0  ;;  %v419_v53 = vpop.f32.mrb[10].mxu0 }
 0x161   :  { %v1004_v55 = vmul.f32 1.6732632, %v4643_v43  ;;  %v4645_v56 = vadd.f32 -1.0, %v5403_v49  ;;  %v827_v57 = vmul.f32 1.442695, %v6496_v44  ;;  %v421_v6 = vpop.f32.mrb[11].mxu0  ;;  %v6530_v14 = vadd.f32 %v419_v53, %v6438_v63 }
 0x162   :  { %v1067_v61 = vsel %vm747_vm1, %v6445_v3, %v1003_v50  ;;  %v1005_v2 = vmul.f32 1.6732632, %v4644_v51  ;;  %v829_v4 = vmul.f32 1.442695, %v6504_v52  ;;  %v6535_v15 = vpop.f32.mrb[8].mxu1  ;;  %vm755_vm9 = vcmp.gt.f32.partialorder %v6496_v44, 0.0 }
 0x163   :  { %v1006_v10 = vmul.f32 1.6732632, %v4645_v56  ;;  %5414 = vpow2.f32 %v827_v57  ;;  %v6537_v18 = vmul.f32 1.050701, %v1067_v61  ;;  %v6545_v20 = vpop.f32.mrb[9].mxu1  ;;  %v1068_v24 = vsel %vm748_vm2, %v6448_v5, %v1004_v55 }
 0x164   :  { %v1069_v3 = vsel %vm749_vm3, %v6452_v9, %v1005_v2  ;;  %5416 = vpow2.f32 %v829_v4  ;;  %v6543_v9 = vadd.f32 %v421_v6, %v6442_v0  ;;  %v831_v27 = vmul.f32 1.442695, %v6530_v14  ;;  %v6561_v38 = vpop.f32.mrb[10].mxu1 }
 0x165   :  { %v5405_v17 = vpop.eup %5404  ;;  %v6539_v19 = vmul.f32 1.050701, %v1069_v3  ;;  %v1070_v33 = vsel %vm750_vm4, %v6456_v13, %v1006_v10  ;;  %v6566_v49 = vpop.f32.mrb[11].mxu1  ;;  %v1132_v2 = vmul.f32 1.050701, %v1068_v24  ;;  %vm756_vm10 = vcmp.gt.f32.partialorder %v6504_v52, 0.0 }
 0x166   :  { %v5407_v22 = vpop.eup %5406  ;;  %v4646_v26 = vadd.f32 -1.0, %v5405_v17  ;;  %v833_v36 = vmul.f32 1.442695, %v6543_v9  ;;  %v425_v5 = vpop.f32.mrb[12].mxu0  ;;  %5418 = vpow2.f32 %v831_v27  ;;  %v1134_v56 = vmul.f32 1.050701, %v1070_v33 }
 0x167   :  { %v5409_v30 = vpop.eup %5408  ;;  %v1195_v32 = vpack.c.bf16 %v6539_v19, %v6537_v18  ;;  %v4647_v34 = vadd.f32 -1.0, %v5407_v22  ;;  %v6564_v43 = vadd.f32 %v425_v5, %v6438_v63  ;;  %v427_v46 = vpop.f32.mrb[13].mxu0  ;;  %vm757_vm11 = vcmp.gt.f32.partialorder %v6530_v14, 0.0 }
 0x168   :  { %v5411_v39 = vpop.eup %5410  ;;  %v1007_v40 = vmul.f32 1.6732632, %v4646_v26  ;;  %v4648_v42 = vadd.f32 -1.0, %v5409_v30  ;;  %5420 = vpow2.f32 %v833_v36  ;;  %v6569_v13 = vadd.f32 %v427_v46, %v6442_v0  ;;  %v429_v55 = vpop.f32.mrb[14].mxu0 }
 0x169   :  { %v5413_v50 = vpop.eup %5412  ;;  %v1008_v51 = vmul.f32 1.6732632, %v4647_v34  ;;  %v4649_v53 = vadd.f32 -1.0, %v5411_v39  ;;  %v835_v57 = vmul.f32 1.442695, %v6564_v43  ;;  %v431_v61 = vpop.f32.mrb[15].mxu0  ;;  %v6588_v22 = vadd.f32 %v429_v55, %v6438_v63 }
 0x16a   :  { %v1009_v4 = vmul.f32 1.6732632, %v4648_v42  ;;  %v837_v3 = vmul.f32 1.442695, %v6569_v13  ;;  %v4694_v17 = vadd.f32 -1.0, %v5413_v50  ;;  %v1071_v8 = vsel %vm751_vm6, %v6464_v21, %v1007_v40 }
 0x16b   :  { %v1010_v6 = vmul.f32 1.6732632, %v4649_v53  ;;  %v1072_v10 = vsel %vm752_vm5, %v6470_v25, %v1008_v51  ;;  %5422 = vpow2.f32 %v835_v57  ;;  %v6591_v24 = vadd.f32 %v431_v61, %v6442_v0 }
 0x16c   :  { %5424 = vpow2.f32 %v837_v3  ;;  %v1196_v30 = vpack.c.bf16 %v1134_v56, %v1132_v2  ;;  %v1136_v34 = vmul.f32 1.050701, %v1072_v10  ;;  %v1073_v21 = vsel %vm753_vm8, %v6474_v28, %v1009_v4 }
 0x16d   :  { %v5415_v18 = vpop.eup %5414  ;;  %v1074_v19 = vsel %vm754_vm7, %v6478_v31, %v1010_v6  ;;  %v839_v31 = vmul.f32 1.442695, %v6588_v22  ;;  %v841_v40 = vmul.f32 1.442695, %v6591_v24  ;;  %v1137_v57 = vmul.f32 1.050701, %v1073_v21 }
 0x16e   :  { %v5417_v25 = vpop.eup %5416  ;;  %v1138_v26 = vmul.f32 1.050701, %v1074_v19  ;;  %v4650_v27 = vadd.f32 -1.0, %v5415_v18  ;;  %v435_v33 = vpop.f32.mrb[16].mxu0  ;;  %1463 = vmatprep.mubr.bf16.mxu0 %v1196_v30  ;;  %vm758_vm12 = vcmp.gt.f32.partialorder %v6543_v9, 0.0  ;;  %vm759_vm13 = vcmp.gt.f32.partialorder %v6564_v43, 0.0 }
 0x16f   :  { %v4651_v36 = vadd.f32 -1.0, %v5417_v25  ;;  %v437_v5 = vpop.f32.mrb[17].mxu0  ;;  %v6600_v42 = vadd.f32 %v435_v33, %v6438_v63  ;;  %5426 = vpow2.f32 %v839_v31  ;;  %1464 = vmatmul.mubr.bf16.vlgmr.msra.gmra.mrb[52].mxu0 %v1195_v32  ;;  %v1135_v4 = vmul.f32 1.050701, %v1071_v8 }
 0x170   :  { %v1011_v39 = vmul.f32 1.6732632, %v4650_v27  ;;  %v6603_v46 = vadd.f32 %v437_v5, %v6442_v0  ;;  %v439_v50 = vpop.f32.mrb[18].mxu0  ;;  %v1198_v55 = vpack.c.bf16 %v1138_v26, %v1136_v34  ;;  %v5419_v56 = vpop.eup %5418  ;;  %5428 = vpow2.f32 %v841_v40 }
 0x171   :  { %v1012_v51 = vmul.f32 1.6732632, %v4651_v36  ;;  %v6606_v28 = vadd.f32 %v439_v50, %v6438_v63  ;;  %v441_v53 = vpop.f32.mrb[19].mxu0  ;;  %v843_v61 = vmul.f32 1.442695, %v6600_v42  ;;  %v4652_v6 = vadd.f32 -1.0, %v5419_v56 }
 0x172   :  { %v5421_v2 = vpop.eup %5420  ;;  %v1075_v32 = vsel %vm755_vm9, %v6496_v44, %v1011_v39  ;;  %1473 = vmatprep.mubr.bf16.mxu0 %v1198_v55  ;;  %v845_v11 = vmul.f32 1.442695, %v6603_v46  ;;  %vm760_vm14 = vcmp.gt.f32.partialorder %v6569_v13, 0.0  ;;  %v6624_v44 = vadd.f32 %v441_v53, %v6442_v0  ;;  %v5328_v55 = vld [vmem:[#allocation8] ss:$8 sps:$4 sm:$0xff]  }
 0x173   :  { %v1076_v10 = vsel %vm756_vm10, %v6504_v52, %v1012_v51  ;;  %v4653_v3 = vadd.f32 -1.0, %v5421_v2  ;;  %5430 = vpow2.f32 %v843_v61  ;;  %v1013_v18 = vmul.f32 1.6732632, %v4652_v6 }
 0x174   :  { %v847_v8 = vmul.f32 1.442695, %v6606_v28  ;;  %v6626_v25 = vmul.f32 1.050701, %v1075_v32  ;;  %5432 = vpow2.f32 %v845_v11  ;;  %v1197_v26 = vpack.c.bf16 %v1137_v57, %v1135_v4  ;;  %v5330_v57 = vld [vmem:[#allocation8 + $0x4] ss:$8 sps:$4 sm:$0xff]  }
 0x175   :  { %v5423_v19 = vpop.eup %5422  ;;  %v1014_v1 = vmul.f32 1.6732632, %v4653_v3  ;;  %v1140_v52 = vmul.f32 1.050701, %v1076_v10  ;;  %vm761_vm15 = vcmp.gt.f32.partialorder %v6588_v22, 0.0  ;;  %v1077_v36 = vsel %vm757_vm11, %v6530_v14, %v1013_v18  ;;  %2372 = vmatprep.subr.bf16.mxu1 %v5330_v57 }
 0x176   :  { %v445_v27 = vpop.f32.mrb[20].mxu0  ;;  %v4654_v30 = vadd.f32 -1.0, %v5423_v19  ;;  %5434 = vpow2.f32 %v847_v8  ;;  %v6629_v34 = vmul.f32 1.6732632, %v4694_v17  ;;  %v5425_v21 = vpop.eup %5424  ;;  %v849_v5 = vmul.f32 1.442695, %v6624_v44  ;;  %2373 = vmatpush1.bf16.msra.mxu1 %v5328_v55 }
 0x177   :  { %v447_v33 = vpop.f32.mrb[21].mxu0  ;;  %v1078_v31 = vsel %vm758_vm12, %v6543_v9, %v1014_v1  ;;  %v6639_v39 = vadd.f32 %v445_v27, %v6438_v63  ;;  %v4655_v51 = vadd.f32 -1.0, %v5425_v21  ;;  %1474 = vmatmul.mubr.bf16.gmra.mrb[56].mxu0 %v1197_v26  ;;  %v1141_v2 = vmul.f32 1.050701, %v1077_v36  ;;  %v5331_v18 = vld [vmem:[#allocation8 + $0x10] ss:$8 sps:$4 sm:$0xff]  }
 0x178   :  { %v449_v40 = vpop.f32.mrb[22].mxu0  ;;  %v1015_v50 = vmul.f32 1.6732632, %v4654_v30  ;;  %v6642_v17 = vadd.f32 %v447_v33, %v6442_v0  ;;  %v1142_v56 = vmul.f32 1.050701, %v1078_v31  ;;  %5436 = vpow2.f32 %v849_v5 }
 0x179   :  { %v451_v53 = vpop.f32.mrb[23].mxu0  ;;  %v851_v14 = vmul.f32 1.442695, %v6639_v39  ;;  %v6646_v9 = vadd.f32 %v449_v40, %v6438_v63  ;;  %v5427_v61 = vpop.eup %5426  ;;  %v1016_v32 = vmul.f32 1.6732632, %v4655_v51  ;;  %vm762_vm1 = vcmp.gt.f32.partialorder %v6591_v24, 0.0 }
 0x17a   :  { %v1079_v4 = vsel %vm759_vm13, %v6564_v43, %v1015_v50  ;;  %v853_v6 = vmul.f32 1.442695, %v6642_v17  ;;  %v5429_v10 = vpop.eup %5428  ;;  %v4656_v11 = vadd.f32 -1.0, %v5427_v61  ;;  %vm763_vm0 = vcmp.gt.f32.partialorder %v6600_v42, 0.0  ;;  %v5333_v43 = vld [vmem:[#allocation8 + $0x14] ss:$8 sps:$4 sm:$0xff]  }
 0x17b   :  { %v6654_v3 = vmul.f32 1.050701, %v1079_v4  ;;  %5438 = vpow2.f32 %v851_v14  ;;  %v4657_v8 = vadd.f32 -1.0, %v5429_v10  ;;  %v855_v16 = vmul.f32 1.442695, %v6646_v9  ;;  %2374 = vmatprep.subr.bf16.mxu1 %v5333_v43 }
 0x17c   :  { %5440 = vpow2.f32 %v853_v6  ;;  %v1080_v1 = vsel %vm760_vm14, %v6569_v13, %v1016_v32  ;;  %v1017_v26 = vmul.f32 1.6732632, %v4656_v11  ;;  %v6663_v27 = vadd.f32 %v451_v53, %v6442_v0  ;;  %v5336_v53 = vld [vmem:[#allocation8 + $0x24] ss:$8 sps:$4 sm:$0xff]   ;;  %2375 = vmatpush1.bf16.msra.mxu1 %v5331_v18  ;;  %v5339_v11 = vld [vmem:[#allocation8 + $0x34] ss:$8 sps:$4 sm:$0xff]  }
 0x17d   :  { %v5431_v19 = vpop.eup %5430  ;;  %v1200_v30 = vpack.c.bf16 %v1142_v56, %v1140_v52  ;;  %v1018_v21 = vmul.f32 1.6732632, %v4657_v8  ;;  %5442 = vpow2.f32 %v855_v16  ;;  %v1199_v31 = vpack.c.bf16 %v1141_v2, %v6626_v25  ;;  %2376 = vmatprep.subr.bf16.mxu1 %v5336_v53 }
 0x17e   :  { %v455_v33 = vpop.f32.mrb[24].mxu0  ;;  %v4658_v36 = vadd.f32 -1.0, %v5431_v19  ;;  %v5433_v40 = vpop.eup %5432  ;;  %v1081_v50 = vsel %vm761_vm15, %v6588_v22, %v1017_v26  ;;  %vm764_vm2 = vcmp.gt.f32.partialorder %v6603_v46, 0.0  ;;  %v857_v13 = vmul.f32 1.442695, %v6663_v27 }
 0x17f   :  { %v457_v5 = vpop.f32.mrb[25].mxu0  ;;  %1483 = vmatprep.mubr.bf16.mxu0 %v1200_v30  ;;  %v6672_v52 = vadd.f32 %v455_v33, %v6438_v63  ;;  %v1082_v25 = vsel %vm762_vm1, %v6591_v24, %v1018_v21  ;;  %v4659_v14 = vadd.f32 -1.0, %v5433_v40  ;;  %v5334_v22 = vld [vmem:[#allocation8 + $0x20] ss:$8 sps:$4 sm:$0xff]   ;;  %v1144_v61 = vmul.f32 1.050701, %v1080_v1 }
 0x180   :  { %v459_v51 = vpop.f32.mrb[26].mxu0  ;;  %v5435_v55 = vpop.eup %5434  ;;  %v1019_v56 = vmul.f32 1.6732632, %v4658_v36  ;;  %1484 = vmatmul.mubr.bf16.gmra.mrb[60].mxu0 %v1199_v31  ;;  %v1145_v2 = vmul.f32 1.050701, %v1081_v50  ;;  %5444 = vpow2.f32 %v857_v13  ;;  %v6679_v10 = vadd.f32 %v457_v5, %v6442_v0  ;;  %2377 = vmatpush1.bf16.msra.mxu1 %v5334_v22 }
 0x181   :  { %v461_v57 = vpop.f32.mrb[27].mxu0  ;;  %v4660_v4 = vadd.f32 -1.0, %v5435_v55  ;;  %v1020_v32 = vmul.f32 1.6732632, %v4659_v14  ;;  %v859_v6 = vmul.f32 1.442695, %v6672_v52  ;;  %v6685_v18 = vadd.f32 %v459_v51, %v6438_v63  ;;  %2378 = vmatprep.subr.bf16.mxu1 %v5339_v11 }
 0x182   :  { %v5437_v8 = vpop.eup %5436  ;;  %v1146_v24 = vmul.f32 1.050701, %v1082_v25  ;;  %v1083_v16 = vsel %vm763_vm0, %v6600_v42, %v1019_v56  ;;  %v6688_v43 = vadd.f32 %v461_v57, %v6442_v0  ;;  %vm765_vm3 = vcmp.gt.f32.partialorder %v6606_v28, 0.0  ;;  %v5337_v26 = vld [vmem:[#allocation8 + $0x30] ss:$8 sps:$4 sm:$0xff]  }
 0x183   :  { %v1021_v19 = vmul.f32 1.6732632, %v4660_v4  ;;  %v4661_v1 = vadd.f32 -1.0, %v5437_v8  ;;  %vm766_vm4 = vcmp.gt.f32.partialorder %v6624_v44, 0.0  ;;  %v861_v33 = vmul.f32 1.442695, %v6679_v10 }
 0x184   :  { %v5342_v42 = vld [vmem:[#allocation8 + $0x44] ss:$8 sps:$4 sm:$0xff]   ;;  %v6693_v31 = vmul.f32 1.050701, %v1083_v16  ;;  %v1084_v5 = vsel %vm764_vm2, %v6603_v46, %v1020_v32  ;;  %5446 = vpow2.f32 %v859_v6  ;;  %v863_v13 = vmul.f32 1.442695, %v6685_v18  ;;  %2379 = vmatpush1.bf16.msra.mxu1 %v5337_v26 }
 0x185   :  { %v5439_v30 = vpop.eup %5438  ;;  %v1022_v40 = vmul.f32 1.6732632, %v4661_v1  ;;  %5448 = vpow2.f32 %v861_v33  ;;  %v865_v51 = vmul.f32 1.442695, %v6688_v43  ;;  %v1085_v25 = vsel %vm765_vm3, %v6606_v28, %v1021_v19  ;;  %v5340_v22 = vld [vmem:[#allocation8 + $0x40] ss:$8 sps:$4 sm:$0xff]   ;;  %2380 = vmatprep.subr.bf16.mxu1 %v5342_v42 }
 0x186   :  { %v465_v21 = vpop.f32.mrb[28].mxu0  ;;  %v5441_v36 = vpop.eup %5440  ;;  %v1202_v14 = vpack.c.bf16 %v1146_v24, %v1144_v61  ;;  %v1201_v46 = vpack.c.bf16 %v1145_v2, %v6654_v3  ;;  %v1148_v4 = vmul.f32 1.050701, %v1084_v5  ;;  %5450 = vpow2.f32 %v863_v13  ;;  %v5345_v11 = vld [vmem:[#allocation8 + $0x54] ss:$8 sps:$4 sm:$0xff]  }
 0x187   :  { %v4663_v50 = vadd.f32 -1.0, %v5441_v36  ;;  %v467_v53 = vpop.f32.mrb[29].mxu0  ;;  %v5443_v55 = vpop.eup %5442  ;;  %v1086_v56 = vsel %vm766_vm4, %v6624_v44, %v1022_v40  ;;  %v4662_v8 = vadd.f32 -1.0, %v5439_v30  ;;  %5452 = vpow2.f32 %v865_v51  ;;  %v5343_v61 = vld [vmem:[#allocation8 + $0x50] ss:$8 sps:$4 sm:$0xff]  }
 0x188   :  { %v469_v57 = vpop.f32.mrb[30].mxu0  ;;  %v4664_v32 = vadd.f32 -1.0, %v5443_v55  ;;  %1493 = vmatprep.mubr.bf16.mxu0 %v1202_v14  ;;  %v6708_v28 = vadd.f32 %v465_v21, %v6438_v63  ;;  %v6711_v44 = vadd.f32 %v467_v53, %v6442_v0  ;;  %v1149_v2 = vmul.f32 1.050701, %v1085_v25  ;;  %2381 = vmatpush1.bf16.msra.mxu1 %v5340_v22  ;;  %v5348_v30 = vld [vmem:[#allocation8 + $0x64] ss:$8 sps:$4 sm:$0xff]  }
 0x189   :  { %v471_v6 = vpop.f32.mrb[31].mxu0  ;;  %v1150_v24 = vmul.f32 1.050701, %v1086_v56  ;;  %v1024_v16 = vmul.f32 1.6732632, %v4663_v50  ;;  %1494 = vmatmul.mubr.bf16.gmra.mrb[64].mxu0 %v1201_v46  ;;  %v6714_v19 = vadd.f32 %v469_v57, %v6438_v63  ;;  %vm768_vm5 = vcmp.gt.f32.partialorder %v6642_v17, 0.0  ;;  %2382 = vmatprep.subr.bf16.mxu1 %v5345_v11 }
 0x18a   :  { %v5445_v3 = vpop.eup %5444  ;;  %v867_v26 = vmul.f32 1.442695, %v6708_v28  ;;  %5454 = vpow2.f32 %v6522_v12  ;;  %vm769_vm6 = vcmp.gt.f32.partialorder %v6646_v9, 0.0  ;;  %v1025_v33 = vmul.f32 1.6732632, %v4664_v32 }
 0x18b   :  { %v4665_v1 = vadd.f32 -1.0, %v5445_v3  ;;  %v869_v21 = vmul.f32 1.442695, %v6711_v44  ;;  %5456 = vpow2.f32 %v6533_v45  ;;  %v1023_v36 = vmul.f32 1.6732632, %v4662_v8 }
 0x18c   :  { %5458 = vpow2.f32 %v867_v26  ;;  %v871_v40 = vmul.f32 1.442695, %v6714_v19  ;;  %vm770_vm7 = vcmp.gt.f32.partialorder %v6663_v27, 0.0  ;;  %v6725_v12 = vadd.f32 %v471_v6, %v6442_v0  ;;  %2383 = vmatpush1.bf16.msra.mxu1 %v5343_v61  ;;  %v5346_v14 = vld [vmem:[#allocation8 + $0x60] ss:$8 sps:$4 sm:$0xff]  }
 0x18d   :  { %v1026_v5 = vmul.f32 1.6732632, %v4665_v1  ;;  %5460 = vpow2.f32 %v869_v21  ;;  %v1204_v50 = vpack.c.bf16 %v1150_v24, %v1148_v4  ;;  %v1088_v53 = vsel %vm768_vm5, %v6642_v17, %v1024_v16  ;;  %2384 = vmatprep.subr.bf16.mxu1 %v5348_v30  ;;  %v5349_v11 = vld [vmem:[#allocation8 + $0x70] ss:$8 sps:$4 sm:$0xff]   ;;  %v5354_v26 = vld [vmem:[#allocation8 + $0x84] ss:$8 sps:$4 sm:$0xff]  }
 0x18e   :  { %v475_v42 = vpop.f32.mrb[32].mxu0  ;;  %v5447_v51 = vpop.eup %5446  ;;  %v1203_v55 = vpack.c.bf16 %v1149_v2, %v6693_v31  ;;  %vm767_vm8 = vcmp.gt.f32.partialorder %v6639_v39, 0.0  ;;  %v1089_v57 = vsel %vm769_vm6, %v6646_v9, %v1025_v33  ;;  %5462 = vpow2.f32 %v871_v40  ;;  %v5351_v31 = vld [vmem:[#allocation8 + $0x74] ss:$8 sps:$4 sm:$0xff]  }
 0x18f   :  { %v477_v13 = vpop.f32.mrb[33].mxu0  ;;  %v1090_v45 = vsel %vm770_vm7, %v6663_v27, %v1026_v5  ;;  %v6733_v25 = vadd.f32 %v475_v42, %v6438_v63  ;;  %v5449_v46 = vpop.eup %5448  ;;  %1503 = vmatprep.mubr.bf16.mxu0 %v1204_v50  ;;  %v1087_v22 = vsel %vm767_vm8, %v6639_v39, %v1023_v36  ;;  %v873_v32 = vmul.f32 1.442695, %v6725_v12 }
 0x190   :  { %v479_v56 = vpop.f32.mrb[34].mxu0  ;;  %v6740_v17 = vadd.f32 %v477_v13, %v6442_v0  ;;  %v4667_v4 = vadd.f32 -1.0, %v5449_v46  ;;  %v5451_v8 = vpop.eup %5450  ;;  %v1152_v61 = vmul.f32 1.050701, %v1088_v53  ;;  %v1154_v3 = vmul.f32 1.050701, %v1090_v45  ;;  %2385 = vmatpush1.bf16.msra.mxu1 %v5346_v14 }
 0x191   :  { %v481_v27 = vpop.f32.mrb[35].mxu0  ;;  %v875_v6 = vmul.f32 1.442695, %v6733_v25  ;;  %vm771_vm9 = vcmp.gt.f32.partialorder %v6672_v52, 0.0  ;;  %1504 = vmatmul.mubr.bf16.gmra.mrb[68].mxu0 %v1203_v55  ;;  %v6748_v2 = vadd.f32 %v479_v56, %v6438_v63  ;;  %v5453_v24 = vpop.eup %5452  ;;  %v1153_v16 = vmul.f32 1.050701, %v1089_v57  ;;  %2386 = vmatprep.subr.bf16.mxu1 %v5351_v31 }
 0x192   :  { %v877_v9 = vmul.f32 1.442695, %v6740_v17  ;;  %v4666_v39 = vadd.f32 -1.0, %v5447_v51  ;;  %v4668_v1 = vadd.f32 -1.0, %v5451_v8  ;;  %5464 = vpow2.f32 %v873_v32  ;;  %v5352_v13 = vld [vmem:[#allocation8 + $0x80] ss:$8 sps:$4 sm:$0xff]  }
 0x193   :  { %v1028_v30 = vmul.f32 1.6732632, %v4667_v4  ;;  %v4669_v33 = vadd.f32 -1.0, %v5453_v24  ;;  %5466 = vpow2.f32 %v875_v6  ;;  %v879_v21 = vmul.f32 1.442695, %v6748_v2 }
 0x194   :  { %v6751_v36 = vpop.eup %5454  ;;  %v1151_v5 = vmul.f32 1.050701, %v1087_v22  ;;  %vm772_vm10 = vcmp.gt.f32.partialorder %v6679_v10, 0.0  ;;  %5468 = vpow2.f32 %v877_v9  ;;  %v6755_v40 = vadd.f32 %v481_v27, %v6442_v0  ;;  %2387 = vmatpush1.bf16.msra.mxu1 %v5349_v11  ;;  %v5357_v6 = vld [vmem:[#allocation8 + $0x94] ss:$8 sps:$4 sm:$0xff]  }
 0x195   :  { %v6757_v51 = vpop.eup %5456  ;;  %v1029_v53 = vmul.f32 1.6732632, %v4668_v1  ;;  %v1030_v45 = vmul.f32 1.6732632, %v4669_v33  ;;  %5470 = vpow2.f32 %v879_v21  ;;  %v1206_v55 = vpack.c.bf16 %v1154_v3, %v1152_v61  ;;  %2388 = vmatprep.subr.bf16.mxu1 %v5354_v26 }
 0x196   :  { %v485_v42 = vpop.f32.mrb[36].mxu0  ;;  %v5459_v14 = vpop.eup %5458  ;;  %v1027_v46 = vmul.f32 1.6732632, %v4666_v39  ;;  %vm773_vm11 = vcmp.gt.f32.partialorder %v6685_v18, 0.0  ;;  %v881_v57 = vmul.f32 1.442695, %v6755_v40  ;;  %v1205_v31 = vpack.c.bf16 %v1153_v16, %v1151_v5 }
 0x197   :  { %v487_v50 = vpop.f32.mrb[37].mxu0  ;;  %v5461_v27 = vpop.eup %5460  ;;  %v1092_v4 = vsel %vm772_vm10, %v6679_v10, %v1028_v30  ;;  %vm774_vm12 = vcmp.gt.f32.partialorder %v6688_v43, 0.0  ;;  %vm775_vm13 = vcmp.gt.f32.partialorder %v6708_v28, 0.0  ;;  %1513 = vmatprep.mubr.bf16.mxu0 %v1206_v55  ;;  %v6767_v32 = vadd.f32 %v485_v42, %v6438_v63  ;;  %v5355_v16 = vld [vmem:[#allocation8 + $0x90] ss:$8 sps:$4 sm:$0xff]  }
 0x198   :  { %v489_v56 = vpop.f32.mrb[38].mxu0  ;;  %v1094_v8 = vsel %vm774_vm12, %v6688_v43, %v1030_v45  ;;  %v4670_v61 = vadd.f32 -1.0, %v5459_v14  ;;  %5472 = vpow2.f32 %v881_v57  ;;  %v6771_v11 = vadd.f32 %v487_v50, %v6442_v0  ;;  %v5463_v3 = vpop.eup %5462  ;;  %2389 = vmatpush1.bf16.msra.mxu1 %v5352_v13  ;;  %v5358_v13 = vld [vmem:[#allocation8 + $0xa0] ss:$8 sps:$4 sm:$0xff]  }
 0x199   :  { %v491_v22 = vpop.f32.mrb[39].mxu0  ;;  %v1093_v10 = vsel %vm773_vm11, %v6685_v18, %v1029_v53  ;;  %vm776_vm14 = vcmp.gt.f32.partialorder %v6711_v44, 0.0  ;;  %v4671_v9 = vadd.f32 -1.0, %v5461_v27  ;;  %1514 = vmatmul.mubr.bf16.gmra.mrb[72].mxu0 %v1205_v31  ;;  %v883_v24 = vmul.f32 1.442695, %v6767_v32  ;;  %2390 = vmatprep.subr.bf16.mxu1 %v5357_v6 }
 0x19a   :  { %v1091_v43 = vsel %vm771_vm9, %v6672_v52, %v1027_v46  ;;  %vm778_vm15 = vcmp.gt.f32.partialorder %v6725_v12, 0.0  ;;  %v885_v39 = vmul.f32 1.442695, %v6771_v11  ;;  %v6784_v1 = vadd.f32 %v489_v56, %v6438_v63  ;;  %v5360_v18 = vld [vmem:[#allocation8 + $0xa4] ss:$8 sps:$4 sm:$0xff]  }
 0x19b   :  { %v1156_v26 = vmul.f32 1.050701, %v1092_v4  ;;  %v1158_v30 = vmul.f32 1.050701, %v1094_v8  ;;  %vm777_vm1 = vcmp.gt.f32.partialorder %v6714_v19, 0.0  ;;  %5474 = vpow2.f32 %v883_v24 }
 0x19c   :  { %v6788_v33 = vadd.f32 %v491_v22, %v6442_v0  ;;  %v5465_v52 = vpop.eup %5464  ;;  %v1157_v42 = vmul.f32 1.050701, %v1093_v10  ;;  %v1031_v5 = vmul.f32 1.6732632, %v4670_v61  ;;  %v4672_v50 = vadd.f32 -1.0, %v5463_v3  ;;  %2391 = vmatpush1.bf16.msra.mxu1 %v5355_v16 }
 0x19d   :  { %vm779_vm0 = vcmp.gt.f32.partialorder %v6733_v25, 0.0  ;;  %5476 = vpow2.f32 %v885_v39  ;;  %v5467_v45 = vpop.eup %5466  ;;  %v1032_v55 = vmul.f32 1.6732632, %v4671_v9  ;;  %v4673_v56 = vadd.f32 -1.0, %v5465_v52  ;;  %2392 = vmatprep.subr.bf16.mxu1 %v5360_v18  ;;  %v5363_v10 = vld [vmem:[#allocation8 + $0xb4] ss:$8 sps:$4 sm:$0xff]  }
 0x19e   :  { %v495_v21 = vpop.f32.mrb[40].mxu0  ;;  %v887_v14 = vmul.f32 1.442695, %v6784_v1  ;;  %5478 = vpow2.f32 %v6553_v29  ;;  %v5469_v57 = vpop.eup %5468  ;;  %v1155_v31 = vmul.f32 1.050701, %v1091_v43  ;;  %v4674_v22 = vadd.f32 -1.0, %v5467_v45 }
 0x19f   :  { %v497_v53 = vpop.f32.mrb[41].mxu0  ;;  %vm780_vm2 = vcmp.gt.f32.partialorder %v6740_v17, 0.0  ;;  %v889_v27 = vmul.f32 1.442695, %v6788_v33  ;;  %v5471_v4 = vpop.eup %5470  ;;  %v1034_v6 = vmul.f32 1.6732632, %v4673_v56  ;;  %v1208_v61 = vpack.c.bf16 %v1158_v30, %v1156_v26 }
 0x1a0   :  { %v499_v46 = vpop.f32.mrb[42].mxu0  ;;  %v4675_v8 = vadd.f32 -1.0, %v5469_v57  ;;  %5480 = vpow2.f32 %v887_v14  ;;  %v1095_v29 = vsel %vm775_vm13, %v6708_v28, %v1031_v5  ;;  %v1033_v9 = vmul.f32 1.6732632, %v4672_v50  ;;  %2393 = vmatpush1.bf16.msra.mxu1 %v5358_v13  ;;  %v5366_v52 = vld [vmem:[#allocation8 + $0xc4] ss:$8 sps:$4 sm:$0xff]  }
 0x1a1   :  { %v501_v3 = vpop.f32.mrb[43].mxu0  ;;  %5482 = vpow2.f32 %v889_v27  ;;  %v1207_v24 = vpack.c.bf16 %v1157_v42, %v1155_v31  ;;  %vm799_vm3 = vcmp.gt.f32.partialorder %v6467_v23, 0.0  ;;  %v1096_v16 = vsel %vm776_vm14, %v6711_v44, %v1032_v55  ;;  %1523 = vmatprep.mubr.bf16.mxu0 %v1208_v61  ;;  %2394 = vmatprep.subr.bf16.mxu1 %v5363_v10 }
 0x1a2   :  { %v1035_v43 = vmul.f32 1.6732632, %v4674_v22  ;;  %vm781_vm4 = vcmp.gt.f32.partialorder %v6748_v2, 0.0  ;;  %v6804_v39 = vadd.f32 %v495_v21, %v6438_v63  ;;  %v6807_v18 = vadd.f32 %v497_v53, %v6442_v0  ;;  %v5473_v28 = vpop.eup %5472  ;;  %v5361_v21 = vld [vmem:[#allocation8 + $0xb0] ss:$8 sps:$4 sm:$0xff]  }
 0x1a3   :  { %v1098_v26 = vsel %vm778_vm15, %v6725_v12, %v1034_v6  ;;  %v4676_v30 = vadd.f32 -1.0, %v5471_v4  ;;  %vm782_vm5 = vcmp.gt.f32.partialorder %v6755_v40, 0.0  ;;  %vm783_vm6 = vcmp.gt.f32.partialorder %v6767_v32, 0.0  ;;  %1524 = vmatmul.mubr.bf16.gmra.mrb[76].mxu0 %v1207_v24  ;;  %v5364_v22 = vld [vmem:[#allocation8 + $0xc0] ss:$8 sps:$4 sm:$0xff]  }
 0x1a4   :  { %v6815_v44 = vadd.f32 %v499_v46, %v6438_v63  ;;  %v6817_v42 = vmul.f32 1.050701, %v1095_v29  ;;  %v1036_v5 = vmul.f32 1.6732632, %v4675_v8  ;;  %v4677_v50 = vadd.f32 -1.0, %v5473_v28  ;;  %2395 = vmatpush1.bf16.msra.mxu1 %v5361_v21 }
 0x1a5   :  { %v6821_v12 = vadd.f32 %v6486_v35, %v6438_v63  ;;  %v1160_v45 = vmul.f32 1.050701, %v1096_v16  ;;  %v1097_v55 = vsel %vm777_vm1, %v6714_v19, %v1033_v9  ;;  %vm784_vm7 = vcmp.gt.f32.partialorder %v6771_v11, 0.0  ;;  %v5475_v14 = vpop.eup %5474  ;;  %2396 = vmatprep.subr.bf16.mxu1 %v5366_v52 }
 0x1a6   :  { %v505_v53 = vpop.f32.mrb[44].mxu0  ;;  %v891_v13 = vmul.f32 1.442695, %v6804_v39  ;;  %v1162_v46 = vmul.f32 1.050701, %v1098_v26  ;;  %v1099_v57 = vsel %vm779_vm0, %v6733_v25, %v1035_v43  ;;  %v6833_v31 = vadd.f32 %v501_v3, %v6442_v0 }
 0x1a7   :  { %v507_v56 = vpop.f32.mrb[45].mxu0  ;;  %v893_v35 = vmul.f32 1.442695, %v6807_v18  ;;  %vm800_vm8 = vcmp.gt.f32.partialorder %v6499_v47, 0.0  ;;  %v5477_v19 = vpop.eup %5476  ;;  %v1037_v27 = vmul.f32 1.6732632, %v4676_v30  ;;  %v1100_v25 = vsel %vm780_vm2, %v6740_v17, %v1036_v5 }
 0x1a8   :  { %v4678_v4 = vadd.f32 -1.0, %v5475_v14  ;;  %5484 = vpow2.f32 %v891_v13  ;;  %v895_v6 = vmul.f32 1.442695, %v6815_v44  ;;  %v6837_v8 = vpop.f32.mrb[46].mxu0  ;;  %v5479_v61 = vpop.eup %5478  ;;  %v1038_v10 = vmul.f32 1.6732632, %v4677_v50  ;;  %2397 = vmatpush1.bf16.msra.mxu1 %v5364_v22 }
 0x1a9   :  { %v4679_v3 = vadd.f32 -1.0, %v5477_v19  ;;  %5486 = vpow2.f32 %v893_v35  ;;  %vm801_vm9 = vcmp.gt.f32.partialorder %v6507_v54, 0.0  ;;  %v6843_v29 = vpop.f32.mrb[47].mxu0  ;;  %v1161_v9 = vmul.f32 1.050701, %v1097_v55 }
 0x1aa   :  { %v1039_v24 = vmul.f32 1.6732632, %v4678_v4  ;;  %vm785_vm10 = vcmp.gt.f32.partialorder %v6784_v1, 0.0  ;;  %5488 = vpow2.f32 %v895_v6  ;;  %v897_v16 = vmul.f32 1.442695, %v6833_v31  ;;  %v5481_v43 = vpop.eup %5480 }
 0x1ab   :  { %vm802_vm11 = vcmp.gt.f32.partialorder %v6516_v7, 0.0  ;;  %v6848_v28 = vmul.f32 1.050701, %v1099_v57  ;;  %v1040_v17 = vmul.f32 1.6732632, %v4679_v3  ;;  %v1210_v26 = vpack.c.bf16 %v1162_v46, %v1160_v45  ;;  %v5483_v21 = vpop.eup %5482 }
 0x1ac   :  { %v4695_v30 = vadd.f32 -1.0, %v6751_v36  ;;  %v6851_v5 = vmul.f32 1.050701, %v1100_v25  ;;  %v1101_v52 = vsel %vm781_vm4, %v6748_v2, %v1037_v27  ;;  %v4680_v50 = vadd.f32 -1.0, %v5481_v43 }
 0x1ad   :  { %5490 = vpow2.f32 %v897_v16  ;;  %v1102_v55 = vsel %vm782_vm5, %v6755_v40, %v1038_v10  ;;  %v1103_v45 = vsel %vm783_vm6, %v6767_v32, %v1039_v24  ;;  %v4681_v13 = vadd.f32 -1.0, %v5483_v21  ;;  %1533 = vmatprep.mubr.bf16.mxu0 %v1210_v26 }
 0x1ae   :  { %v1119_v36 = vsel %vm799_vm3, %v6467_v23, %v6629_v34  ;;  %v6866_v14 = vpop.f32.mrb[48].mxu0  ;;  %v1104_v2 = vsel %vm784_vm7, %v6771_v11, %v1040_v17  ;;  %v1056_v46 = vmul.f32 1.6732632, %v4695_v30  ;;  %v1209_v40 = vpack.c.bf16 %v1161_v9, %v6817_v42 }
 0x1af   :  { %v4696_v57 = vadd.f32 -1.0, %v6757_v51  ;;  %v6873_v35 = vpop.f32.mrb[49].mxu0  ;;  %v1041_v32 = vmul.f32 1.6732632, %v4680_v50  ;;  %v1042_v22 = vmul.f32 1.6732632, %v4681_v13  ;;  %v6876_v27 = vadd.f32 %v505_v53, %v6438_v63 }
 0x1b0   :  { %v4697_v19 = vadd.f32 -1.0, %v5479_v61  ;;  %v6878_v23 = vpop.f32.mrb[50].mxu0  ;;  %v6880_v34 = vmul.f32 1.050701, %v1101_v52  ;;  %vm786_vm12 = vcmp.gt.f32.partialorder %v6788_v33, 0.0  ;;  %1534 = vmatmul.mubr.bf16.gmra.mrb[80].mxu0 %v1209_v40  ;;  %v6884_v42 = vadd.f32 %v507_v56, %v6442_v0 }
 0x1b1   :  { %v1057_v11 = vmul.f32 1.6732632, %v4696_v57  ;;  %v6886_v51 = vpop.f32.mrb[51].mxu0  ;;  %v1166_v4 = vmul.f32 1.050701, %v1102_v55  ;;  %vm787_vm13 = vcmp.gt.f32.partialorder %v6804_v39, 0.0  ;;  %v6894_v61 = vadd.f32 %v6489_v37, %v6442_v0 }
 0x1b2   :  { %vm788_vm14 = vcmp.gt.f32.partialorder %v6807_v18, 0.0  ;;  %v6890_v53 = vmul.f32 1.050701, %v1119_v36  ;;  %v1058_v6 = vmul.f32 1.6732632, %v4697_v19  ;;  %v5485_v25 = vpop.eup %5484  ;;  %vm789_vm15 = vcmp.gt.f32.partialorder %v6815_v44, 0.0 }
 0x1b3   :  { %v6896_v10 = vmul.f32 1.050701, %v1103_v45  ;;  %v6898_v3 = vmul.f32 1.050701, %v1104_v2  ;;  %v1120_v56 = vsel %vm800_vm8, %v6499_v47, %v1056_v46  ;;  %v899_v9 = vmul.f32 1.442695, %v6876_v27  ;;  %v5487_v24 = vpop.eup %5486 }
 0x1b4   :  { %v1105_v16 = vsel %vm785_vm10, %v6784_v1, %v1041_v32  ;;  %v1106_v37 = vsel %vm786_vm12, %v6788_v33, %v1042_v22  ;;  %v4682_v43 = vadd.f32 -1.0, %v5485_v25  ;;  %v901_v17 = vmul.f32 1.442695, %v6884_v42  ;;  %v5489_v26 = vpop.eup %5488 }
 0x1b5   :  { %v4683_v30 = vadd.f32 -1.0, %v5487_v24  ;;  %v1121_v47 = vsel %vm801_vm9, %v6507_v54, %v1057_v11  ;;  %5492 = vpow2.f32 %v899_v9  ;;  %v6917_v21 = vadd.f32 %v6837_v8, %v6438_v63 }
 0x1b6   :  { %v4684_v52 = vadd.f32 -1.0, %v5489_v26  ;;  %v1122_v1 = vsel %vm802_vm11, %v6516_v7, %v1058_v6  ;;  %5494 = vpow2.f32 %v901_v17  ;;  %v6924_v33 = vadd.f32 %v6843_v29, %v6442_v0 }
 0x1b7   :  { %v5491_v50 = vpop.eup %5490  ;;  %v1043_v55 = vmul.f32 1.6732632, %v4682_v43  ;;  %v1044_v45 = vmul.f32 1.6732632, %v4683_v30  ;;  %v903_v54 = vmul.f32 1.442695, %v6917_v21  ;;  %v1212_v13 = vpack.c.bf16 %v1166_v4, %v6851_v5 }
 0x1b8   :  { %v6928_v36 = vmul.f32 1.050701, %v1105_v16  ;;  %v1045_v8 = vmul.f32 1.6732632, %v4684_v52  ;;  %vm790_vm1 = vcmp.gt.f32.partialorder %v6833_v31, 0.0  ;;  %v4685_v46 = vadd.f32 -1.0, %v5491_v50 }
 0x1b9   :  { %v6931_v2 = vmul.f32 1.050701, %v1120_v56  ;;  %v1170_v7 = vmul.f32 1.050701, %v1106_v37  ;;  %5496 = vpow2.f32 %v903_v54  ;;  %v905_v29 = vmul.f32 1.442695, %v6924_v33  ;;  %1543 = vmatprep.mubr.bf16.mxu0 %v1212_v13 }
 0x1ba   :  { %v6934_v40 = vmul.f32 1.050701, %v1121_v47  ;;  %v6936_v57 = vmul.f32 1.050701, %v1122_v1  ;;  %v923_v32 = vmul.f32 1.442695, %v6821_v12  ;;  %v1107_v5 = vsel %vm787_vm13, %v6804_v39, %v1043_v55 }
 0x1bb   :  { %v1108_v22 = vsel %vm788_vm14, %v6807_v18, %v1044_v45  ;;  %vm791_vm0 = vcmp.gt.f32.partialorder %v6876_v27, 0.0  ;;  %5498 = vpow2.f32 %v905_v29  ;;  %v925_v19 = vmul.f32 1.442695, %v6894_v61 }
 0x1bc   :  { %v1109_v11 = vsel %vm789_vm15, %v6815_v44, %v1045_v8  ;;  %5500 = vpow2.f32 %v923_v32  ;;  %v1211_v4 = vpack.c.bf16 %v6880_v34, %v6848_v28  ;;  %v6954_v39 = vadd.f32 %v6493_v41, %v6438_v63 }
 0x1bd   :  { %v1046_v6 = vmul.f32 1.6732632, %v4685_v46  ;;  %vm792_vm2 = vcmp.gt.f32.partialorder %v6884_v42, 0.0  ;;  %5502 = vpow2.f32 %v925_v19  ;;  %v6959_v18 = vadd.f32 %v6501_v48, %v6442_v0 }
 0x1be   :  { %v6963_v25 = vadd.f32 %v6866_v14, %v6438_v63  ;;  %v6965_v44 = vmul.f32 1.050701, %v1107_v5  ;;  %1544 = vmatmul.mubr.bf16.gmra.mrb[84].mxu0 %v1211_v4  ;;  %v927_v28 = vmul.f32 1.442695, %v6954_v39  ;;  %v6970_v41 = vadd.f32 %v6873_v35, %v6442_v0 }
 0x1bf   :  { %v6974_v34 = vadd.f32 %v6878_v23, %v6438_v63  ;;  %v5493_v56 = vpop.eup %5492  ;;  %v6976_v48 = vmul.f32 1.050701, %v1108_v22  ;;  %vm793_vm3 = vcmp.gt.f32.partialorder %v6917_v21, 0.0  ;;  %v929_v14 = vmul.f32 1.442695, %v6959_v18 }
 0x1c0   :  { %v907_v9 = vmul.f32 1.442695, %v6963_v25  ;;  %v5495_v24 = vpop.eup %5494  ;;  %v6981_v16 = vmul.f32 1.050701, %v1109_v11  ;;  %v4686_v37 = vadd.f32 -1.0, %v5493_v56  ;;  %vm803_vm4 = vcmp.gt.f32.partialorder %v6821_v12, 0.0 }
 0x1c1   :  { %5504 = vpow2.f32 %v927_v28  ;;  %v909_v35 = vmul.f32 1.442695, %v6970_v41  ;;  %v1110_v23 = vsel %vm790_vm1, %v6833_v31, %v1046_v6  ;;  %v4687_v43 = vadd.f32 -1.0, %v5495_v24 }
 0x1c2   :  { %vm794_vm5 = vcmp.gt.f32.partialorder %v6924_v33, 0.0  ;;  %5506 = vpow2.f32 %v929_v14  ;;  %v911_v17 = vmul.f32 1.442695, %v6974_v34  ;;  %v1047_v26 = vmul.f32 1.6732632, %v4686_v37 }
 0x1c3   :  { %5508 = vpow2.f32 %v907_v9  ;;  %v6992_v30 = vadd.f32 %v6886_v51, %v6442_v0  ;;  %v6996_v47 = vadd.f32 %v6535_v15, %v6438_v63  ;;  %v5497_v52 = vpop.eup %5496  ;;  %v1048_v1 = vmul.f32 1.6732632, %v4687_v43 }
 0x1c4   :  { %5510 = vpow2.f32 %v909_v35  ;;  %v1214_v31 = vpack.c.bf16 %v1170_v7, %v6898_v3  ;;  %v7001_v50 = vadd.f32 %v6545_v20, %v6442_v0  ;;  %v1111_v55 = vsel %vm791_vm0, %v6876_v27, %v1047_v26 }
 0x1c5   :  { %v4688_v45 = vadd.f32 -1.0, %v5497_v52  ;;  %vm804_vm6 = vcmp.gt.f32.partialorder %v6894_v61, 0.0  ;;  %5512 = vpow2.f32 %v911_v17  ;;  %v5499_v51 = vpop.eup %5498  ;;  %v1174_v15 = vmul.f32 1.050701, %v1110_v23 }
 0x1c6   :  { %vm805_vm7 = vcmp.gt.f32.partialorder %v6954_v39, 0.0  ;;  %vm806_vm8 = vcmp.gt.f32.partialorder %v6959_v18, 0.0  ;;  %v913_v3 = vmul.f32 1.442695, %v6992_v30  ;;  %1553 = vmatprep.mubr.bf16.mxu0 %v1214_v31  ;;  %v5501_v54 = vpop.eup %5500  ;;  %v7010_v20 = vmul.f32 1.050701, %v1111_v55 }
 0x1c7   :  { %v1112_v27 = vsel %vm792_vm2, %v6884_v42, %v1048_v1  ;;  %v1049_v13 = vmul.f32 1.6732632, %v4688_v45  ;;  %v4689_v8 = vadd.f32 -1.0, %v5499_v51  ;;  %v5503_v7 = vpop.eup %5502  ;;  %v4698_v46 = vadd.f32 -1.0, %v5501_v54 }
 0x1c8   :  { %5514 = vpow2.f32 %v913_v3  ;;  %v931_v29 = vmul.f32 1.442695, %v6996_v47  ;;  %v933_v32 = vmul.f32 1.442695, %v7001_v50  ;;  %v4699_v19 = vadd.f32 -1.0, %v5503_v7 }
 0x1c9   :  { %v1113_v5 = vsel %vm793_vm3, %v6917_v21, %v1049_v13  ;;  %v1050_v22 = vmul.f32 1.6732632, %v4689_v8  ;;  %vm795_vm9 = vcmp.gt.f32.partialorder %v6963_v25, 0.0  ;;  %v1213_v42 = vpack.c.bf16 %v6928_v36, %v6896_v10 }
 0x1ca   :  { %v1176_v11 = vmul.f32 1.050701, %v1112_v27  ;;  %v1059_v4 = vmul.f32 1.6732632, %v4698_v46  ;;  %5516 = vpow2.f32 %v931_v29  ;;  %v7025_v6 = vadd.f32 %v6561_v38, %v6438_v63 }
 0x1cb   :  { %v5505_v28 = vpop.eup %5504  ;;  %v1114_v56 = vsel %vm794_vm5, %v6924_v33, %v1050_v22  ;;  %v1060_v21 = vmul.f32 1.6732632, %v4699_v19  ;;  %5518 = vpow2.f32 %v933_v32  ;;  %1554 = vmatmul.mubr.bf16.gmra.mrb[88].mxu0 %v1213_v42  ;;  %v7032_v14 = vadd.f32 %v6566_v49, %v6442_v0 }
 0x1cc   :  { %v5507_v10 = vpop.eup %5506  ;;  %v7034_v36 = vmul.f32 1.050701, %v1113_v5  ;;  %v1178_v9 = vmul.f32 1.050701, %v1114_v56  ;;  %v1123_v63 = vsel %vm803_vm4, %v6821_v12, %v1059_v4  ;;  %v4700_v38 = vadd.f32 -1.0, %v5505_v28 }
 0x1cd   :  { %v5509_v24 = vpop.eup %5508  ;;  %v7039_v37 = vmul.f32 1.050701, %v1123_v63  ;;  %v1124_v33 = vsel %vm804_vm6, %v6894_v61, %v1060_v21  ;;  %v4701_v35 = vadd.f32 -1.0, %v5507_v10  ;;  %v935_v0 = vmul.f32 1.442695, %v7025_v6 }
 0x1ce   :  { %v5511_v49 = vpop.eup %5510  ;;  %v7045_v23 = vmul.f32 1.050701, %v1124_v33  ;;  %v1061_v43 = vmul.f32 1.6732632, %v4700_v38  ;;  %v4690_v17 = vadd.f32 -1.0, %v5509_v24  ;;  %vm796_vm10 = vcmp.gt.f32.partialorder %v6970_v41, 0.0 }
 0x1cf   :  { %v5513_v26 = vpop.eup %5512  ;;  %v1062_v12 = vmul.f32 1.6732632, %v4701_v35  ;;  %v4691_v52 = vadd.f32 -1.0, %v5511_v49  ;;  %5520 = vpow2.f32 %v935_v0  ;;  %v937_v1 = vmul.f32 1.442695, %v7032_v14 }
 0x1d0   :  { %v1125_v61 = vsel %vm805_vm7, %v6954_v39, %v1061_v43  ;;  %v1051_v31 = vmul.f32 1.6732632, %v4690_v17  ;;  %v4692_v55 = vadd.f32 -1.0, %v5513_v26  ;;  %v1216_v45 = vpack.c.bf16 %v1174_v15, %v6976_v48  ;;  %v5369_v63 = vld [vmem:[#allocation8 + $0xd4] ss:$8 sps:$4 sm:$0xff]  }
 0x1d1   :  { %v7053_v51 = vmul.f32 1.050701, %v1125_v61  ;;  %v1126_v3 = vsel %vm806_vm8, %v6959_v18, %v1062_v12  ;;  %v1052_v54 = vmul.f32 1.6732632, %v4691_v52  ;;  %5522 = vpow2.f32 %v937_v1  ;;  %2398 = vmatprep.subr.bf16.mxu1 %v5369_v63  ;;  %v5370_v17 = vld [vmem:[#allocation8 + $0xe0] ss:$8 sps:$4 sm:$0xff]  }
 0x1d2   :  { %v5515_v27 = vpop.eup %5514  ;;  %v7058_v13 = vmul.f32 1.050701, %v1126_v3  ;;  %v1115_v8 = vsel %vm795_vm9, %v6963_v25, %v1051_v31  ;;  %v1053_v39 = vmul.f32 1.6732632, %v4692_v55  ;;  %1563 = vmatprep.mubr.bf16.mxu0 %v1216_v45  ;;  %v1215_v48 = vpack.c.bf16 %v6981_v16, %v6965_v44  ;;  %v588_v12 = vpop.f32.mrb[12].mxu1 }
 0x1d3   :  { %v1179_v15 = vmul.f32 1.050701, %v1115_v8  ;;  %vm797_vm11 = vcmp.gt.f32.partialorder %v6974_v34, 0.0  ;;  %v4693_v7 = vadd.f32 -1.0, %v5515_v27  ;;  %v1218_v46 = vpack.c.bf16 %v1178_v9, %v1176_v11  ;;  %v7090_v52 = vpop.f32.mrb[13].mxu1 }
 0x1d4   :  { %v5517_v18 = vpop.eup %5516  ;;  %v1116_v29 = vsel %vm796_vm10, %v6970_v41, %v1052_v54  ;;  %v1117_v32 = vsel %vm797_vm11, %v6974_v34, %v1053_v39  ;;  %1564 = vmatmul.mubr.bf16.gmra.mrb[92].mxu0 %v1215_v48  ;;  %v1217_v25 = vpack.c.bf16 %v7034_v36, %v7010_v20  ;;  %v1222_v5 = vpack.c.bf16 %v6936_v57, %v6931_v2  ;;  %v5367_v36 = vld [vmem:[#allocation8 + $0xd0] ss:$8 sps:$4 sm:$0xff]   ;;  %v5375_v31 = vld [vmem:[#allocation8 + $0xf4] ss:$8 sps:$4 sm:$0xff]  }
 0x1d5   :  { %v5519_v44 = vpop.eup %5518  ;;  %v1181_v16 = vmul.f32 1.050701, %v1117_v32  ;;  %v1054_v22 = vmul.f32 1.6732632, %v4693_v7  ;;  %v4702_v19 = vadd.f32 -1.0, %v5517_v18  ;;  %1573 = vmatprep.mubr.bf16.mxu0 %v1218_v46  ;;  %v1221_v42 = vpack.c.bf16 %v6934_v40, %v6890_v53  ;;  %2399 = vmatpush1.bf16.msra.mxu1 %v5367_v36 }
 0x1d6   :  { %vm798_vm12 = vcmp.gt.f32.partialorder %v6992_v30, 0.0  ;;  %v4703_v41 = vadd.f32 -1.0, %v5519_v44  ;;  %v1224_v34 = vpack.c.bf16 %v7058_v13, %v7045_v23  ;;  %v1223_v20 = vpack.c.bf16 %v7053_v51, %v7039_v37  ;;  %v5373_v61 = vld [vmem:[#allocation8 + $0xf0] ss:$8 sps:$4 sm:$0xff]  }
 0x1d7   :  { %v1118_v11 = vsel %vm798_vm12, %v6992_v30, %v1054_v22  ;;  %vm807_vm13 = vcmp.gt.f32.partialorder %v6996_v47, 0.0  ;;  %v1063_v2 = vmul.f32 1.6732632, %v4702_v19  ;;  %v1219_v57 = vpack.c.bf16 %v1181_v16, %v1179_v15 }
 0x1d8   :  { %v1180_v4 = vmul.f32 1.050701, %v1116_v29  ;;  %v1182_v28 = vmul.f32 1.050701, %v1118_v11  ;;  %v1064_v56 = vmul.f32 1.6732632, %v4703_v41 }
 0x1d9   :  { %v5521_v21 = vpop.eup %5520  ;;  %vm808_vm14 = vcmp.gt.f32.partialorder %v7001_v50, 0.0  ;;  %v1127_v53 = vsel %vm807_vm13, %v6996_v47, %v1063_v2  ;;  %vm809_vm15 = vcmp.gt.f32.partialorder %v7025_v6, 0.0  ;;  %vm810_vm1 = vcmp.gt.f32.partialorder %v7032_v14, 0.0 }
 0x1da   :  { %v4704_v40 = vadd.f32 -1.0, %v5521_v21  ;;  %v1220_v10 = vpack.c.bf16 %v1182_v28, %v1180_v4  ;;  %v1128_v30 = vsel %vm808_vm14, %v7001_v50, %v1064_v56  ;;  %v1191_v37 = vmul.f32 1.050701, %v1127_v53  ;;  %v5372_v50 = vld [vmem:[#allocation8 + $0xe4] ss:$8 sps:$4 sm:$0xff]  }
 0x1db   :  { %v5523_v9 = vpop.eup %5522  ;;  %v1192_v35 = vmul.f32 1.050701, %v1128_v30  ;;  %2400 = vmatprep.subr.bf16.mxu1 %v5372_v50  ;;  %v186_v30 = vsub.s32 3, %v6427_v59 }
 0x1dc   :  { %v1065_v38 = vmul.f32 1.6732632, %v4704_v40  ;;  %v4705_v24 = vadd.f32 -1.0, %v5523_v9  ;;  %1574 = vmatmul.mubr.bf16.gmra.mrb[96].mxu0 %v1217_v25  ;;  %2401 = vmatpush1.bf16.msra.mxu1 %v5370_v17  ;;  %v182_v9 = vsub.s32 2, %v6427_v59 }
 0x1dd   :  { %1583 = vmatprep.mubr.bf16.mxu0 %v1220_v10  ;;  %2402 = vmatprep.subr.bf16.mxu1 %v5375_v31 }
 0x1de   :  { %v1129_v33 = vsel %vm809_vm15, %v7025_v6, %v1065_v38  ;;  %v1066_v47 = vmul.f32 1.6732632, %v4705_v24  ;;  %v7092_v6 = vpop.f32.mrb[14].mxu1  ;;  %v1259_v38 = vld [vmem:[%s8699_s4] sm:$0x3] }
 0x1df   :  { %v1193_v0 = vmul.f32 1.050701, %v1129_v33  ;;  %v594_v1 = vpop.f32.mrb[15].mxu1 }
 0x1e0   :  { %v1130_v49 = vsel %vm810_vm1, %v7032_v14, %v1066_v47  ;;  %2403 = vmatpush1.bf16.msra.mxu1 %v5373_v61  ;;  %v598_v14 = vpop.f32.mrb[16].mxu1  ;;  %v7172_v47 = vrot.slane %v1259_v38, %v6431_v60 }
 0x1e1   :  { %v1194_v23 = vmul.f32 1.050701, %v1130_v49  ;;  %v1225_v43 = vpack.c.bf16 %v1193_v0, %v1191_v37  ;;  %v600_v55 = vpop.f32.mrb[17].mxu1  ;;  %v5916_v37 = vld [vmem:[#allocation3] sm:$0xf]  ;;  %v7177_v0 = vrot.slane %v1259_v38, %v6434_v62 }
 0x1e2   :  { %v602_v45 = vpop.f32.mrb[18].mxu1  ;;  %v7169_v33 = vrot.slane %v5916_v37, %v182_v9 }
 0x1e3   :  { %v1226_v26 = vpack.c.bf16 %v1194_v23, %v1192_v35  ;;  %v604_v51 = vpop.f32.mrb[19].mxu1  ;;  %v7174_v35 = vrot.slane %v5916_v37, %v186_v30 }
 0x1e4   :  { %1584 = vmatmul.mubr.bf16.gmra.mrb[100].mxu0 %v1219_v57  ;;  %v608_v3 = vpop.f32.mrb[20].mxu1  ;;  %v7180_v23 = vadd.f32 %v588_v12, %v7169_v33  ;;  %v7200_v9 = vadd.f32 %v598_v14, %v7169_v33 }
 0x1e5   :  { %1593 = vmatprep.mubr.bf16.mxu0 %v1222_v5  ;;  %v7094_v54 = vpop.f32.mrb[21].mxu1  ;;  %v7187_v50 = vadd.f32 %v7090_v52, %v7174_v35  ;;  %v7194_v61 = vadd.f32 %v594_v1, %v7174_v35  ;;  %v7203_v30 = vadd.f32 %v600_v55, %v7174_v35  ;;  %v7206_v52 = vadd.f32 %v602_v45, %v7169_v33 }
 0x1e6   :  { %v7096_v27 = vpop.f32.mrb[22].mxu1  ;;  %v7213_v37 = vadd.f32 %v604_v51, %v7174_v35  ;;  %v7226_v45 = vadd.f32 %v7094_v54, %v7174_v35 }
 0x1e7   :  { %v7098_v13 = vpop.f32.mrb[23].mxu1 }
 0x1e8   :  { %v7100_v8 = vpop.f32.mrb[24].mxu1  ;;  %v7237_v58 = vadd.f32 %v7098_v13, %v7174_v35 }
 0x1e9   :  { %v7102_v39 = vpop.f32.mrb[25].mxu1 }
 0x1ea   :  { %v7104_v48 = vpop.f32.mrb[26].mxu1 }
 0x1eb   :  { %v7106_v15 = vpop.f32.mrb[27].mxu1 }
 0x1ec   :  { %1594 = vmatmul.mubr.bf16.gmra.mrb[104].mxu0 %v1221_v42  ;;  %v7108_v7 = vpop.f32.mrb[28].mxu1  ;;  %v7258_v13 = vadd.f32 %v7106_v15, %v7174_v35 }
 0x1ed   :  { %1603 = vmatprep.mubr.bf16.mxu0 %v1224_v34  ;;  %v7110_v46 = vpop.f32.mrb[29].mxu1 }
 0x1ee   :  { %v7112_v18 = vpop.f32.mrb[30].mxu1 }
 0x1ef   :  { %v7114_v29 = vpop.f32.mrb[31].mxu1 }
 0x1f0   :  { %v7116_v32 = vpop.f32.mrb[32].mxu1 }
 0x1f1   :  { %v7118_v25 = vpop.f32.mrb[33].mxu1  ;;  %v7278_v15 = vadd.f32 %v7116_v32, %v7169_v33 }
 0x1f2   :  { %v7120_v5 = vpop.f32.mrb[34].mxu1 }
 0x1f3   :  { %v7122_v44 = vpop.f32.mrb[35].mxu1 }
 0x1f4   :  { %1604 = vmatmul.mubr.bf16.gmra.mrb[108].mxu0 %v1223_v20  ;;  %v7124_v16 = vpop.f32.mrb[36].mxu1 }
 0x1f5   :  { %1613 = vmatprep.mubr.bf16.mxu0 %v1226_v26  ;;  %v7126_v22 = vpop.f32.mrb[37].mxu1  ;;  %v7191_v26 = vadd.f32 %v7092_v6, %v7169_v33 }
 0x1f6   :  { %v7128_v19 = vpop.f32.mrb[38].mxu1 }
 0x1f7   :  { %v7130_v42 = vpop.f32.mrb[39].mxu1 }
 0x1f8   :  { %v7132_v41 = vpop.f32.mrb[40].mxu1 }
 0x1f9   :  { %v7134_v34 = vpop.f32.mrb[41].mxu1 }
 0x1fa   :  { %v7136_v20 = vpop.f32.mrb[42].mxu1 }
 0x1fb   :  { %v7138_v11 = vpop.f32.mrb[43].mxu1 }
 0x1fc   :  { %1614 = vmatmul.mubr.bf16.gmra.mrb[112].mxu0 %v1225_v43  ;;  %v7140_v2 = vpop.f32.mrb[44].mxu1 }
 0x1fd   :  { %v7142_v57 = vpop.f32.mrb[45].mxu1 }
 0x1fe   :  { %v7144_v4 = vpop.f32.mrb[46].mxu1 }
 0x1ff   :  { %v7146_v28 = vpop.f32.mrb[47].mxu1 }
 0x200   :  { %v7148_v56 = vpop.f32.mrb[48].mxu1 }
 0x201   :  { %v7150_v21 = vpop.f32.mrb[49].mxu1 }
 0x202   :  { %v7152_v53 = vpop.f32.mrb[50].mxu1 }
 0x203   :  { %v7154_v40 = vpop.f32.mrb[51].mxu1 }
 0x204   :  { %v7156_v10 = vpop.f32.mrb[52].mxu1 }
 0x205   :  { %v7158_v36 = vpop.f32.mrb[53].mxu1 }
 0x206   :  { %v7161_v63 = vpop.f32.mrb[54].mxu1 }
 0x207   :  { %v7167_v24 = vpop.f32.mrb[55].mxu1 }
 0x208   :  { %v7218_v14 = vpop.f32.mrb[56].mxu1 }
 0x209   :  { %v7232_v51 = vpop.f32.mrb[57].mxu1 }
 0x20a   :  { %8719 = vst [vmem:[#allocation23_spill] sm:$0xff] %v7232_v51  ;;  %v7243_v59 = vpop.f32.mrb[58].mxu1 }
 0x20b   :  { %8720 = vst [vmem:[#allocation24_spill] sm:$0xff] %v7243_v59  ;;  %v7254_v62 = vpop.f32.mrb[59].mxu1  ;;  %v7316_v59 = vadd.f32 %v7130_v42, %v7174_v35 }
 0x20c   :  { %8721 = vst [vmem:[#allocation25_spill] sm:$0xff] %v7254_v62 }
 0x242   :  { %v1465_v49 = vpop.f32.mrb[52].mxu0 }
 0x243   :  { %v7183_v43 = vadd.f32 %v1465_v49, %v7172_v47  ;;  %v1467_v17 = vpop.f32.mrb[53].mxu0  ;;  %v7216_v49 = vadd.f32 %v608_v3, %v7169_v33 }
 0x244   :  { %v7197_v31 = vadd.f32 %v1467_v17, %v7177_v0  ;;  %v1469_v12 = vpop.f32.mrb[54].mxu0 }
 0x245   :  { %v1688_v38 = vmul.f32 1.442695, %v7183_v43  ;;  %v7210_v6 = vadd.f32 %v1469_v12, %v7172_v47  ;;  %v1471_v1 = vpop.f32.mrb[55].mxu0  ;;  %v7230_v12 = vadd.f32 %v7096_v27, %v7169_v33  ;;  %v7248_v27 = vadd.f32 %v7102_v39, %v7174_v35 }
 0x246   :  { %v1690_v55 = vmul.f32 1.442695, %v7197_v31  ;;  %v7222_v17 = vadd.f32 %v1471_v1, %v7177_v0  ;;  %v7241_v1 = vadd.f32 %v7100_v8, %v7169_v33  ;;  %v7262_v8 = vadd.f32 %v7108_v7, %v7169_v33 }
 0x247   :  { %5524 = vpow2.f32 %v1688_v38  ;;  %v1692_v3 = vmul.f32 1.442695, %v7210_v6  ;;  %v7252_v38 = vadd.f32 %v7104_v48, %v7169_v33  ;;  %v7270_v48 = vadd.f32 %v7112_v18, %v7169_v33 }
 0x248   :  { %5526 = vpow2.f32 %v1690_v55  ;;  %v1694_v54 = vmul.f32 1.442695, %v7222_v17  ;;  %v7266_v55 = vadd.f32 %v7110_v46, %v7174_v35  ;;  %v7285_v46 = vadd.f32 %v7118_v25, %v7174_v35 }
 0x249   :  { %5528 = vpow2.f32 %v1692_v3  ;;  %v7274_v3 = vadd.f32 %v7114_v29, %v7174_v35  ;;  %v7289_v18 = vadd.f32 %v7120_v5, %v7169_v33  ;;  %v7293_v29 = vadd.f32 %v7122_v44, %v7174_v35 }
 0x24a   :  { %5530 = vpow2.f32 %v1694_v54  ;;  %v1475_v39 = vpop.f32.mrb[56].mxu0  ;;  %v7304_v25 = vadd.f32 %v7126_v22, %v7174_v35  ;;  %v7308_v5 = vadd.f32 %v7128_v19, %v7169_v33  ;;  %v7328_v19 = vadd.f32 %v7134_v34, %v7174_v35 }
 0x24b   :  { %v7281_v7 = vadd.f32 %v1475_v39, %v7172_v47  ;;  %v1477_v60 = vpop.f32.mrb[57].mxu0  ;;  %v7300_v39 = vadd.f32 %v7124_v16, %v7169_v33  ;;  %v7320_v16 = vadd.f32 %v7132_v41, %v7169_v33  ;;  %v7337_v41 = vadd.f32 %v7138_v11, %v7174_v35 }
 0x24c   :  { %v7296_v54 = vadd.f32 %v1477_v60, %v7177_v0  ;;  %v1479_v32 = vpop.f32.mrb[58].mxu0  ;;  %vm1624_vm0 = vcmp.gt.f32.partialorder %v7183_v43, 0.0  ;;  %vm1625_vm2 = vcmp.gt.f32.partialorder %v7197_v31, 0.0  ;;  %vm1626_vm3 = vcmp.gt.f32.partialorder %v7210_v6, 0.0 }
 0x24d   :  { %v1696_v62 = vmul.f32 1.442695, %v7281_v7  ;;  %v7312_v44 = vadd.f32 %v1479_v32, %v7172_v47  ;;  %v1481_v60 = vpop.f32.mrb[59].mxu0  ;;  %8722 = vst [vmem:[#allocation26_spill] sm:$0xff] %v7320_v16  ;;  %v7332_v32 = vadd.f32 %v7136_v20, %v7169_v33  ;;  %8724 = vst [vmem:[#allocation28_spill] sm:$0xff] %v7337_v41  ;;  %v7341_v16 = vadd.f32 %v7140_v2, %v7169_v33 }
 0x24e   :  { %v1698_v22 = vmul.f32 1.442695, %v7296_v54  ;;  %v7324_v51 = vadd.f32 %v1481_v60, %v7177_v0  ;;  %v7343_v60 = vpop.f32.mrb[60].mxu1  ;;  %v7348_v20 = vadd.f32 %v7142_v57, %v7174_v35  ;;  %v7358_v2 = vadd.f32 %v7146_v28, %v7174_v35 }
 0x24f   :  { %8723 = vst [vmem:[#allocation27_spill] sm:$0xff] %v7332_v32  ;;  %5532 = vpow2.f32 %v1696_v62  ;;  %v1700_v42 = vmul.f32 1.442695, %v7312_v44  ;;  %8725 = vst [vmem:[#allocation29_spill] sm:$0xff] %v7341_v16  ;;  %v7352_v62 = vadd.f32 %v7144_v4, %v7169_v33  ;;  %v7354_v32 = vpop.f32.mrb[61].mxu1  ;;  %v7366_v57 = vadd.f32 %v7150_v21, %v7174_v35 }
 0x250   :  { %5534 = vpow2.f32 %v1698_v22  ;;  %v1702_v34 = vmul.f32 1.442695, %v7324_v51  ;;  %8726 = vst [vmem:[#allocation30_spill] sm:$0xff] %v7348_v20  ;;  %8728 = vst [vmem:[#allocation32_spill] sm:$0xff] %v7354_v32  ;;  %v7362_v22 = vadd.f32 %v7148_v56, %v7169_v33  ;;  %v7368_v20 = vpop.f32.mrb[62].mxu1  ;;  %v7376_v28 = vadd.f32 %v7154_v40, %v7174_v35 }
 0x251   :  { %8727 = vst [vmem:[#allocation31_spill] sm:$0xff] %v7352_v62  ;;  %v5525_v11 = vpop.eup %5524  ;;  %5536 = vpow2.f32 %v1700_v42  ;;  %8729 = vst [vmem:[#allocation33_spill] sm:$0xff] %v7358_v2  ;;  %v7372_v42 = vadd.f32 %v7152_v53, %v7169_v33  ;;  %v7378_v56 = vpop.f32.mrb[63].mxu1  ;;  %vm1627_vm4 = vcmp.gt.f32.partialorder %v7222_v17, 0.0  ;;  %vm1628_vm5 = vcmp.gt.f32.partialorder %v7281_v7, 0.0 }
 0x252   :  { %8730 = vst [vmem:[#allocation34_spill] sm:$0xff] %v7362_v22  ;;  %8731 = vst [vmem:[#allocation35_spill] sm:$0xff] %v7366_v57  ;;  %v5527_v4 = vpop.eup %5526  ;;  %v4738_v62 = vadd.f32 -1.0, %v5525_v11  ;;  %5538 = vpow2.f32 %v1702_v34  ;;  %v7386_v34 = vadd.f32 %v7156_v10, %v7169_v33  ;;  %vm1629_vm6 = vcmp.gt.f32.partialorder %v7296_v54, 0.0 }
 0x253   :  { %8732 = vst [vmem:[#allocation36_spill] sm:$0xff] %v7368_v20  ;;  %v1485_v16 = vpop.f32.mrb[60].mxu0  ;;  %8733 = vst [vmem:[#allocation37_spill] sm:$0xff] %v7372_v42  ;;  %v5529_v22 = vpop.eup %5528  ;;  %v4739_v21 = vadd.f32 -1.0, %v5527_v4  ;;  %vm1630_vm7 = vcmp.gt.f32.partialorder %v7312_v44, 0.0  ;;  %vm1631_vm8 = vcmp.gt.f32.partialorder %v7324_v51, 0.0 }
 0x254   :  { %8734 = vst [vmem:[#allocation38_spill] sm:$0xff] %v7376_v28  ;;  %8735 = vst [vmem:[#allocation39_spill] sm:$0xff] %v7378_v56  ;;  %v7382_v57 = vadd.f32 %v1485_v16, %v7172_v47  ;;  %v1487_v11 = vpop.f32.mrb[61].mxu0  ;;  %v5531_v53 = vpop.eup %5530  ;;  %v1880_v42 = vmul.f32 1.6732632, %v4738_v62  ;;  %v4740_v40 = vadd.f32 -1.0, %v5529_v22 }
 0x255   :  { %8736 = vst [vmem:[#allocation40_spill] sm:$0xff] %v7386_v34  ;;  %v7390_v28 = vadd.f32 %v1487_v11, %v7177_v0  ;;  %v1489_v2 = vpop.f32.mrb[62].mxu0  ;;  %v1881_v41 = vmul.f32 1.6732632, %v4739_v21  ;;  %v4741_v4 = vadd.f32 -1.0, %v5531_v53  ;;  %v7402_v53 = vpop.f32.mrb[64].mxu1 }
 0x256   :  { %v1704_v16 = vmul.f32 1.442695, %v7382_v57  ;;  %v1882_v56 = vmul.f32 1.6732632, %v4740_v40  ;;  %v1944_v10 = vsel %vm1624_vm0, %v7183_v43, %v1880_v42  ;;  %v1491_v22 = vpop.f32.mrb[63].mxu0  ;;  %8737 = vst [vmem:[#allocation41_spill] sm:$0xff] %v7402_v53  ;;  %v7405_v20 = vadd.f32 %v1489_v2, %v7172_v47 }
 0x257   :  { %v1706_v62 = vmul.f32 1.442695, %v7390_v28  ;;  %v1883_v34 = vmul.f32 1.6732632, %v4741_v4  ;;  %v2008_v11 = vmul.f32 1.050701, %v1944_v10  ;;  %v1945_v21 = vsel %vm1625_vm2, %v7197_v31, %v1881_v41 }
 0x258   :  { %5540 = vpow2.f32 %v1704_v16  ;;  %v2009_v40 = vmul.f32 1.050701, %v1945_v21  ;;  %v1946_v43 = vsel %vm1626_vm3, %v7210_v6, %v1882_v56  ;;  %v7410_v42 = vpop.f32.mrb[65].mxu1  ;;  %v7416_v31 = vadd.f32 %v1491_v22, %v7177_v0 }
 0x259   :  { %5542 = vpow2.f32 %v1706_v62  ;;  %8738 = vst [vmem:[#allocation42_spill] sm:$0xff] %v7410_v42  ;;  %v5533_v4 = vpop.eup %5532  ;;  %v7413_v16 = vadd.f32 %v2008_v11, %v7180_v23  ;;  %v2010_v10 = vmul.f32 1.050701, %v1946_v43  ;;  %v1947_v41 = vsel %vm1627_vm4, %v7222_v17, %v1883_v34  ;;  %v7421_v2 = vpop.f32.mrb[66].mxu1 }
 0x25a   :  { %8739 = vst [vmem:[#allocation43_spill] sm:$0xff] %v7421_v2  ;;  %v5535_v62 = vpop.eup %5534  ;;  %v4742_v6 = vadd.f32 -1.0, %v5533_v4  ;;  %v7425_v56 = vadd.f32 %v2009_v40, %v7187_v50  ;;  %v1708_v23 = vmul.f32 1.442695, %v7405_v20  ;;  %v7428_v11 = vpop.f32.mrb[67].mxu1  ;;  %vm1632_vm9 = vcmp.gt.f32.partialorder %v7382_v57, 0.0 }
 0x25b   :  { %8740 = vst [vmem:[#allocation44_spill] sm:$0xff] %v7428_v11  ;;  %v5537_v21 = vpop.eup %5536  ;;  %v4743_v22 = vadd.f32 -1.0, %v5535_v62  ;;  %v7432_v43 = vadd.f32 %v2010_v10, %v7191_v26  ;;  %v1710_v17 = vmul.f32 1.442695, %v7416_v31  ;;  %v2011_v4 = vmul.f32 1.050701, %v1947_v41 }
 0x25c   :  { %v5539_v34 = vpop.eup %5538  ;;  %v1884_v2 = vmul.f32 1.6732632, %v4742_v6  ;;  %v4744_v42 = vadd.f32 -1.0, %v5537_v21  ;;  %5544 = vpow2.f32 %v1708_v23  ;;  %v1495_v11 = vpop.f32.mrb[64].mxu0  ;;  %vm1633_vm10 = vcmp.gt.f32.partialorder %v7390_v28, 0.0 }
 0x25d   :  { %v1885_v50 = vmul.f32 1.6732632, %v4743_v22  ;;  %v4745_v40 = vadd.f32 -1.0, %v5539_v34  ;;  %v2136_v53 = vpack.c.bf16 %v7432_v43, %v7413_v16  ;;  %5546 = vpow2.f32 %v1710_v17  ;;  %v1497_v6 = vpop.f32.mrb[65].mxu0 }
 0x25e   :  { %v1886_v32 = vmul.f32 1.6732632, %v4744_v42  ;;  %v2075_v62 = vadd.f32 %v2011_v4, %v7194_v61  ;;  %v7439_v26 = vadd.f32 %v1495_v11, %v7172_v47  ;;  %v1948_v10 = vsel %vm1628_vm5, %v7281_v7, %v1884_v2  ;;  %v1499_v42 = vpop.f32.mrb[66].mxu0 }
 0x25f   :  { %v1887_v23 = vmul.f32 1.6732632, %v4745_v40  ;;  %v2012_v41 = vmul.f32 1.050701, %v1948_v10  ;;  %v7445_v21 = vadd.f32 %v1497_v6, %v7177_v0  ;;  %v1949_v16 = vsel %vm1629_vm6, %v7296_v54, %v1885_v50  ;;  %v1501_v7 = vpop.f32.mrb[67].mxu0  ;;  %v7465_v40 = vpop.f32.mrb[68].mxu1 }
 0x260   :  { %v1712_v61 = vmul.f32 1.442695, %v7439_v26  ;;  %v2013_v11 = vmul.f32 1.050701, %v1949_v16  ;;  %v7453_v22 = vadd.f32 %v1499_v42, %v7172_v47  ;;  %v1950_v54 = vsel %vm1630_vm7, %v7312_v44, %v1886_v32 }
 0x261   :  { %v7457_v43 = vadd.f32 %v2012_v41, %v7200_v9  ;;  %v1714_v17 = vmul.f32 1.442695, %v7445_v21  ;;  %v2014_v9 = vmul.f32 1.050701, %v1950_v54  ;;  %v7468_v41 = vpop.f32.mrb[69].mxu1  ;;  %v7471_v44 = vadd.f32 %v1501_v7, %v7177_v0 }
 0x262   :  { %v5541_v2 = vpop.eup %5540  ;;  %5548 = vpow2.f32 %v1712_v61  ;;  %v7463_v50 = vadd.f32 %v2013_v11, %v7203_v30  ;;  %v1716_v6 = vmul.f32 1.442695, %v7453_v22  ;;  %v1951_v32 = vsel %vm1631_vm8, %v7324_v51, %v1887_v23  ;;  %v7477_v42 = vpop.f32.mrb[70].mxu1 }
 0x263   :  { %v5543_v34 = vpop.eup %5542  ;;  %v4746_v4 = vadd.f32 -1.0, %v5541_v2  ;;  %5550 = vpow2.f32 %v1714_v17  ;;  %v2137_v30 = vpack.c.bf16 %v2075_v62, %v7425_v56  ;;  %v7481_v61 = vadd.f32 %v2014_v9, %v7206_v52  ;;  %v7483_v17 = vpop.f32.mrb[71].mxu1 }
 0x264   :  { %v4747_v10 = vadd.f32 -1.0, %v5543_v34  ;;  %5552 = vpow2.f32 %v1716_v6  ;;  %v2015_v11 = vmul.f32 1.050701, %v1951_v32  ;;  %v1505_v2 = vpop.f32.mrb[68].mxu0  ;;  %8741 = vst [vmem:[#allocation45_spill] sm:$0xff] %v7483_v17  ;;  %vm1634_vm11 = vcmp.gt.f32.partialorder %v7405_v20, 0.0 }
 0x265   :  { %v1888_v16 = vmul.f32 1.6732632, %v4746_v4  ;;  %v1718_v34 = vmul.f32 1.442695, %v7471_v44  ;;  %2404 = vmatprep.mubr.bf16.mxu1 %v2137_v30  ;;  %v7487_v51 = vadd.f32 %v1505_v2, %v7172_v47  ;;  %v1507_v62 = vpop.f32.mrb[69].mxu0  ;;  %vm1635_vm12 = vcmp.gt.f32.partialorder %v7416_v31, 0.0 }
 0x266   :  { %v5545_v7 = vpop.eup %5544  ;;  %v1889_v54 = vmul.f32 1.6732632, %v4747_v10  ;;  %v2079_v4 = vadd.f32 %v2015_v11, %v7213_v37  ;;  %2405 = vmatmul.mubr.bf16.vlgmr.msra.gmra.mrb[76].mxu1 %v2136_v53  ;;  %v7494_v9 = vadd.f32 %v1507_v62, %v7177_v0  ;;  %v1509_v10 = vpop.f32.mrb[70].mxu0  ;;  %vm1636_vm13 = vcmp.gt.f32.partialorder %v7439_v26, 0.0 }
 0x267   :  { %v1952_v56 = vsel %vm1632_vm9, %v7382_v57, %v1888_v16  ;;  %v5547_v23 = vpop.eup %5546  ;;  %v4748_v52 = vadd.f32 -1.0, %v5545_v7  ;;  %5554 = vpow2.f32 %v1718_v34  ;;  %v1720_v30 = vmul.f32 1.442695, %v7487_v51  ;;  %v1511_v2 = vpop.f32.mrb[71].mxu0 }
 0x268   :  { %v2016_v6 = vmul.f32 1.050701, %v1952_v56  ;;  %v4749_v32 = vadd.f32 -1.0, %v5547_v23  ;;  %v1722_v37 = vmul.f32 1.442695, %v7494_v9  ;;  %v1953_v16 = vsel %vm1633_vm10, %v7390_v28, %v1889_v54  ;;  %v7509_v7 = vpop.f32.mrb[72].mxu1 }
 0x269   :  { %v1890_v17 = vmul.f32 1.6732632, %v4748_v52  ;;  %5556 = vpow2.f32 %v1720_v30  ;;  %v7507_v11 = vadd.f32 %v1509_v10, %v7172_v47  ;;  %8742 = vst [vmem:[#allocation46_spill] sm:$0xff] %v7509_v7  ;;  %v2017_v34 = vmul.f32 1.050701, %v1953_v16  ;;  %v7517_v62 = vpop.f32.mrb[73].mxu1 }
 0x26a   :  { %v7500_v57 = vadd.f32 %v2016_v6, %v7216_v49  ;;  %v1891_v53 = vmul.f32 1.6732632, %v4749_v32  ;;  %5558 = vpow2.f32 %v1722_v37  ;;  %v7515_v56 = vadd.f32 %v1511_v2, %v7177_v0  ;;  %8743 = vst [vmem:[#allocation47_spill] sm:$0xff] %v7517_v62  ;;  %v7524_v6 = vpop.f32.mrb[74].mxu1 }
 0x26b   :  { %v1954_v49 = vsel %vm1634_vm11, %v7405_v20, %v1890_v17  ;;  %v1724_v28 = vmul.f32 1.442695, %v7507_v11  ;;  %8744 = vst [vmem:[#allocation48_spill] sm:$0xff] %v7524_v6  ;;  %vm1637_vm14 = vcmp.gt.f32.partialorder %v7445_v21, 0.0  ;;  %v7528_v20 = vadd.f32 %v2017_v34, %v7226_v45  ;;  %v7531_v2 = vpop.f32.mrb[75].mxu1 }
 0x26c   :  { %v5549_v23 = vpop.eup %5548  ;;  %v2018_v54 = vmul.f32 1.050701, %v1954_v49  ;;  %v1955_v52 = vsel %vm1635_vm12, %v7416_v31, %v1891_v53  ;;  %v1726_v17 = vmul.f32 1.442695, %v7515_v56  ;;  %v1515_v30 = vpop.f32.mrb[72].mxu0  ;;  %8745 = vst [vmem:[#allocation49_spill] sm:$0xff] %v7531_v2  ;;  %v2138_v45 = vpack.c.bf16 %v7481_v61, %v7457_v43 }
 0x26d   :  { %v5551_v10 = vpop.eup %5550  ;;  %v4750_v32 = vadd.f32 -1.0, %v5549_v23  ;;  %5560 = vpow2.f32 %v1724_v28  ;;  %v2019_v31 = vmul.f32 1.050701, %v1955_v52  ;;  %v1517_v53 = vpop.f32.mrb[73].mxu0  ;;  %v2139_v23 = vpack.c.bf16 %v2079_v4, %v7463_v50 }
 0x26e   :  { %v4751_v37 = vadd.f32 -1.0, %v5551_v10  ;;  %v7534_v16 = vadd.f32 %v2018_v54, %v7230_v12  ;;  %v5553_v49 = vpop.eup %5552  ;;  %5562 = vpow2.f32 %v1726_v17  ;;  %v1519_v34 = vpop.f32.mrb[74].mxu0  ;;  %v7541_v28 = vadd.f32 %v1515_v30, %v7172_v47 }
 0x26f   :  { %v1892_v6 = vmul.f32 1.6732632, %v4750_v32  ;;  %v4752_v7 = vadd.f32 -1.0, %v5553_v49  ;;  %v2083_v2 = vadd.f32 %v2019_v31, %v7237_v58  ;;  %v1521_v12 = vpop.f32.mrb[75].mxu0  ;;  %vm1638_vm15 = vcmp.gt.f32.partialorder %v7453_v22, 0.0  ;;  %2414 = vmatprep.mubr.bf16.mxu1 %v2139_v23 }
 0x270   :  { %v1893_v62 = vmul.f32 1.6732632, %v4751_v37  ;;  %v7548_v50 = vadd.f32 %v1517_v53, %v7177_v0  ;;  %v7551_v43 = vadd.f32 %v1519_v34, %v7172_v47  ;;  %vm1639_vm1 = vcmp.gt.f32.partialorder %v7471_v44, 0.0  ;;  %2415 = vmatmul.mubr.bf16.gmra.mrb[80].mxu1 %v2138_v45 }
 0x271   :  { %v1956_v54 = vsel %vm1636_vm13, %v7439_v26, %v1892_v6  ;;  %v5555_v61 = vpop.eup %5554  ;;  %v1894_v4 = vmul.f32 1.6732632, %v4752_v7  ;;  %v1728_v58 = vmul.f32 1.442695, %v7541_v28  ;;  %vm1640_vm0 = vcmp.gt.f32.partialorder %v7487_v51, 0.0 }
 0x272   :  { %v1957_v52 = vsel %vm1637_vm14, %v7445_v21, %v1893_v62  ;;  %v4753_v10 = vadd.f32 -1.0, %v5555_v61  ;;  %v2020_v26 = vmul.f32 1.050701, %v1956_v54  ;;  %v1730_v6 = vmul.f32 1.442695, %v7548_v50 }
 0x273   :  { %v5557_v32 = vpop.eup %5556  ;;  %5564 = vpow2.f32 %v1728_v58  ;;  %v2021_v17 = vmul.f32 1.050701, %v1957_v52  ;;  %v1732_v7 = vmul.f32 1.442695, %v7551_v43  ;;  %v7562_v30 = vadd.f32 %v1521_v12, %v7177_v0 }
 0x274   :  { %v5559_v37 = vpop.eup %5558  ;;  %v1895_v31 = vmul.f32 1.6732632, %v4753_v10  ;;  %v4754_v53 = vadd.f32 -1.0, %v5557_v32  ;;  %v7565_v49 = vadd.f32 %v2020_v26, %v7241_v1  ;;  %5566 = vpow2.f32 %v1730_v6 }
 0x275   :  { %v4755_v21 = vadd.f32 -1.0, %v5559_v37  ;;  %v7568_v62 = vadd.f32 %v2021_v17, %v7248_v27  ;;  %5568 = vpow2.f32 %v1732_v7  ;;  %v1958_v23 = vsel %vm1638_vm15, %v7453_v22, %v1894_v4  ;;  %v5376_v17 = vld [vmem:[%s8702_s7] sm:$0xff]  }
 0x276   :  { %v1525_v45 = vpop.f32.mrb[76].mxu0  ;;  %v1896_v34 = vmul.f32 1.6732632, %v4754_v53  ;;  %vm1641_vm2 = vcmp.gt.f32.partialorder %v7494_v9, 0.0  ;;  %v2022_v12 = vmul.f32 1.050701, %v1958_v23  ;;  %v1959_v1 = vsel %vm1639_vm1, %v7471_v44, %v1895_v31  ;;  %5090 = vmatprep.subr.bf16.mxu0 %v5376_v17 }
 0x277   :  { %v1527_v54 = vpop.f32.mrb[77].mxu0  ;;  %v5561_v61 = vpop.eup %5560  ;;  %v1897_v58 = vmul.f32 1.6732632, %v4755_v21  ;;  %v1734_v27 = vmul.f32 1.442695, %v7562_v30  ;;  %v2141_v10 = vpack.c.bf16 %v2083_v2, %v7528_v20  ;;  %v2140_v4 = vpack.c.bf16 %v7534_v16, %v7500_v57  ;;  %v5377_v20 = vld [vmem:[%s8702_s7 + $0x8] sm:$0xff]   ;;  %5091 = vmatpush3.bf16.msra.mxu0 %v5376_v17 }
 0x278   :  { %v2023_v52 = vmul.f32 1.050701, %v1959_v1  ;;  %v5563_v26 = vpop.eup %5562  ;;  %v4756_v6 = vadd.f32 -1.0, %v5561_v61  ;;  %v7580_v22 = vadd.f32 %v2022_v12, %v7252_v38  ;;  %v7585_v32 = vadd.f32 %v1525_v45, %v7172_v47  ;;  %v1529_v44 = vpop.f32.mrb[78].mxu0  ;;  %5092 = vmatprep.subr.bf16.mxu0 %v5377_v20 }
 0x279   :  { %v4757_v2 = vadd.f32 -1.0, %v5563_v26  ;;  %5570 = vpow2.f32 %v1734_v27  ;;  %2424 = vmatprep.mubr.bf16.mxu1 %v2141_v10  ;;  %v1960_v57 = vsel %vm1640_vm0, %v7487_v51, %v1896_v34  ;;  %v1531_v16 = vpop.f32.mrb[79].mxu0  ;;  %vm1642_vm3 = vcmp.gt.f32.partialorder %v7507_v11, 0.0  ;;  %v5378_v34 = vld [vmem:[%s8702_s7 + $0x10] sm:$0xff]  }
 0x27a   :  { %v2087_v38 = vadd.f32 %v2023_v52, %v7258_v13  ;;  %v1898_v7 = vmul.f32 1.6732632, %v4756_v6  ;;  %2425 = vmatmul.mubr.bf16.gmra.mrb[84].mxu1 %v2140_v4  ;;  %v1736_v37 = vmul.f32 1.442695, %v7585_v32  ;;  %v7600_v31 = vadd.f32 %v1527_v54, %v7177_v0 }
 0x27b   :  { %v1899_v53 = vmul.f32 1.6732632, %v4757_v2  ;;  %v2024_v21 = vmul.f32 1.050701, %v1960_v57  ;;  %v1961_v13 = vsel %vm1641_vm2, %v7494_v9, %v1897_v58  ;;  %v7606_v23 = vadd.f32 %v1529_v44, %v7172_v47  ;;  %5093 = vmatpush3.bf16.msra.mxu0 %v5377_v20 }
 0x27c   :  { %vm1643_vm4 = vcmp.gt.f32.partialorder %v7515_v56, 0.0  ;;  %5572 = vpow2.f32 %v1736_v37  ;;  %v1738_v51 = vmul.f32 1.442695, %v7600_v31  ;;  %v2025_v45 = vmul.f32 1.050701, %v1961_v13  ;;  %5094 = vmatprep.subr.bf16.mxu0 %v5378_v34 }
 0x27d   :  { %v5565_v12 = vpop.eup %5564  ;;  %vm1644_vm5 = vcmp.gt.f32.partialorder %v7541_v28, 0.0  ;;  %v7615_v9 = vadd.f32 %v2024_v21, %v7262_v8  ;;  %v1740_v1 = vmul.f32 1.442695, %v7606_v23  ;;  %v1962_v54 = vsel %vm1642_vm3, %v7507_v11, %v1898_v7 }
 0x27e   :  { %v5567_v61 = vpop.eup %5566  ;;  %v4758_v58 = vadd.f32 -1.0, %v5565_v12  ;;  %5574 = vpow2.f32 %v1738_v51  ;;  %v7622_v27 = vadd.f32 %v2025_v45, %v7266_v55  ;;  %v2026_v52 = vmul.f32 1.050701, %v1962_v54  ;;  %v5379_v55 = vld [vmem:[%s8702_s7 + $0x18] sm:$0xff]  }
 0x27f   :  { %v5569_v10 = vpop.eup %5568  ;;  %v4759_v26 = vadd.f32 -1.0, %v5567_v61  ;;  %5576 = vpow2.f32 %v1740_v1  ;;  %v7625_v6 = vadd.f32 %v1531_v16, %v7177_v0  ;;  %v1963_v8 = vsel %vm1643_vm4, %v7515_v56, %v1899_v53  ;;  %5095 = vmatpush3.bf16.msra.mxu0 %v5378_v34 }
 0x280   :  { %v1900_v4 = vmul.f32 1.6732632, %v4758_v58  ;;  %v4760_v11 = vadd.f32 -1.0, %v5569_v10  ;;  %v7631_v44 = vadd.f32 %v2026_v52, %v7270_v48  ;;  %v2027_v17 = vmul.f32 1.050701, %v1963_v8  ;;  %5096 = vmatprep.subr.bf16.mxu0 %v5379_v55 }
 0x281   :  { %vm1645_vm6 = vcmp.gt.f32.partialorder %v7548_v50, 0.0  ;;  %v1901_v2 = vmul.f32 1.6732632, %v4759_v26  ;;  %v1742_v57 = vmul.f32 1.442695, %v7625_v6  ;;  %v2143_v16 = vpack.c.bf16 %v2087_v38, %v7568_v62 }
 0x282   :  { %v1902_v20 = vmul.f32 1.6732632, %v4760_v11  ;;  %v2091_v7 = vadd.f32 %v2027_v17, %v7274_v3  ;;  %v2142_v48 = vpack.c.bf16 %v7580_v22, %v7565_v49  ;;  %v1964_v13 = vsel %vm1644_vm5, %v7541_v28, %v1900_v4 }
 0x283   :  { %v1535_v56 = vpop.f32.mrb[80].mxu0  ;;  %v5571_v21 = vpop.eup %5570  ;;  %5578 = vpow2.f32 %v1742_v57  ;;  %2434 = vmatprep.mubr.bf16.mxu1 %v2143_v16  ;;  %v1965_v38 = vsel %vm1645_vm6, %v7548_v50, %v1901_v2  ;;  %vm1646_vm7 = vcmp.gt.f32.partialorder %v7551_v43, 0.0  ;;  %v2028_v51 = vmul.f32 1.050701, %v1964_v13  ;;  %5097 = vmatpush3.bf16.msra.mxu0 %v5379_v55 }
 0x284   :  { %v7643_v37 = vadd.f32 %v1535_v56, %v7172_v47  ;;  %v1537_v53 = vpop.f32.mrb[81].mxu0  ;;  %v4761_v49 = vadd.f32 -1.0, %v5571_v21  ;;  %2435 = vmatmul.mubr.bf16.gmra.mrb[88].mxu1 %v2142_v48  ;;  %vm1647_vm8 = vcmp.gt.f32.partialorder %v7562_v30, 0.0  ;;  %v2029_v28 = vmul.f32 1.050701, %v1965_v38 }
 0x285   :  { %v7649_v62 = vadd.f32 %v1537_v53, %v7177_v0  ;;  %v1539_v3 = vpop.f32.mrb[82].mxu0  ;;  %v7660_v34 = vadd.f32 %v2028_v51, %v7278_v15  ;;  %v1966_v61 = vsel %vm1646_vm7, %v7551_v43, %v1902_v20  ;;  %vm1648_vm9 = vcmp.gt.f32.partialorder %v7585_v32, 0.0 }
 0x286   :  { %v1744_v22 = vmul.f32 1.442695, %v7643_v37  ;;  %v7657_v12 = vadd.f32 %v1539_v3, %v7172_v47  ;;  %v1541_v1 = vpop.f32.mrb[83].mxu0  ;;  %v5573_v50 = vpop.eup %5572  ;;  %v1903_v54 = vmul.f32 1.6732632, %v4761_v49  ;;  %v2093_v52 = vadd.f32 %v2029_v28, %v7285_v46 }
 0x287   :  { %v1746_v45 = vmul.f32 1.442695, %v7649_v62  ;;  %v4762_v58 = vadd.f32 -1.0, %v5573_v50  ;;  %v2030_v8 = vmul.f32 1.050701, %v1966_v61  ;;  %v7667_v4 = vadd.f32 %v1541_v1, %v7177_v0 }
 0x288   :  { %5580 = vpow2.f32 %v1744_v22  ;;  %v5575_v10 = vpop.eup %5574  ;;  %v1748_v26 = vmul.f32 1.442695, %v7657_v12  ;;  %v1967_v15 = vsel %vm1647_vm8, %v7562_v30, %v1903_v54  ;;  %v2145_v57 = vpack.c.bf16 %v2091_v7, %v7622_v27 }
 0x289   :  { %5582 = vpow2.f32 %v1746_v45  ;;  %v5577_v11 = vpop.eup %5576  ;;  %v1904_v43 = vmul.f32 1.6732632, %v4762_v58  ;;  %v4763_v17 = vadd.f32 -1.0, %v5575_v10  ;;  %v2031_v2 = vmul.f32 1.050701, %v1967_v15 }
 0x28a   :  { %vm1649_vm10 = vcmp.gt.f32.partialorder %v7600_v31, 0.0  ;;  %v4764_v46 = vadd.f32 -1.0, %v5577_v11  ;;  %5584 = vpow2.f32 %v1748_v26  ;;  %v2094_v55 = vadd.f32 %v2030_v8, %v7289_v18  ;;  %2444 = vmatprep.mubr.bf16.mxu1 %v2145_v57 }
 0x28b   :  { %v1905_v16 = vmul.f32 1.6732632, %v4763_v17  ;;  %v1750_v56 = vmul.f32 1.442695, %v7667_v4  ;;  %v2095_v20 = vadd.f32 %v2031_v2, %v7293_v29  ;;  %v2144_v30 = vpack.c.bf16 %v7631_v44, %v7615_v9 }
 0x28c   :  { %vm1650_vm11 = vcmp.gt.f32.partialorder %v7606_v23, 0.0  ;;  %v1906_v48 = vmul.f32 1.6732632, %v4764_v46  ;;  %v1968_v27 = vsel %vm1648_vm9, %v7585_v32, %v1904_v43  ;;  %v2146_v7 = vpack.c.bf16 %v2094_v55, %v7660_v34 }
 0x28d   :  { %v5579_v53 = vpop.eup %5578  ;;  %5586 = vpow2.f32 %v1750_v56  ;;  %2445 = vmatmul.mubr.bf16.gmra.mrb[92].mxu1 %v2144_v30  ;;  %v2032_v18 = vmul.f32 1.050701, %v1968_v27  ;;  %v1969_v29 = vsel %vm1649_vm10, %v7600_v31, %v1905_v16  ;;  %v2147_v21 = vpack.c.bf16 %v2095_v20, %v2093_v52 }
 0x28e   :  { %v4765_v13 = vadd.f32 -1.0, %v5579_v53  ;;  %v2033_v44 = vmul.f32 1.050701, %v1969_v29  ;;  %v1970_v38 = vsel %vm1650_vm11, %v7606_v23, %v1906_v48  ;;  %v7690_v3 = vadd.f32 %v7158_v36, %v7174_v35  ;;  %v8747_v53 = vld [vmem:[#allocation23_spill] sm:$0xff] }
 0x28f   :  { %v7696_v49 = vadd.f32 %v2032_v18, %v7300_v39  ;;  %v2034_v51 = vmul.f32 1.050701, %v1970_v38  ;;  %2454 = vmatprep.mubr.bf16.mxu1 %v2147_v21  ;;  %v7700_v31 = vadd.f32 %v7161_v63, %v7169_v33  ;;  %v7708_v50 = vadd.f32 %v7167_v24, %v7174_v35 }
 0x290   :  { %v1907_v28 = vmul.f32 1.6732632, %v4765_v13  ;;  %v2097_v36 = vadd.f32 %v2033_v44, %v7304_v25  ;;  %vm1651_vm12 = vcmp.gt.f32.partialorder %v7625_v6, 0.0  ;;  %vm1652_vm13 = vcmp.gt.f32.partialorder %v7643_v37, 0.0  ;;  %v8748_v13 = vld [vmem:[#allocation24_spill] sm:$0xff]  ;;  %v8749_v44 = vld [vmem:[#allocation25_spill] sm:$0xff] }
 0x291   :  { %v1545_v9 = vpop.f32.mrb[84].mxu0  ;;  %v2098_v52 = vadd.f32 %v2034_v51, %v7308_v5  ;;  %vm1653_vm14 = vcmp.gt.f32.partialorder %v7649_v62, 0.0  ;;  %v7733_v55 = vadd.f32 %v7218_v14, %v7169_v33  ;;  %vm1654_vm15 = vcmp.gt.f32.partialorder %v7657_v12, 0.0 }
 0x292   :  { %v7693_v32 = vadd.f32 %v1545_v9, %v7172_v47  ;;  %v1547_v22 = vpop.f32.mrb[85].mxu0  ;;  %v5581_v45 = vpop.eup %5580  ;;  %v1971_v11 = vsel %vm1651_vm12, %v7625_v6, %v1907_v28  ;;  %v7747_v18 = vadd.f32 %v8747_v53, %v7174_v35  ;;  %v7751_v9 = vadd.f32 %v8748_v13, %v7169_v33 }
 0x293   :  { %v7703_v23 = vadd.f32 %v1547_v22, %v7177_v0  ;;  %v1549_v1 = vpop.f32.mrb[86].mxu0  ;;  %v5583_v39 = vpop.eup %5582  ;;  %v4766_v54 = vadd.f32 -1.0, %v5581_v45  ;;  %v2035_v17 = vmul.f32 1.050701, %v1971_v11  ;;  %v2148_v30 = vpack.c.bf16 %v2098_v52, %v7696_v49  ;;  %v8750_v22 = vld [vmem:[#allocation32_spill] sm:$0xff] }
 0x294   :  { %v1752_v34 = vmul.f32 1.442695, %v7693_v32  ;;  %v7713_v63 = vadd.f32 %v1549_v1, %v7172_v47  ;;  %v1551_v61 = vpop.f32.mrb[87].mxu0  ;;  %v4767_v58 = vadd.f32 -1.0, %v5583_v39  ;;  %v5585_v26 = vpop.eup %5584  ;;  %v7755_v38 = vadd.f32 %v8749_v44, %v7174_v35 }
 0x295   :  { %v1754_v25 = vmul.f32 1.442695, %v7703_v23  ;;  %v1908_v10 = vmul.f32 1.6732632, %v4766_v54  ;;  %v7721_v15 = vadd.f32 %v1551_v61, %v7177_v0  ;;  %v4768_v43 = vadd.f32 -1.0, %v5585_v26  ;;  %2455 = vmatmul.mubr.bf16.gmra.mrb[96].mxu1 %v2146_v7  ;;  %v8752_v54 = vld [vmem:[#allocation36_spill] sm:$0xff] }
 0x296   :  { %5588 = vpow2.f32 %v1752_v34  ;;  %v1756_v24 = vmul.f32 1.442695, %v7713_v63  ;;  %v1909_v8 = vmul.f32 1.6732632, %v4767_v58  ;;  %v2099_v6 = vadd.f32 %v2035_v17, %v7316_v59 }
 0x297   :  { %5590 = vpow2.f32 %v1754_v25  ;;  %v1972_v5 = vsel %vm1652_vm13, %v7643_v37, %v1908_v10  ;;  %v1758_v2 = vmul.f32 1.442695, %v7721_v15  ;;  %v5587_v16 = vpop.eup %5586  ;;  %v1910_v56 = vmul.f32 1.6732632, %v4768_v43  ;;  %v8746_v37 = vld [vmem:[#allocation26_spill] sm:$0xff]  ;;  %v8753_v10 = vld [vmem:[#allocation39_spill] sm:$0xff] }
 0x298   :  { %5592 = vpow2.f32 %v1756_v24  ;;  %v2036_v57 = vmul.f32 1.050701, %v1972_v5  ;;  %v1973_v46 = vsel %vm1653_vm14, %v7649_v62, %v1909_v8  ;;  %v4769_v48 = vadd.f32 -1.0, %v5587_v16  ;;  %v8754_v43 = vld [vmem:[#allocation41_spill] sm:$0xff] }
 0x299   :  { %v2037_v20 = vmul.f32 1.050701, %v1973_v46  ;;  %5594 = vpow2.f32 %v1758_v2  ;;  %v1974_v14 = vsel %vm1654_vm15, %v7657_v12, %v1910_v56  ;;  %v2149_v7 = vpack.c.bf16 %v2099_v6, %v2097_v36  ;;  %v8751_v36 = vld [vmem:[#allocation27_spill] sm:$0xff] }
 0x29a   :  { %v7739_v27 = vadd.f32 %v2036_v57, %v8746_v37  ;;  %v1911_v59 = vmul.f32 1.6732632, %v4769_v48  ;;  %v2038_v21 = vmul.f32 1.050701, %v1974_v14  ;;  %vm1655_vm1 = vcmp.gt.f32.partialorder %v7667_v4, 0.0 }
 0x29b   :  { %v7742_v62 = vadd.f32 %v2037_v20, %v7328_v19  ;;  %2464 = vmatprep.mubr.bf16.mxu1 %v2149_v7  ;;  %v7763_v49 = vadd.f32 %v7343_v60, %v7169_v33  ;;  %v7767_v51 = vadd.f32 %v8750_v22, %v7174_v35  ;;  %v7776_v34 = vadd.f32 %v8752_v54, %v7169_v33  ;;  %v8755_v20 = vld [vmem:[#allocation28_spill] sm:$0xff] }
 0x29c   :  { %v2102_v1 = vadd.f32 %v2038_v21, %v8751_v36  ;;  %v1975_v39 = vsel %vm1655_vm1, %v7667_v4, %v1911_v59  ;;  %v7784_v24 = vadd.f32 %v8753_v10, %v7174_v35  ;;  %v7792_v17 = vadd.f32 %v8754_v43, %v7169_v33  ;;  %v8756_v36 = vld [vmem:[#allocation29_spill] sm:$0xff] }
 0x29d   :  { %v2039_v52 = vmul.f32 1.050701, %v1975_v39  ;;  %2465 = vmatmul.mubr.bf16.gmra.mrb[100].mxu1 %v2148_v30  ;;  %vm1656_vm0 = vcmp.gt.f32.partialorder %v7693_v32, 0.0  ;;  %vm1657_vm2 = vcmp.gt.f32.partialorder %v7703_v23, 0.0  ;;  %vm1658_vm3 = vcmp.gt.f32.partialorder %v7713_v63, 0.0 }
 0x29e   :  { %v1555_v29 = vpop.f32.mrb[88].mxu0  ;;  %v2150_v7 = vpack.c.bf16 %v2102_v1, %v7739_v27  ;;  %vm1659_vm4 = vcmp.gt.f32.partialorder %v7721_v15, 0.0 }
 0x29f   :  { %v7759_v19 = vadd.f32 %v1555_v29, %v7172_v47  ;;  %v1557_v12 = vpop.f32.mrb[89].mxu0  ;;  %v2103_v30 = vadd.f32 %v2039_v52, %v8755_v20 }
 0x2a0   :  { %v7770_v45 = vadd.f32 %v1557_v12, %v7177_v0  ;;  %v1559_v28 = vpop.f32.mrb[90].mxu0  ;;  %v5589_v61 = vpop.eup %5588 }
 0x2a1   :  { %v1760_v60 = vmul.f32 1.442695, %v7759_v19  ;;  %v7780_v58 = vadd.f32 %v1559_v28, %v7172_v47  ;;  %v1561_v25 = vpop.f32.mrb[91].mxu0  ;;  %v5591_v26 = vpop.eup %5590  ;;  %v4770_v8 = vadd.f32 -1.0, %v5589_v61  ;;  %v2151_v28 = vpack.c.bf16 %v2103_v30, %v7742_v62 }
 0x2a2   :  { %v1762_v4 = vmul.f32 1.442695, %v7770_v45  ;;  %v7788_v11 = vadd.f32 %v1561_v25, %v7177_v0  ;;  %v5593_v5 = vpop.eup %5592  ;;  %v4771_v2 = vadd.f32 -1.0, %v5591_v26  ;;  %v8759_v26 = vld [vmem:[#allocation31_spill] sm:$0xff]  ;;  %vm1660_vm5 = vcmp.gt.f32.partialorder %v7759_v19, 0.0 }
 0x2a3   :  { %5596 = vpow2.f32 %v1760_v60  ;;  %v1764_v57 = vmul.f32 1.442695, %v7780_v58  ;;  %v1912_v46 = vmul.f32 1.6732632, %v4770_v8  ;;  %v4772_v16 = vadd.f32 -1.0, %v5593_v5  ;;  %v5595_v48 = vpop.eup %5594  ;;  %2474 = vmatprep.mubr.bf16.mxu1 %v2151_v28 }
 0x2a4   :  { %5598 = vpow2.f32 %v1762_v4  ;;  %v1913_v56 = vmul.f32 1.6732632, %v4771_v2  ;;  %v1766_v6 = vmul.f32 1.442695, %v7788_v11  ;;  %v4773_v53 = vadd.f32 -1.0, %v5595_v48  ;;  %v8760_v2 = vld [vmem:[#allocation43_spill] sm:$0xff] }
 0x2a5   :  { %5600 = vpow2.f32 %v1764_v57  ;;  %v1914_v37 = vmul.f32 1.6732632, %v4772_v16  ;;  %v1976_v14 = vsel %vm1656_vm0, %v7693_v32, %v1912_v46  ;;  %2475 = vmatmul.mubr.bf16.gmra.mrb[104].mxu1 %v2150_v7  ;;  %v7833_v57 = vadd.f32 %v8760_v2, %v7169_v33 }
 0x2a6   :  { %5602 = vpow2.f32 %v1766_v6  ;;  %v2040_v29 = vmul.f32 1.050701, %v1976_v14  ;;  %v1977_v21 = vsel %vm1657_vm2, %v7703_v23, %v1913_v56  ;;  %v1915_v32 = vmul.f32 1.6732632, %v4773_v53  ;;  %v8757_v23 = vld [vmem:[#allocation30_spill] sm:$0xff]  ;;  %v8761_v6 = vld [vmem:[#allocation44_spill] sm:$0xff] }
 0x2a7   :  { %v1565_v59 = vpop.f32.mrb[92].mxu0  ;;  %v2041_v12 = vmul.f32 1.050701, %v1977_v21  ;;  %v1978_v22 = vsel %vm1658_vm3, %v7713_v63, %v1914_v37  ;;  %v8758_v63 = vld [vmem:[#allocation42_spill] sm:$0xff]  ;;  %v7838_v20 = vadd.f32 %v8761_v6, %v7174_v35  ;;  %v8762_v53 = vld [vmem:[#allocation33_spill] sm:$0xff]  ;;  %v7847_v21 = vadd.f32 %v7468_v41, %v7174_v35 }
 0x2a8   :  { %v7806_v13 = vadd.f32 %v1565_v59, %v7172_v47  ;;  %v1567_v44 = vpop.f32.mrb[93].mxu0  ;;  %v2104_v27 = vadd.f32 %v2040_v29, %v8756_v36  ;;  %v2042_v54 = vmul.f32 1.050701, %v1978_v22  ;;  %v7821_v62 = vadd.f32 %v8758_v63, %v7174_v35 }
 0x2a9   :  { %v7812_v1 = vadd.f32 %v1567_v44, %v7177_v0  ;;  %v1569_v39 = vpop.f32.mrb[94].mxu0  ;;  %v2105_v60 = vadd.f32 %v2041_v12, %v8757_v23  ;;  %v1979_v5 = vsel %vm1659_vm4, %v7721_v15, %v1915_v32  ;;  %v7842_v15 = vadd.f32 %v7465_v40, %v7169_v33 }
 0x2aa   :  { %v1768_v61 = vmul.f32 1.442695, %v7806_v13  ;;  %v7817_v25 = vadd.f32 %v1569_v39, %v7172_v47  ;;  %v1571_v52 = vpop.f32.mrb[95].mxu0  ;;  %v2106_v8 = vadd.f32 %v2042_v54, %v8759_v26  ;;  %v2043_v56 = vmul.f32 1.050701, %v1979_v5 }
 0x2ab   :  { %v1770_v10 = vmul.f32 1.442695, %v7812_v1  ;;  %v7827_v4 = vadd.f32 %v1571_v52, %v7177_v0  ;;  %vm1661_vm6 = vcmp.gt.f32.partialorder %v7770_v45, 0.0  ;;  %vm1662_vm7 = vcmp.gt.f32.partialorder %v7780_v58, 0.0 }
 0x2ac   :  { %5604 = vpow2.f32 %v1768_v61  ;;  %v1772_v43 = vmul.f32 1.442695, %v7817_v25  ;;  %v2152_v37 = vpack.c.bf16 %v2106_v8, %v2104_v27  ;;  %v2107_v59 = vadd.f32 %v2043_v56, %v8762_v53 }
 0x2ad   :  { %v5597_v46 = vpop.eup %5596  ;;  %5606 = vpow2.f32 %v1770_v10  ;;  %v1774_v16 = vmul.f32 1.442695, %v7827_v4  ;;  %vm1663_vm8 = vcmp.gt.f32.partialorder %v7788_v11, 0.0  ;;  %vm1664_vm9 = vcmp.gt.f32.partialorder %v7806_v13, 0.0 }
 0x2ae   :  { %v5599_v30 = vpop.eup %5598  ;;  %v4774_v48 = vadd.f32 -1.0, %v5597_v46  ;;  %5608 = vpow2.f32 %v1772_v43  ;;  %v2153_v39 = vpack.c.bf16 %v2107_v59, %v2105_v60  ;;  %vm1665_vm10 = vcmp.gt.f32.partialorder %v7812_v1, 0.0  ;;  %v8765_v59 = vld [vmem:[#allocation37_spill] sm:$0xff] }
 0x2af   :  { %v5601_v14 = vpop.eup %5600  ;;  %v4775_v7 = vadd.f32 -1.0, %v5599_v30  ;;  %5610 = vpow2.f32 %v1774_v16  ;;  %v1575_v29 = vpop.f32.mrb[96].mxu0  ;;  %v8764_v16 = vld [vmem:[#allocation35_spill] sm:$0xff]  ;;  %vm1666_vm11 = vcmp.gt.f32.partialorder %v7817_v25, 0.0  ;;  %vm1667_vm12 = vcmp.gt.f32.partialorder %v7827_v4, 0.0 }
 0x2b0   :  { %v1916_v44 = vmul.f32 1.6732632, %v4774_v48  ;;  %v4776_v12 = vadd.f32 -1.0, %v5601_v14  ;;  %v7851_v22 = vadd.f32 %v1575_v29, %v7172_v47  ;;  %v1577_v28 = vpop.f32.mrb[97].mxu0  ;;  %v5603_v40 = vpop.eup %5602  ;;  %2484 = vmatprep.mubr.bf16.mxu1 %v2153_v39 }
 0x2b1   :  { %v1917_v32 = vmul.f32 1.6732632, %v4775_v7  ;;  %v7855_v36 = vadd.f32 %v1577_v28, %v7177_v0  ;;  %v1579_v27 = vpop.f32.mrb[98].mxu0  ;;  %v4777_v54 = vadd.f32 -1.0, %v5603_v40  ;;  %2485 = vmatmul.mubr.bf16.gmra.mrb[108].mxu1 %v2152_v37 }
 0x2b2   :  { %v1918_v41 = vmul.f32 1.6732632, %v4776_v12  ;;  %v1776_v61 = vmul.f32 1.442695, %v7851_v22  ;;  %v1980_v23 = vsel %vm1660_vm5, %v7759_v19, %v1916_v44  ;;  %v1581_v10 = vpop.f32.mrb[99].mxu0  ;;  %v7866_v43 = vadd.f32 %v1579_v27, %v7172_v47 }
 0x2b3   :  { %v1778_v52 = vmul.f32 1.442695, %v7855_v36  ;;  %v1981_v63 = vsel %vm1661_vm6, %v7770_v45, %v1917_v32  ;;  %v1919_v26 = vmul.f32 1.6732632, %v4777_v54  ;;  %v2044_v60 = vmul.f32 1.050701, %v1980_v23 }
 0x2b4   :  { %5612 = vpow2.f32 %v1776_v61  ;;  %v2045_v8 = vmul.f32 1.050701, %v1981_v63  ;;  %v1982_v5 = vsel %vm1662_vm7, %v7780_v58, %v1918_v41  ;;  %v7872_v19 = vadd.f32 %v1581_v10, %v7177_v0  ;;  %v8763_v45 = vld [vmem:[#allocation34_spill] sm:$0xff] }
 0x2b5   :  { %5614 = vpow2.f32 %v1778_v52  ;;  %v7875_v46 = vadd.f32 %v2044_v60, %v8763_v45  ;;  %v2046_v6 = vmul.f32 1.050701, %v1982_v5  ;;  %v1983_v30 = vsel %vm1663_vm8, %v7788_v11, %v1919_v26  ;;  %v8766_v61 = vld [vmem:[#allocation38_spill] sm:$0xff] }
 0x2b6   :  { %v5605_v2 = vpop.eup %5604  ;;  %v7878_v56 = vadd.f32 %v2045_v8, %v8764_v16  ;;  %v1780_v58 = vmul.f32 1.442695, %v7866_v43  ;;  %v1782_v44 = vmul.f32 1.442695, %v7872_v19  ;;  %v2047_v12 = vmul.f32 1.050701, %v1983_v30 }
 0x2b7   :  { %v5607_v48 = vpop.eup %5606  ;;  %v4778_v37 = vadd.f32 -1.0, %v5605_v2  ;;  %v1585_v14 = vpop.f32.mrb[100].mxu0  ;;  %v2110_v29 = vadd.f32 %v2046_v6, %v8765_v59  ;;  %vm1668_vm13 = vcmp.gt.f32.partialorder %v7851_v22, 0.0  ;;  %vm1669_vm14 = vcmp.gt.f32.partialorder %v7855_v36, 0.0 }
 0x2b8   :  { %v5609_v7 = vpop.eup %5608  ;;  %v4779_v53 = vadd.f32 -1.0, %v5607_v48  ;;  %v1587_v28 = vpop.f32.mrb[101].mxu0  ;;  %5616 = vpow2.f32 %v1780_v58  ;;  %v7889_v27 = vadd.f32 %v1585_v14, %v7172_v47  ;;  %v2111_v23 = vadd.f32 %v2047_v12, %v8766_v61 }
 0x2b9   :  { %v5611_v40 = vpop.eup %5610  ;;  %v1920_v32 = vmul.f32 1.6732632, %v4778_v37  ;;  %v4780_v11 = vadd.f32 -1.0, %v5609_v7  ;;  %v1589_v39 = vpop.f32.mrb[102].mxu0  ;;  %5618 = vpow2.f32 %v1782_v44  ;;  %v7898_v5 = vadd.f32 %v1587_v28, %v7177_v0 }
 0x2ba   :  { %v1921_v41 = vmul.f32 1.6732632, %v4779_v53  ;;  %v4781_v54 = vadd.f32 -1.0, %v5611_v40  ;;  %v1591_v52 = vpop.f32.mrb[103].mxu0  ;;  %v1784_v10 = vmul.f32 1.442695, %v7889_v27  ;;  %v7904_v16 = vadd.f32 %v1589_v39, %v7172_v47 }
 0x2bb   :  { %v1922_v63 = vmul.f32 1.6732632, %v4780_v11  ;;  %v1984_v26 = vsel %vm1664_vm9, %v7806_v13, %v1920_v32  ;;  %v8767_v13 = vld [vmem:[#allocation40_spill] sm:$0xff]  ;;  %v1786_v37 = vmul.f32 1.442695, %v7898_v5  ;;  %v7921_v12 = vadd.f32 %v1591_v52, %v7177_v0 }
 0x2bc   :  { %v1923_v60 = vmul.f32 1.6732632, %v4781_v54  ;;  %v2048_v8 = vmul.f32 1.050701, %v1984_v26  ;;  %v1985_v2 = vsel %vm1665_vm10, %v7812_v1, %v1921_v41  ;;  %5620 = vpow2.f32 %v1784_v10 }
 0x2bd   :  { %v2049_v45 = vmul.f32 1.050701, %v1985_v2  ;;  %v1986_v6 = vsel %vm1666_vm11, %v7817_v25, %v1922_v63  ;;  %v1788_v53 = vmul.f32 1.442695, %v7904_v16  ;;  %5622 = vpow2.f32 %v1786_v37 }
 0x2be   :  { %v5613_v30 = vpop.eup %5612  ;;  %v7909_v48 = vadd.f32 %v2048_v8, %v8767_v13  ;;  %v2050_v58 = vmul.f32 1.050701, %v1986_v6  ;;  %v1987_v32 = vsel %vm1667_vm12, %v7827_v4, %v1923_v60  ;;  %v1790_v41 = vmul.f32 1.442695, %v7921_v12 }
 0x2bf   :  { %v5615_v14 = vpop.eup %5614  ;;  %v4782_v1 = vadd.f32 -1.0, %v5613_v30  ;;  %v7914_v7 = vadd.f32 %v2049_v45, %v7690_v3  ;;  %v1595_v59 = vpop.f32.mrb[104].mxu0  ;;  %5624 = vpow2.f32 %v1788_v53  ;;  %v2155_v3 = vpack.c.bf16 %v2111_v23, %v7878_v56 }
 0x2c0   :  { %v4783_v25 = vadd.f32 -1.0, %v5615_v14  ;;  %v7918_v44 = vadd.f32 %v2050_v58, %v7700_v31  ;;  %v1597_v28 = vpop.f32.mrb[105].mxu0  ;;  %v2154_v31 = vpack.c.bf16 %v2110_v29, %v7875_v46  ;;  %v2051_v52 = vmul.f32 1.050701, %v1987_v32 }
 0x2c1   :  { %v1924_v40 = vmul.f32 1.6732632, %v4782_v1  ;;  %v1599_v11 = vpop.f32.mrb[106].mxu0  ;;  %2494 = vmatprep.mubr.bf16.mxu1 %v2155_v3  ;;  %v7931_v63 = vadd.f32 %v1595_v59, %v7172_v47  ;;  %v7937_v56 = vadd.f32 %v1597_v28, %v7177_v0  ;;  %5626 = vpow2.f32 %v1790_v41 }
 0x2c2   :  { %v1925_v39 = vmul.f32 1.6732632, %v4783_v25  ;;  %v1601_v54 = vpop.f32.mrb[107].mxu0  ;;  %v5617_v61 = vpop.eup %5616  ;;  %2495 = vmatmul.mubr.bf16.gmra.mrb[112].mxu1 %v2154_v31  ;;  %vm1670_vm15 = vcmp.gt.f32.partialorder %v7866_v43, 0.0  ;;  %v2115_v60 = vadd.f32 %v2051_v52, %v7708_v50  ;;  %vm1671_vm1 = vcmp.gt.f32.partialorder %v7872_v19, 0.0 }
 0x2c3   :  { %v1988_v4 = vsel %vm1668_vm13, %v7851_v22, %v1924_v40  ;;  %v5619_v23 = vpop.eup %5618  ;;  %v4784_v10 = vadd.f32 -1.0, %v5617_v61  ;;  %v1792_v8 = vmul.f32 1.442695, %v7931_v63  ;;  %v1794_v45 = vmul.f32 1.442695, %v7937_v56 }
 0x2c4   :  { %v2052_v26 = vmul.f32 1.050701, %v1988_v4  ;;  %v1989_v46 = vsel %vm1669_vm14, %v7855_v36, %v1925_v39  ;;  %v4785_v29 = vadd.f32 -1.0, %v5619_v23  ;;  %v7951_v36 = vadd.f32 %v1599_v11, %v7172_v47 }
 0x2c5   :  { %v1926_v22 = vmul.f32 1.6732632, %v4784_v10  ;;  %5628 = vpow2.f32 %v1792_v8  ;;  %v2053_v13 = vmul.f32 1.050701, %v1989_v46  ;;  %v7957_v14 = vadd.f32 %v1601_v54, %v7177_v0 }
 0x2c6   :  { %v7947_v2 = vadd.f32 %v2052_v26, %v7733_v55  ;;  %v5621_v6 = vpop.eup %5620  ;;  %v1927_v30 = vmul.f32 1.6732632, %v4785_v29  ;;  %5630 = vpow2.f32 %v1794_v45  ;;  %vm1672_vm0 = vcmp.gt.f32.partialorder %v7889_v27, 0.0 }
 0x2c7   :  { %v1605_v37 = vpop.f32.mrb[108].mxu0  ;;  %v4786_v58 = vadd.f32 -1.0, %v5621_v6  ;;  %v1990_v50 = vsel %vm1670_vm15, %v7866_v43, %v1926_v22  ;;  %v7961_v1 = vadd.f32 %v2053_v13, %v7747_v18  ;;  %v1796_v53 = vmul.f32 1.442695, %v7951_v36  ;;  %v5623_v28 = vpop.eup %5622 }
 0x2c8   :  { %v1607_v55 = vpop.f32.mrb[109].mxu0  ;;  %v2054_v59 = vmul.f32 1.050701, %v1990_v50  ;;  %vm1673_vm2 = vcmp.gt.f32.partialorder %v7898_v5, 0.0  ;;  %v1798_v32 = vmul.f32 1.442695, %v7957_v14  ;;  %v1991_v43 = vsel %vm1671_vm1, %v7872_v19, %v1927_v30 }
 0x2c9   :  { %v1609_v25 = vpop.f32.mrb[110].mxu0  ;;  %v1928_v40 = vmul.f32 1.6732632, %v4786_v58  ;;  %v5625_v11 = vpop.eup %5624  ;;  %v4787_v39 = vadd.f32 -1.0, %v5623_v28  ;;  %5632 = vpow2.f32 %v1796_v53  ;;  %v2055_v41 = vmul.f32 1.050701, %v1991_v43 }
 0x2ca   :  { %v1611_v3 = vpop.f32.mrb[111].mxu0  ;;  %v2118_v18 = vadd.f32 %v2054_v59, %v7751_v9  ;;  %v4788_v31 = vadd.f32 -1.0, %v5625_v11  ;;  %5634 = vpow2.f32 %v1798_v32  ;;  %v2157_v54 = vpack.c.bf16 %v2115_v60, %v7914_v7 }
 0x2cb   :  { %v2156_v61 = vpack.c.bf16 %v7918_v44, %v7909_v48  ;;  %v1929_v52 = vmul.f32 1.6732632, %v4787_v39  ;;  %v2119_v4 = vadd.f32 %v2055_v41, %v7755_v38  ;;  %v7975_v23 = vadd.f32 %v1605_v37, %v7172_v47  ;;  %v5627_v10 = vpop.eup %5626 }
 0x2cc   :  { %v1992_v19 = vsel %vm1672_vm0, %v7889_v27, %v1928_v40  ;;  %v1930_v9 = vmul.f32 1.6732632, %v4788_v31  ;;  %2504 = vmatprep.mubr.bf16.mxu1 %v2157_v54  ;;  %v7981_v46 = vadd.f32 %v1607_v55, %v7177_v0  ;;  %v7984_v7 = vadd.f32 %v1609_v25, %v7172_v47 }
 0x2cd   :  { %v2056_v26 = vmul.f32 1.050701, %v1992_v19  ;;  %vm1674_vm3 = vcmp.gt.f32.partialorder %v7904_v16, 0.0  ;;  %v4789_v38 = vadd.f32 -1.0, %v5627_v10  ;;  %2505 = vmatmul.mubr.bf16.gmra.mrb[116].mxu1 %v2156_v61  ;;  %v1800_v48 = vmul.f32 1.442695, %v7975_v23 }
 0x2ce   :  { %v1993_v27 = vsel %vm1673_vm2, %v7898_v5, %v1929_v52  ;;  %vm1675_vm4 = vcmp.gt.f32.partialorder %v7921_v12, 0.0  ;;  %v1802_v60 = vmul.f32 1.442695, %v7981_v46  ;;  %vm1676_vm5 = vcmp.gt.f32.partialorder %v7931_v63, 0.0 }
 0x2cf   :  { %v1615_v44 = vpop.f32.mrb[112].mxu0  ;;  %v7993_v29 = vadd.f32 %v2056_v26, %v7763_v49  ;;  %v2057_v8 = vmul.f32 1.050701, %v1993_v27  ;;  %v5629_v45 = vpop.eup %5628  ;;  %v1931_v6 = vmul.f32 1.6732632, %v4789_v38  ;;  %5636 = vpow2.f32 %v1800_v48 }
 0x2d0   :  { %v1617_v22 = vpop.f32.mrb[113].mxu0  ;;  %v1804_v30 = vmul.f32 1.442695, %v7984_v7  ;;  %v5631_v37 = vpop.eup %5630  ;;  %v4790_v5 = vadd.f32 -1.0, %v5629_v45  ;;  %5638 = vpow2.f32 %v1802_v60  ;;  %v1994_v49 = vsel %vm1674_vm3, %v7904_v16, %v1930_v9  ;;  %v5380_v16 = vld [vmem:[%s8702_s7 + $0x20] sm:$0xff]  }
 0x2d1   :  { %v1619_v13 = vpop.f32.mrb[114].mxu0  ;;  %v7999_v58 = vadd.f32 %v2057_v8, %v7767_v51  ;;  %v4791_v55 = vadd.f32 -1.0, %v5631_v37  ;;  %v2058_v53 = vmul.f32 1.050701, %v1994_v49  ;;  %v8005_v59 = vadd.f32 %v1611_v3, %v7177_v0  ;;  %5098 = vmatprep.subr.bf16.mxu0 %v5380_v16 }
 0x2d2   :  { %v1621_v50 = vpop.f32.mrb[115].mxu0  ;;  %5640 = vpow2.f32 %v1804_v30  ;;  %v1932_v25 = vmul.f32 1.6732632, %v4790_v5  ;;  %v1995_v28 = vsel %vm1675_vm4, %v7921_v12, %v1931_v6  ;;  %v2159_v40 = vpack.c.bf16 %v2119_v4, %v7961_v1  ;;  %5099 = vmatpush3.bf16.msra.mxu0 %v5380_v16 }
 0x2d3   :  { %v2158_v51 = vpack.c.bf16 %v2118_v18, %v7947_v2  ;;  %v5633_v32 = vpop.eup %5632  ;;  %vm1677_vm6 = vcmp.gt.f32.partialorder %v7937_v56, 0.0  ;;  %v1933_v43 = vmul.f32 1.6732632, %v4791_v55  ;;  %v2122_v3 = vadd.f32 %v2058_v53, %v7776_v34 }
 0x2d4   :  { %v1806_v11 = vmul.f32 1.442695, %v8005_v59  ;;  %v5635_v39 = vpop.eup %5634  ;;  %v4792_v41 = vadd.f32 -1.0, %v5633_v32  ;;  %v2059_v31 = vmul.f32 1.050701, %v1995_v28  ;;  %2514 = vmatprep.mubr.bf16.mxu1 %v2159_v40  ;;  %v8019_v12 = vadd.f32 %v1615_v44, %v7172_v47 }
 0x2d5   :  { %v1996_v2 = vsel %vm1676_vm5, %v7931_v63, %v1932_v25  ;;  %v4793_v1 = vadd.f32 -1.0, %v5635_v39  ;;  %2515 = vmatmul.mubr.bf16.gmra.mrb[120].mxu1 %v2158_v51  ;;  %v8025_v34 = vadd.f32 %v1617_v22, %v7177_v0  ;;  %vm1678_vm7 = vcmp.gt.f32.partialorder %v7951_v36, 0.0 }
 0x2d6   :  { %5642 = vpow2.f32 %v1806_v11  ;;  %v2060_v18 = vmul.f32 1.050701, %v1996_v2  ;;  %v1934_v54 = vmul.f32 1.6732632, %v4792_v41  ;;  %v2123_v61 = vadd.f32 %v2059_v31, %v7784_v24 }
 0x2d7   :  { %v1808_v52 = vmul.f32 1.442695, %v8019_v12  ;;  %vm1679_vm8 = vcmp.gt.f32.partialorder %v7957_v14, 0.0  ;;  %v1935_v4 = vmul.f32 1.6732632, %v4793_v1  ;;  %v1997_v10 = vsel %vm1677_vm6, %v7937_v56, %v1933_v43 }
 0x2d8   :  { %v8032_v63 = vadd.f32 %v2060_v18, %v7792_v17  ;;  %v1810_v19 = vmul.f32 1.442695, %v8025_v34  ;;  %v8039_v9 = vadd.f32 %v1619_v13, %v7172_v47  ;;  %v1998_v24 = vsel %vm1678_vm7, %v7951_v36, %v1934_v54  ;;  %v8770_v54 = vld [vmem:[#allocation47_spill] sm:$0xff] }
 0x2d9   :  { %5644 = vpow2.f32 %v1808_v52  ;;  %v5637_v26 = vpop.eup %5636  ;;  %v2061_v38 = vmul.f32 1.050701, %v1997_v10  ;;  %v2062_v48 = vmul.f32 1.050701, %v1998_v24  ;;  %v8043_v27 = vadd.f32 %v1621_v50, %v7177_v0 }
 0x2da   :  { %5646 = vpow2.f32 %v1810_v19  ;;  %v5639_v17 = vpop.eup %5638  ;;  %vm1680_vm9 = vcmp.gt.f32.partialorder %v7975_v23, 0.0  ;;  %v4794_v44 = vadd.f32 -1.0, %v5637_v26  ;;  %v1812_v60 = vmul.f32 1.442695, %v8039_v9 }
 0x2db   :  { %v1999_v47 = vsel %vm1679_vm8, %v7957_v14, %v1935_v4  ;;  %vm1681_vm10 = vcmp.gt.f32.partialorder %v7981_v46, 0.0  ;;  %v4795_v36 = vadd.f32 -1.0, %v5639_v17  ;;  %v2125_v8 = vadd.f32 %v2061_v38, %v7821_v62 }
 0x2dc   :  { %v5641_v56 = vpop.eup %5640  ;;  %v2126_v22 = vadd.f32 %v2062_v48, %v7833_v57  ;;  %v1936_v0 = vmul.f32 1.6732632, %v4794_v44  ;;  %5648 = vpow2.f32 %v1812_v60  ;;  %v1814_v6 = vmul.f32 1.442695, %v8043_v27 }
 0x2dd   :  { %v4796_v45 = vadd.f32 -1.0, %v5641_v56  ;;  %v1937_v30 = vmul.f32 1.6732632, %v4795_v36  ;;  %v2063_v13 = vmul.f32 1.050701, %v1999_v47  ;;  %v2161_v37 = vpack.c.bf16 %v2123_v61, %v7999_v58 }
 0x2de   :  { %v2160_v5 = vpack.c.bf16 %v2122_v3, %v7993_v29  ;;  %5650 = vpow2.f32 %v1814_v6  ;;  %v2000_v49 = vsel %vm1680_vm9, %v7975_v23, %v1936_v0  ;;  %v2162_v62 = vpack.c.bf16 %v2126_v22, %v8032_v63  ;;  %v5382_v22 = vld [vmem:[%s8702_s7 + $0x30] sm:$0xff]  }
 0x2df   :  { %v1938_v14 = vmul.f32 1.6732632, %v4796_v45  ;;  %vm1682_vm11 = vcmp.gt.f32.partialorder %v7984_v7, 0.0  ;;  %v2127_v50 = vadd.f32 %v2063_v13, %v7838_v20  ;;  %2524 = vmatprep.mubr.bf16.mxu1 %v2161_v37  ;;  %v2064_v55 = vmul.f32 1.050701, %v2000_v49  ;;  %v8772_v45 = vld [vmem:[#allocation49_spill] sm:$0xff] }
 0x2e0   :  { %v5643_v57 = vpop.eup %5642  ;;  %v2001_v58 = vsel %vm1681_vm10, %v7981_v46, %v1937_v30  ;;  %2525 = vmatmul.mubr.bf16.gmra.mrb[124].mxu1 %v2160_v5  ;;  %v733_v28 = vadd.f32 %v7477_v42, %v7169_v33  ;;  %vm1683_vm12 = vcmp.gt.f32.partialorder %v8005_v59, 0.0  ;;  %vm1684_vm13 = vcmp.gt.f32.partialorder %v8019_v12, 0.0  ;;  %v8773_v5 = vld [vmem:[#allocation21_spill] sm:$0xff] }
 0x2e1   :  { %v4797_v29 = vadd.f32 -1.0, %v5643_v57  ;;  %v2065_v53 = vmul.f32 1.050701, %v2001_v58  ;;  %v2002_v25 = vsel %vm1682_vm11, %v7984_v7, %v1938_v14  ;;  %v2128_v23 = vadd.f32 %v2064_v55, %v7842_v15  ;;  %v8768_v15 = vld [vmem:[#allocation45_spill] sm:$0xff] }
 0x2e2   :  { %v2066_v40 = vmul.f32 1.050701, %v2002_v25  ;;  %v2163_v51 = vpack.c.bf16 %v2127_v50, %v2125_v8  ;;  %v735_v41 = vadd.f32 %v8768_v15, %v7174_v35  ;;  %v741_v61 = vadd.f32 %v8770_v54, %v7174_v35 }
 0x2e3   :  { %v5645_v16 = vpop.eup %5644  ;;  %v1939_v20 = vmul.f32 1.6732632, %v4797_v29  ;;  %v2129_v32 = vadd.f32 %v2065_v53, %v7847_v21  ;;  %v8769_v21 = vld [vmem:[#allocation46_spill] sm:$0xff]  ;;  %vm1685_vm14 = vcmp.gt.f32.partialorder %v8025_v34, 0.0  ;;  %vm1686_vm15 = vcmp.gt.f32.partialorder %v8039_v9, 0.0 }
 0x2e4   :  { %v5647_v43 = vpop.eup %5646  ;;  %v4798_v46 = vadd.f32 -1.0, %v5645_v16  ;;  %v2130_v3 = vadd.f32 %v2066_v40, %v733_v28  ;;  %2534 = vmatprep.mubr.bf16.mxu1 %v2163_v51  ;;  %v739_v18 = vadd.f32 %v8769_v21, %v7169_v33  ;;  %vm1687_vm1 = vcmp.gt.f32.partialorder %v8043_v27, 0.0 }
 0x2e5   :  { %v4799_v11 = vadd.f32 -1.0, %v5647_v43  ;;  %v2003_v7 = vsel %vm1683_vm12, %v8005_v59, %v1939_v20  ;;  %v5381_v59 = vld [vmem:[%s8702_s7 + $0x28] sm:$0xff]   ;;  %v745_v6 = vadd.f32 %v8772_v45, %v7174_v35 }
 0x2e6   :  { %v1940_v39 = vmul.f32 1.6732632, %v4798_v46  ;;  %v2067_v42 = vmul.f32 1.050701, %v2003_v7  ;;  %v2164_v31 = vpack.c.bf16 %v2130_v3, %v2128_v23  ;;  %v5649_v2 = vpop.eup %5648  ;;  %5100 = vmatprep.subr.bf16.mxu0 %v5381_v59 }
 0x2e7   :  { %v1941_v1 = vmul.f32 1.6732632, %v4799_v11  ;;  %v4800_v52 = vadd.f32 -1.0, %v5649_v2  ;;  %5101 = vmatpush3.bf16.msra.mxu0 %v5381_v59 }
 0x2e8   :  { %v2131_v4 = vadd.f32 %v2067_v42, %v735_v41  ;;  %v2004_v63 = vsel %vm1684_vm13, %v8019_v12, %v1940_v39  ;;  %v5651_v19 = vpop.eup %5650  ;;  %2535 = vmatmul.mubr.bf16.gmra.mrb[128].mxu1 %v2162_v62  ;;  %v8771_v12 = vld [vmem:[#allocation48_spill] sm:$0xff]  ;;  %5102 = vmatprep.subr.bf16.mxu0 %v5382_v22 }
 0x2e9   :  { %v2068_v10 = vmul.f32 1.050701, %v2004_v63  ;;  %v2005_v24 = vsel %vm1685_vm14, %v8025_v34, %v1941_v1  ;;  %v1942_v26 = vmul.f32 1.6732632, %v4800_v52  ;;  %v4801_v38 = vadd.f32 -1.0, %v5651_v19 }
 0x2ea   :  { %v2069_v48 = vmul.f32 1.050701, %v2005_v24  ;;  %v2165_v17 = vpack.c.bf16 %v2131_v4, %v2129_v32  ;;  %v743_v36 = vadd.f32 %v8771_v12, %v7169_v33  ;;  %v5383_v33 = vld [vmem:[%s8702_s7 + $0x38] sm:$0xff]  }
 0x2eb   :  { %v2132_v44 = vadd.f32 %v2068_v10, %v739_v18  ;;  %v1943_v60 = vmul.f32 1.6732632, %v4801_v38  ;;  %v2006_v56 = vsel %vm1686_vm15, %v8039_v9, %v1942_v26  ;;  %5103 = vmatpush3.bf16.msra.mxu0 %v5382_v22 }
 0x2ec   :  { %v2133_v47 = vadd.f32 %v2069_v48, %v741_v61  ;;  %2544 = vmatprep.mubr.bf16.mxu1 %v2165_v17  ;;  %v2070_v34 = vmul.f32 1.050701, %v2006_v56  ;;  %5104 = vmatprep.subr.bf16.mxu0 %v5383_v33 }
 0x2ed   :  { %v2007_v8 = vsel %vm1687_vm1, %v8043_v27, %v1943_v60  ;;  %v8099_v27 = vld [vmem:[#allocation9] sm:$0x3] }
 0x2ee   :  { %v2134_v0 = vadd.f32 %v2070_v34, %v743_v36  ;;  %v2071_v30 = vmul.f32 1.050701, %v2007_v8  ;;  %v8103_v35 = vrot.slane %v8099_v27, %v8773_v5 }
 0x2ef   :  { %5105 = vmatpush3.bf16.msra.mxu0 %v5383_v33 }
 0x2f0   :  { %v2135_v9 = vadd.f32 %v2071_v30, %v745_v6  ;;  %2545 = vmatmul.mubr.bf16.gmra.mrb[132].mxu1 %v2164_v31  ;;  %v2166_v13 = vpack.c.bf16 %v2134_v0, %v2132_v44 }
 0x2f2   :  { %v2167_v37 = vpack.c.bf16 %v2135_v9, %v2133_v47 }
 0x2f4   :  { %2554 = vmatprep.mubr.bf16.mxu1 %v2167_v37 }
 0x2f8   :  { %2555 = vmatmul.mubr.bf16.gmra.mrb[136].mxu1 %v2166_v13 }
 0x339   :  { %v2406_v14 = vpop.f32.mrb[76].mxu1 }
 0x33a   :  { %v2407_v49 = vadd.f32 %v2406_v14, %v8103_v35  ;;  %v8106_v62 = vpop.f32.mrb[77].mxu1 }
 0x33b   :  { %v2410_v57 = vpop.f32.mrb[78].mxu1 }
 0x33c   :  { %v2597_v50 = vmul.f32 1.442695, %v2407_v49  ;;  %v2411_v55 = vadd.f32 %v2410_v57, %v8103_v35  ;;  %v8109_v58 = vpop.f32.mrb[79].mxu1  ;;  %vm2565_vm0 = vcmp.gt.f32.partialorder %v2407_v49, 0.0 }
 0x33e   :  { %5652 = vpow2.f32 %v2597_v50  ;;  %v2599_v29 = vmul.f32 1.442695, %v2411_v55  ;;  %vm2566_vm2 = vcmp.gt.f32.partialorder %v2411_v55, 0.0 }
 0x340   :  { %5654 = vpow2.f32 %v2599_v29 }
 0x343   :  { %v2416_v53 = vpop.f32.mrb[80].mxu1 }
 0x344   :  { %v2417_v25 = vadd.f32 %v2416_v53, %v8103_v35  ;;  %v8112_v23 = vpop.f32.mrb[81].mxu1 }
 0x345   :  { %v2420_v28 = vpop.f32.mrb[82].mxu1 }
 0x346   :  { %v2601_v40 = vmul.f32 1.442695, %v2417_v25  ;;  %v2421_v51 = vadd.f32 %v2420_v28, %v8103_v35  ;;  %v8115_v16 = vpop.f32.mrb[83].mxu1  ;;  %vm2567_vm3 = vcmp.gt.f32.partialorder %v2417_v25, 0.0 }
 0x348   :  { %v5653_v20 = vpop.eup %5652  ;;  %5656 = vpow2.f32 %v2601_v40  ;;  %v2603_v43 = vmul.f32 1.442695, %v2421_v51  ;;  %vm2568_vm4 = vcmp.gt.f32.partialorder %v2421_v51, 0.0 }
 0x349   :  { %v4834_v32 = vadd.f32 -1.0, %v5653_v20  ;;  %v5385_v20 = vld [vmem:[%s8704_s9 + $0x8] sm:$0xff]  }
 0x34a   :  { %v5655_v46 = vpop.eup %5654  ;;  %5658 = vpow2.f32 %v2603_v43 }
 0x34b   :  { %v2693_v3 = vmul.f32 1.6732632, %v4834_v32  ;;  %v4835_v11 = vadd.f32 -1.0, %v5655_v46 }
 0x34d   :  { %v2725_v7 = vsel %vm2565_vm0, %v2407_v49, %v2693_v3  ;;  %v2694_v39 = vmul.f32 1.6732632, %v4835_v11  ;;  %v2426_v15 = vpop.f32.mrb[84].mxu1 }
 0x34e   :  { %v2427_v41 = vadd.f32 %v2426_v15, %v8103_v35  ;;  %v8118_v42 = vpop.f32.mrb[85].mxu1  ;;  %v2757_v31 = vmul.f32 1.050701, %v2725_v7 }
 0x34f   :  { %v2726_v2 = vsel %vm2566_vm2, %v2411_v55, %v2694_v39  ;;  %v2430_v1 = vpop.f32.mrb[86].mxu1  ;;  %v5386_v39 = vld [vmem:[%s8704_s9 + $0x10] sm:$0xff]  }
 0x350   :  { %v2758_v21 = vmul.f32 1.050701, %v2726_v2  ;;  %v2605_v18 = vmul.f32 1.442695, %v2427_v41  ;;  %v2431_v54 = vadd.f32 %v2430_v1, %v8103_v35  ;;  %v8121_v61 = vpop.f32.mrb[87].mxu1  ;;  %vm2569_vm5 = vcmp.gt.f32.partialorder %v2427_v41, 0.0 }
 0x352   :  { %5660 = vpow2.f32 %v2605_v18  ;;  %v2607_v59 = vmul.f32 1.442695, %v2431_v54  ;;  %v2789_v52 = vpack.c.bf16 %v2758_v21, %v2757_v31  ;;  %v5657_v4 = vpop.eup %5656  ;;  %vm2570_vm6 = vcmp.gt.f32.partialorder %v2431_v54, 0.0 }
 0x353   :  { %v4836_v63 = vadd.f32 -1.0, %v5657_v4  ;;  %v5387_v4 = vld [vmem:[%s8704_s9 + $0x18] sm:$0xff]  }
 0x354   :  { %5662 = vpow2.f32 %v2607_v59  ;;  %5106 = vmatprep.mubr.bf16.mxu0 %v2789_v52  ;;  %v5659_v19 = vpop.eup %5658 }
 0x355   :  { %v2695_v10 = vmul.f32 1.6732632, %v4836_v63  ;;  %v4837_v24 = vadd.f32 -1.0, %v5659_v19 }
 0x357   :  { %v2436_v26 = vpop.f32.mrb[88].mxu1  ;;  %v2727_v38 = vsel %vm2567_vm3, %v2417_v25, %v2695_v10  ;;  %v2696_v48 = vmul.f32 1.6732632, %v4837_v24 }
 0x358   :  { %v2437_v17 = vadd.f32 %v2436_v26, %v8103_v35  ;;  %v8124_v44 = vpop.f32.mrb[89].mxu1  ;;  %v2759_v34 = vmul.f32 1.050701, %v2727_v38 }
 0x359   :  { %v2440_v60 = vpop.f32.mrb[90].mxu1  ;;  %v2728_v47 = vsel %vm2568_vm4, %v2421_v51, %v2696_v48  ;;  %v5384_v51 = vld [vmem:[%s8704_s9] sm:$0xff]  }
 0x35a   :  { %v2609_v56 = vmul.f32 1.442695, %v2437_v17  ;;  %v2441_v12 = vadd.f32 %v2440_v60, %v8103_v35  ;;  %v8127_v36 = vpop.f32.mrb[91].mxu1  ;;  %v2760_v8 = vmul.f32 1.050701, %v2728_v47  ;;  %5138 = vmatprep.subr.bf16.mxu1 %v5384_v51  ;;  %vm2571_vm7 = vcmp.gt.f32.partialorder %v2437_v17, 0.0 }
 0x35b   :  { %5139 = vmatpush3.bf16.msra.mxu1 %v5384_v51  ;;  %v5388_v60 = vld [vmem:[%s8704_s9 + $0x20] sm:$0xff]  }
 0x35c   :  { %v5661_v22 = vpop.eup %5660  ;;  %5664 = vpow2.f32 %v2609_v56  ;;  %v2611_v0 = vmul.f32 1.442695, %v2441_v12  ;;  %v2790_v45 = vpack.c.bf16 %v2760_v8, %v2759_v34  ;;  %5140 = vmatprep.subr.bf16.mxu1 %v5385_v20  ;;  %vm2572_vm8 = vcmp.gt.f32.partialorder %v2441_v12, 0.0 }
 0x35d   :  { %v4838_v6 = vadd.f32 -1.0, %v5661_v22 }
 0x35e   :  { %v5663_v30 = vpop.eup %5662  ;;  %5666 = vpow2.f32 %v2611_v0  ;;  %5107 = vmatmul.mubr.bf16.vlgmr.msra.gmra.mrb[116].mxu0 %v2790_v45 }
 0x35f   :  { %v2697_v9 = vmul.f32 1.6732632, %v4838_v6  ;;  %v4839_v13 = vadd.f32 -1.0, %v5663_v30  ;;  %5141 = vmatpush3.bf16.msra.mxu1 %v5385_v20 }
 0x360   :  { %v2446_v33 = vpop.f32.mrb[92].mxu1  ;;  %5142 = vmatprep.subr.bf16.mxu1 %v5386_v39 }
 0x361   :  { %v2729_v37 = vsel %vm2569_vm5, %v2427_v41, %v2697_v9  ;;  %v2698_v14 = vmul.f32 1.6732632, %v4839_v13  ;;  %v8130_v49 = vadd.f32 %v2446_v33, %v8103_v35  ;;  %v8132_v57 = vpop.f32.mrb[93].mxu1 }
 0x362   :  { %v2450_v50 = vpop.f32.mrb[94].mxu1  ;;  %v2761_v28 = vmul.f32 1.050701, %v2729_v37 }
 0x363   :  { %v2730_v55 = vsel %vm2570_vm6, %v2431_v54, %v2698_v14  ;;  %v2613_v29 = vmul.f32 1.442695, %v8130_v49  ;;  %v8136_v53 = vadd.f32 %v2450_v50, %v8103_v35  ;;  %v8138_v25 = vpop.f32.mrb[95].mxu1  ;;  %5143 = vmatpush3.bf16.msra.mxu1 %v5386_v39  ;;  %vm2573_vm9 = vcmp.gt.f32.partialorder %v8130_v49, 0.0 }
 0x364   :  { %v2762_v40 = vmul.f32 1.050701, %v2730_v55  ;;  %5144 = vmatprep.subr.bf16.mxu1 %v5387_v4 }
 0x365   :  { %5668 = vpow2.f32 %v2613_v29  ;;  %v2615_v32 = vmul.f32 1.442695, %v8136_v53  ;;  %vm2574_vm10 = vcmp.gt.f32.partialorder %v8136_v53, 0.0 }
 0x366   :  { %v5665_v43 = vpop.eup %5664  ;;  %v2791_v46 = vpack.c.bf16 %v2762_v40, %v2761_v28 }
 0x367   :  { %v4840_v3 = vadd.f32 -1.0, %v5665_v43  ;;  %5670 = vpow2.f32 %v2615_v32  ;;  %5145 = vmatpush3.bf16.msra.mxu1 %v5387_v4 }
 0x368   :  { %v5667_v11 = vpop.eup %5666  ;;  %v2456_v7 = vpop.f32.mrb[96].mxu1  ;;  %5110 = vmatprep.mubr.bf16.mxu0 %v2791_v46  ;;  %5146 = vmatprep.subr.bf16.mxu1 %v5388_v60 }
 0x369   :  { %v2699_v15 = vmul.f32 1.6732632, %v4840_v3  ;;  %v4841_v41 = vadd.f32 -1.0, %v5667_v11  ;;  %v2457_v31 = vadd.f32 %v2456_v7, %v8103_v35  ;;  %v8151_v2 = vpop.f32.mrb[97].mxu1 }
 0x36a   :  { %v2460_v1 = vpop.f32.mrb[98].mxu1 }
 0x36b   :  { %v2731_v21 = vsel %vm2571_vm7, %v2437_v17, %v2699_v15  ;;  %v2700_v18 = vmul.f32 1.6732632, %v4841_v41  ;;  %v2617_v54 = vmul.f32 1.442695, %v2457_v31  ;;  %v8153_v59 = vpop.f32.mrb[99].mxu1  ;;  %v2461_v52 = vadd.f32 %v2460_v1, %v8103_v35  ;;  %5147 = vmatpush3.bf16.msra.mxu1 %v5388_v60 }
 0x36c   :  { %v2763_v19 = vmul.f32 1.050701, %v2731_v21  ;;  %vm2575_vm11 = vcmp.gt.f32.partialorder %v2457_v31, 0.0 }
 0x36d   :  { %v2732_v63 = vsel %vm2572_vm8, %v2441_v12, %v2700_v18  ;;  %5672 = vpow2.f32 %v2617_v54  ;;  %v2619_v24 = vmul.f32 1.442695, %v2461_v52  ;;  %vm2576_vm12 = vcmp.gt.f32.partialorder %v2461_v52, 0.0 }
 0x36e   :  { %v2764_v10 = vmul.f32 1.050701, %v2732_v63 }
 0x36f   :  { %v5669_v26 = vpop.eup %5668  ;;  %5674 = vpow2.f32 %v2619_v24 }
 0x370   :  { %v4842_v38 = vadd.f32 -1.0, %v5669_v26  ;;  %v2466_v48 = vpop.f32.mrb[100].mxu1  ;;  %v2792_v17 = vpack.c.bf16 %v2764_v10, %v2763_v19 }
 0x371   :  { %v5671_v47 = vpop.eup %5670  ;;  %v2467_v56 = vadd.f32 %v2466_v48, %v8103_v35  ;;  %v8163_v34 = vpop.f32.mrb[101].mxu1 }
 0x372   :  { %v2701_v12 = vmul.f32 1.6732632, %v4842_v38  ;;  %v4843_v8 = vadd.f32 -1.0, %v5671_v47  ;;  %v2470_v22 = vpop.f32.mrb[102].mxu1  ;;  %5111 = vmatmul.mubr.bf16.gmra.mrb[120].mxu0 %v2792_v17 }
 0x373   :  { %v2621_v0 = vmul.f32 1.442695, %v2467_v56  ;;  %v2471_v45 = vadd.f32 %v2470_v22, %v8103_v35  ;;  %v8167_v6 = vpop.f32.mrb[103].mxu1  ;;  %vm2577_vm13 = vcmp.gt.f32.partialorder %v2467_v56, 0.0 }
 0x374   :  { %v2733_v30 = vsel %vm2573_vm9, %v8130_v49, %v2701_v12  ;;  %v2702_v9 = vmul.f32 1.6732632, %v4843_v8 }
 0x375   :  { %5676 = vpow2.f32 %v2621_v0  ;;  %v2623_v13 = vmul.f32 1.442695, %v2471_v45  ;;  %v2765_v14 = vmul.f32 1.050701, %v2733_v30  ;;  %vm2578_vm14 = vcmp.gt.f32.partialorder %v2471_v45, 0.0 }
 0x376   :  { %v2734_v33 = vsel %vm2574_vm10, %v8136_v53, %v2702_v9 }
 0x377   :  { %v5673_v37 = vpop.eup %5672  ;;  %v2766_v50 = vmul.f32 1.050701, %v2734_v33  ;;  %5678 = vpow2.f32 %v2623_v13 }
 0x378   :  { %v4844_v55 = vadd.f32 -1.0, %v5673_v37  ;;  %v2476_v51 = vpop.f32.mrb[104].mxu1 }
 0x379   :  { %v2793_v29 = vpack.c.bf16 %v2766_v50, %v2765_v14  ;;  %v5675_v28 = vpop.eup %5674  ;;  %v2477_v49 = vadd.f32 %v2476_v51, %v8103_v35  ;;  %v8173_v32 = vpop.f32.mrb[105].mxu1 }
 0x37a   :  { %v2703_v40 = vmul.f32 1.6732632, %v4844_v55  ;;  %v4845_v20 = vadd.f32 -1.0, %v5675_v28  ;;  %v2480_v43 = vpop.f32.mrb[106].mxu1 }
 0x37b   :  { %5114 = vmatprep.mubr.bf16.mxu0 %v2793_v29  ;;  %v2481_v3 = vadd.f32 %v2480_v43, %v8103_v35  ;;  %v8176_v11 = vpop.f32.mrb[107].mxu1  ;;  %v2625_v7 = vmul.f32 1.442695, %v2477_v49  ;;  %vm2579_vm15 = vcmp.gt.f32.partialorder %v2477_v49, 0.0 }
 0x37c   :  { %v2735_v46 = vsel %vm2575_vm11, %v2457_v31, %v2703_v40  ;;  %v2704_v53 = vmul.f32 1.6732632, %v4845_v20 }
 0x37d   :  { %v2627_v41 = vmul.f32 1.442695, %v2481_v3  ;;  %v2767_v1 = vmul.f32 1.050701, %v2735_v46  ;;  %5680 = vpow2.f32 %v2625_v7  ;;  %vm2580_vm1 = vcmp.gt.f32.partialorder %v2481_v3, 0.0 }
 0x37e   :  { %v2736_v15 = vsel %vm2576_vm12, %v2461_v52, %v2704_v53 }
 0x37f   :  { %v5677_v39 = vpop.eup %5676  ;;  %v2768_v21 = vmul.f32 1.050701, %v2736_v15  ;;  %5682 = vpow2.f32 %v2627_v41 }
 0x380   :  { %v4846_v18 = vadd.f32 -1.0, %v5677_v39 }
 0x381   :  { %v5679_v54 = vpop.eup %5678  ;;  %v2794_v19 = vpack.c.bf16 %v2768_v21, %v2767_v1 }
 0x382   :  { %v2705_v4 = vmul.f32 1.6732632, %v4846_v18  ;;  %v4847_v63 = vadd.f32 -1.0, %v5679_v54 }
 0x383   :  { %5115 = vmatmul.mubr.bf16.gmra.mrb[124].mxu0 %v2794_v19 }
 0x384   :  { %v2486_v31 = vpop.f32.mrb[108].mxu1  ;;  %v2737_v10 = vsel %vm2577_vm13, %v2467_v56, %v2705_v4  ;;  %v2706_v24 = vmul.f32 1.6732632, %v4847_v63 }
 0x385   :  { %v2487_v26 = vadd.f32 %v2486_v31, %v8103_v35  ;;  %v8179_v38 = vpop.f32.mrb[109].mxu1  ;;  %v2769_v12 = vmul.f32 1.050701, %v2737_v10 }
 0x386   :  { %v2490_v52 = vpop.f32.mrb[110].mxu1  ;;  %v2738_v48 = vsel %vm2578_vm14, %v2471_v45, %v2706_v24 }
 0x387   :  { %v2629_v17 = vmul.f32 1.442695, %v2487_v26  ;;  %v2491_v60 = vadd.f32 %v2490_v52, %v8103_v35  ;;  %v8182_v47 = vpop.f32.mrb[111].mxu1  ;;  %v2770_v8 = vmul.f32 1.050701, %v2738_v48  ;;  %v5681_v56 = vpop.eup %5680  ;;  %vm2581_vm0 = vcmp.gt.f32.partialorder %v2487_v26, 0.0 }
 0x388   :  { %v4848_v9 = vadd.f32 -1.0, %v5681_v56 }
 0x389   :  { %5684 = vpow2.f32 %v2629_v17  ;;  %v2631_v22 = vmul.f32 1.442695, %v2491_v60  ;;  %v2795_v0 = vpack.c.bf16 %v2770_v8, %v2769_v12  ;;  %v5683_v30 = vpop.eup %5682  ;;  %vm2582_vm2 = vcmp.gt.f32.partialorder %v2491_v60, 0.0 }
 0x38a   :  { %v4849_v13 = vadd.f32 -1.0, %v5683_v30  ;;  %v2707_v33 = vmul.f32 1.6732632, %v4848_v9 }
 0x38b   :  { %5686 = vpow2.f32 %v2631_v22  ;;  %5118 = vmatprep.mubr.bf16.mxu0 %v2795_v0 }
 0x38c   :  { %v2708_v37 = vmul.f32 1.6732632, %v4849_v13  ;;  %v2739_v45 = vsel %vm2579_vm15, %v2477_v49, %v2707_v33 }
 0x38d   :  { %v2771_v50 = vmul.f32 1.050701, %v2739_v45 }
 0x38e   :  { %v2740_v14 = vsel %vm2580_vm1, %v2481_v3, %v2708_v37 }
 0x38f   :  { %v2772_v55 = vmul.f32 1.050701, %v2740_v14 }
 0x391   :  { %v2796_v51 = vpack.c.bf16 %v2772_v55, %v2771_v50 }
 0x393   :  { %v5685_v29 = vpop.eup %5684  ;;  %5119 = vmatmul.mubr.bf16.gmra.mrb[128].mxu0 %v2796_v51 }
 0x394   :  { %v4850_v28 = vadd.f32 -1.0, %v5685_v29 }
 0x395   :  { %v2496_v40 = vpop.f32.mrb[112].mxu1  ;;  %v5687_v20 = vpop.eup %5686 }
 0x396   :  { %v2497_v43 = vadd.f32 %v2496_v40, %v8103_v35  ;;  %v8185_v46 = vpop.f32.mrb[113].mxu1  ;;  %v2709_v53 = vmul.f32 1.6732632, %v4850_v28  ;;  %v4851_v7 = vadd.f32 -1.0, %v5687_v20 }
 0x397   :  { %v2500_v39 = vpop.f32.mrb[114].mxu1 }
 0x398   :  { %v2633_v15 = vmul.f32 1.442695, %v2497_v43  ;;  %v2501_v49 = vadd.f32 %v2500_v39, %v8103_v35  ;;  %v8188_v3 = vpop.f32.mrb[115].mxu1  ;;  %v2741_v41 = vsel %vm2581_vm0, %v2487_v26, %v2709_v53  ;;  %v2710_v1 = vmul.f32 1.6732632, %v4851_v7 }
 0x399   :  { %v2773_v54 = vmul.f32 1.050701, %v2741_v41  ;;  %vm2583_vm3 = vcmp.gt.f32.partialorder %v2497_v43, 0.0 }
 0x39a   :  { %5688 = vpow2.f32 %v2633_v15  ;;  %v2635_v21 = vmul.f32 1.442695, %v2501_v49  ;;  %v2742_v18 = vsel %vm2582_vm2, %v2491_v60, %v2710_v1  ;;  %vm2584_vm4 = vcmp.gt.f32.partialorder %v2501_v49, 0.0 }
 0x39b   :  { %v2774_v4 = vmul.f32 1.050701, %v2742_v18 }
 0x39c   :  { %5690 = vpow2.f32 %v2635_v21 }
 0x39d   :  { %v2797_v63 = vpack.c.bf16 %v2774_v4, %v2773_v54 }
 0x39f   :  { %5122 = vmatprep.mubr.bf16.mxu0 %v2797_v63 }
 0x3a0   :  { %v2506_v19 = vpop.f32.mrb[116].mxu1 }
 0x3a1   :  { %v2507_v31 = vadd.f32 %v2506_v19, %v8103_v35  ;;  %v8191_v10 = vpop.f32.mrb[117].mxu1 }
 0x3a2   :  { %v2510_v24 = vpop.f32.mrb[118].mxu1 }
 0x3a3   :  { %v2637_v52 = vmul.f32 1.442695, %v2507_v31  ;;  %v2511_v48 = vadd.f32 %v2510_v24, %v8103_v35  ;;  %v8194_v26 = vpop.f32.mrb[119].mxu1  ;;  %vm2585_vm5 = vcmp.gt.f32.partialorder %v2507_v31, 0.0 }
 0x3a4   :  { %v5689_v17 = vpop.eup %5688 }
 0x3a5   :  { %v4852_v12 = vadd.f32 -1.0, %v5689_v17  ;;  %5692 = vpow2.f32 %v2637_v52  ;;  %v2639_v60 = vmul.f32 1.442695, %v2511_v48  ;;  %vm2586_vm6 = vcmp.gt.f32.partialorder %v2511_v48, 0.0 }
 0x3a6   :  { %v5691_v8 = vpop.eup %5690 }
 0x3a7   :  { %v2711_v22 = vmul.f32 1.6732632, %v4852_v12  ;;  %v4853_v0 = vadd.f32 -1.0, %v5691_v8  ;;  %5694 = vpow2.f32 %v2639_v60 }
 0x3a8   :  { %v2516_v56 = vpop.f32.mrb[120].mxu1 }
 0x3a9   :  { %v2743_v30 = vsel %vm2583_vm3, %v2497_v43, %v2711_v22  ;;  %v2712_v9 = vmul.f32 1.6732632, %v4853_v0  ;;  %v2517_v13 = vadd.f32 %v2516_v56, %v8103_v35  ;;  %v8197_v33 = vpop.f32.mrb[121].mxu1 }
 0x3aa   :  { %v2520_v37 = vpop.f32.mrb[122].mxu1  ;;  %v2775_v29 = vmul.f32 1.050701, %v2743_v30 }
 0x3ab   :  { %v2744_v45 = vsel %vm2584_vm4, %v2501_v49, %v2712_v9  ;;  %v2641_v14 = vmul.f32 1.442695, %v2517_v13  ;;  %v2521_v50 = vadd.f32 %v2520_v37, %v8103_v35  ;;  %v8200_v55 = vpop.f32.mrb[123].mxu1  ;;  %vm2587_vm7 = vcmp.gt.f32.partialorder %v2517_v13, 0.0 }
 0x3ac   :  { %v2776_v28 = vmul.f32 1.050701, %v2744_v45 }
 0x3ad   :  { %5696 = vpow2.f32 %v2641_v14  ;;  %v2643_v40 = vmul.f32 1.442695, %v2521_v50  ;;  %vm2588_vm8 = vcmp.gt.f32.partialorder %v2521_v50, 0.0 }
 0x3ae   :  { %v2798_v51 = vpack.c.bf16 %v2776_v28, %v2775_v29 }
 0x3af   :  { %v5693_v20 = vpop.eup %5692  ;;  %5698 = vpow2.f32 %v2643_v40 }
 0x3b0   :  { %v4854_v43 = vadd.f32 -1.0, %v5693_v20  ;;  %5123 = vmatmul.mubr.bf16.gmra.mrb[132].mxu0 %v2798_v51 }
 0x3b1   :  { %v5695_v53 = vpop.eup %5694 }
 0x3b2   :  { %v2713_v7 = vmul.f32 1.6732632, %v4854_v43  ;;  %v4855_v39 = vadd.f32 -1.0, %v5695_v53 }
 0x3b3   :  { %v2526_v15 = vpop.f32.mrb[124].mxu1 }
 0x3b4   :  { %v2745_v49 = vsel %vm2585_vm5, %v2507_v31, %v2713_v7  ;;  %v2714_v41 = vmul.f32 1.6732632, %v4855_v39  ;;  %v2527_v1 = vadd.f32 %v2526_v15, %v8103_v35  ;;  %v8203_v21 = vpop.f32.mrb[125].mxu1 }
 0x3b5   :  { %v2530_v18 = vpop.f32.mrb[126].mxu1  ;;  %v2777_v52 = vmul.f32 1.050701, %v2745_v49 }
 0x3b6   :  { %v2746_v54 = vsel %vm2586_vm6, %v2511_v48, %v2714_v41  ;;  %v2645_v4 = vmul.f32 1.442695, %v2527_v1  ;;  %v2531_v63 = vadd.f32 %v2530_v18, %v8103_v35  ;;  %v8206_v19 = vpop.f32.mrb[127].mxu1  ;;  %vm2589_vm9 = vcmp.gt.f32.partialorder %v2527_v1, 0.0 }
 0x3b7   :  { %v5697_v24 = vpop.eup %5696  ;;  %v2778_v17 = vmul.f32 1.050701, %v2746_v54 }
 0x3b8   :  { %v4856_v12 = vadd.f32 -1.0, %v5697_v24  ;;  %5700 = vpow2.f32 %v2645_v4  ;;  %v2647_v60 = vmul.f32 1.442695, %v2531_v63  ;;  %vm2590_vm10 = vcmp.gt.f32.partialorder %v2531_v63, 0.0 }
 0x3b9   :  { %v5699_v31 = vpop.eup %5698  ;;  %v2799_v8 = vpack.c.bf16 %v2778_v17, %v2777_v52 }
 0x3ba   :  { %v2715_v22 = vmul.f32 1.6732632, %v4856_v12  ;;  %v4857_v0 = vadd.f32 -1.0, %v5699_v31  ;;  %5702 = vpow2.f32 %v2647_v60 }
 0x3bb   :  { %v2536_v56 = vpop.f32.mrb[128].mxu1  ;;  %5126 = vmatprep.mubr.bf16.mxu0 %v2799_v8 }
 0x3bc   :  { %v2747_v48 = vsel %vm2587_vm7, %v2517_v13, %v2715_v22  ;;  %v2716_v30 = vmul.f32 1.6732632, %v4857_v0  ;;  %v2537_v9 = vadd.f32 %v2536_v56, %v8103_v35  ;;  %v8209_v37 = vpop.f32.mrb[129].mxu1 }
 0x3bd   :  { %v2540_v45 = vpop.f32.mrb[130].mxu1  ;;  %v2779_v51 = vmul.f32 1.050701, %v2747_v48 }
 0x3be   :  { %v2748_v14 = vsel %vm2588_vm8, %v2521_v50, %v2716_v30  ;;  %v2649_v29 = vmul.f32 1.442695, %v2537_v9  ;;  %v2541_v28 = vadd.f32 %v2540_v45, %v8103_v35  ;;  %v8212_v40 = vpop.f32.mrb[131].mxu1  ;;  %vm2591_vm11 = vcmp.gt.f32.partialorder %v2537_v9, 0.0 }
 0x3bf   :  { %v2780_v20 = vmul.f32 1.050701, %v2748_v14 }
 0x3c0   :  { %5704 = vpow2.f32 %v2649_v29  ;;  %v2651_v43 = vmul.f32 1.442695, %v2541_v28  ;;  %vm2592_vm12 = vcmp.gt.f32.partialorder %v2541_v28, 0.0 }
 0x3c1   :  { %v2800_v53 = vpack.c.bf16 %v2780_v20, %v2779_v51 }
 0x3c2   :  { %v5701_v7 = vpop.eup %5700  ;;  %5706 = vpow2.f32 %v2651_v43 }
 0x3c3   :  { %v4858_v13 = vadd.f32 -1.0, %v5701_v7  ;;  %v2546_v39 = vpop.f32.mrb[132].mxu1  ;;  %5127 = vmatmul.mubr.bf16.gmra.mrb[136].mxu0 %v2800_v53 }
 0x3c4   :  { %v5703_v15 = vpop.eup %5702  ;;  %v2547_v49 = vadd.f32 %v2546_v39, %v8103_v35  ;;  %v8215_v41 = vpop.f32.mrb[133].mxu1  ;;  %v5389_v39 = vld [vmem:[%s8704_s9 + $0x28] sm:$0xff]  }
 0x3c5   :  { %v2717_v50 = vmul.f32 1.6732632, %v4858_v13  ;;  %v4859_v18 = vadd.f32 -1.0, %v5703_v15  ;;  %v2550_v54 = vpop.f32.mrb[134].mxu1  ;;  %5148 = vmatprep.subr.bf16.mxu1 %v5389_v39 }
 0x3c6   :  { %v2653_v4 = vmul.f32 1.442695, %v2547_v49  ;;  %v2551_v24 = vadd.f32 %v2550_v54, %v8103_v35  ;;  %v8218_v52 = vpop.f32.mrb[135].mxu1  ;;  %5149 = vmatpush3.bf16.msra.mxu1 %v5389_v39  ;;  %vm2593_vm13 = vcmp.gt.f32.partialorder %v2547_v49, 0.0 }
 0x3c7   :  { %v2749_v17 = vsel %vm2589_vm9, %v2527_v1, %v2717_v50  ;;  %v2718_v12 = vmul.f32 1.6732632, %v4859_v18 }
 0x3c8   :  { %5708 = vpow2.f32 %v2653_v4  ;;  %v2655_v60 = vmul.f32 1.442695, %v2551_v24  ;;  %v2781_v22 = vmul.f32 1.050701, %v2749_v17  ;;  %vm2594_vm14 = vcmp.gt.f32.partialorder %v2551_v24, 0.0 }
 0x3c9   :  { %v2750_v31 = vsel %vm2590_vm10, %v2531_v63, %v2718_v12 }
 0x3ca   :  { %v5705_v8 = vpop.eup %5704  ;;  %v2782_v0 = vmul.f32 1.050701, %v2750_v31  ;;  %5710 = vpow2.f32 %v2655_v60 }
 0x3cb   :  { %v4860_v56 = vadd.f32 -1.0, %v5705_v8  ;;  %v2556_v48 = vpop.f32.mrb[136].mxu1 }
 0x3cc   :  { %v5707_v30 = vpop.eup %5706  ;;  %v2557_v45 = vadd.f32 %v2556_v48, %v8103_v35  ;;  %v8221_v14 = vpop.f32.mrb[137].mxu1  ;;  %v2801_v29 = vpack.c.bf16 %v2782_v0, %v2781_v22 }
 0x3cd   :  { %v2719_v51 = vmul.f32 1.6732632, %v4860_v56  ;;  %v4861_v20 = vadd.f32 -1.0, %v5707_v30  ;;  %v2560_v1 = vpop.f32.mrb[138].mxu1 }
 0x3ce   :  { %v2657_v43 = vmul.f32 1.442695, %v2557_v45  ;;  %v2561_v53 = vadd.f32 %v2560_v1, %v8103_v35  ;;  %v8224_v63 = vpop.f32.mrb[139].mxu1  ;;  %5130 = vmatprep.mubr.bf16.mxu0 %v2801_v29  ;;  %vm2595_vm15 = vcmp.gt.f32.partialorder %v2557_v45, 0.0 }
 0x3cf   :  { %v2751_v7 = vsel %vm2591_vm11, %v2537_v9, %v2719_v51  ;;  %v2720_v13 = vmul.f32 1.6732632, %v4861_v20 }
 0x3d0   :  { %5712 = vpow2.f32 %v2657_v43  ;;  %v2659_v15 = vmul.f32 1.442695, %v2561_v53  ;;  %v2783_v54 = vmul.f32 1.050701, %v2751_v7  ;;  %v5390_v7 = vld [vmem:[%s8704_s9 + $0x30] sm:$0xff]   ;;  %vm2596_vm1 = vcmp.gt.f32.partialorder %v2561_v53, 0.0 }
 0x3d1   :  { %v2752_v50 = vsel %vm2592_vm12, %v2541_v28, %v2720_v13  ;;  %5150 = vmatprep.subr.bf16.mxu1 %v5390_v7 }
 0x3d2   :  { %v5709_v18 = vpop.eup %5708  ;;  %v2784_v4 = vmul.f32 1.050701, %v2752_v50  ;;  %5714 = vpow2.f32 %v2659_v15  ;;  %5151 = vmatpush3.bf16.msra.mxu1 %v5390_v7 }
 0x3d3   :  { %v4862_v35 = vadd.f32 -1.0, %v5709_v18 }
 0x3d4   :  { %v5711_v17 = vpop.eup %5710  ;;  %v2802_v12 = vpack.c.bf16 %v2784_v4, %v2783_v54 }
 0x3d5   :  { %v2721_v60 = vmul.f32 1.6732632, %v4862_v35  ;;  %v4863_v9 = vadd.f32 -1.0, %v5711_v17 }
 0x3d6   :  { %5131 = vmatmul.mubr.bf16.gmra.mrb[140].mxu0 %v2802_v12 }
 0x3d7   :  { %v2753_v31 = vsel %vm2593_vm13, %v2547_v49, %v2721_v60  ;;  %v2722_v8 = vmul.f32 1.6732632, %v4863_v9 }
 0x3d8   :  { %v2785_v56 = vmul.f32 1.050701, %v2753_v31 }
 0x3d9   :  { %v2754_v22 = vsel %vm2594_vm14, %v2551_v24, %v2722_v8  ;;  %v5391_v24 = vld [vmem:[%s8704_s9 + $0x38] sm:$0xff]  }
 0x3da   :  { %v5713_v0 = vpop.eup %5712  ;;  %v2786_v28 = vmul.f32 1.050701, %v2754_v22  ;;  %5152 = vmatprep.subr.bf16.mxu1 %v5391_v24  ;;  %v8774_v22 = vld [vmem:[#allocation22_spill] sm:$0xff] }
 0x3db   :  { %v4864_v48 = vadd.f32 -1.0, %v5713_v0  ;;  %5153 = vmatpush3.bf16.msra.mxu1 %v5391_v24  ;;  %v8243_v0 = vrot.slane %v8099_v27, %v8774_v22 }
 0x3dc   :  { %v5715_v30 = vpop.eup %5714  ;;  %v2803_v29 = vpack.c.bf16 %v2786_v28, %v2785_v56 }
 0x3dd   :  { %v2723_v51 = vmul.f32 1.6732632, %v4864_v48  ;;  %v4865_v20 = vadd.f32 -1.0, %v5715_v30  ;;  %v2423_v22 = vadd.f32 %v8115_v16, %v8243_v0 }
 0x3de   :  { %5134 = vmatprep.mubr.bf16.mxu0 %v2803_v29  ;;  %v2409_v29 = vadd.f32 %v8106_v62, %v8243_v0 }
 0x3df   :  { %v2755_v1 = vsel %vm2595_vm15, %v2557_v45, %v2723_v51  ;;  %v2724_v43 = vmul.f32 1.6732632, %v4865_v20  ;;  %v8235_v45 = vld [vmem:[#allocation11] ss:$0 sm:$0xff] }
 0x3e0   :  { %v2787_v13 = vmul.f32 1.050701, %v2755_v1  ;;  %v2413_v1 = vadd.f32 %v8109_v58, %v8243_v0 }
 0x3e1   :  { %v2756_v49 = vsel %vm2596_vm1, %v2561_v53, %v2724_v43  ;;  %v2419_v43 = vadd.f32 %v8112_v23, %v8243_v0 }
 0x3e2   :  { %v2788_v39 = vmul.f32 1.050701, %v2756_v49 }
 0x3e4   :  { %v2804_v15 = vpack.c.bf16 %v2788_v39, %v2787_v13 }
 0x3e6   :  { %5135 = vmatmul.mubr.bf16.gmra.mrb[144].mxu0 %v2804_v15 }
 0x431   :  { %v5108_v50 = vpop.f32.mrb[116].mxu0 }
 0x432   :  { %v2919_v18 = vadd.f32 %v5108_v50, %v8235_v45  ;;  %v2910_v54 = vpop.f32.mrb[117].mxu0 }
 0x433   :  { %v2911_v53 = vadd.f32 %v8235_v45, %v2910_v54  ;;  %v5109_v4 = vpop.f32.mrb[118].mxu0 }
 0x434   :  { %v3073_v35 = vmul.f32 1.442695, %v2919_v18  ;;  %v2922_v17 = vadd.f32 %v5109_v4, %v8235_v45  ;;  %v2913_v12 = vpop.f32.mrb[119].mxu0  ;;  %vm3039_vm0 = vcmp.gt.f32.partialorder %v2919_v18, 0.0 }
 0x435   :  { %v3069_v60 = vmul.f32 1.442695, %v2911_v53  ;;  %v2914_v9 = vadd.f32 %v8235_v45, %v2913_v12  ;;  %vm3037_vm2 = vcmp.gt.f32.partialorder %v2911_v53, 0.0 }
 0x436   :  { %5716 = vpow2.f32 %v3073_v35  ;;  %v3075_v31 = vmul.f32 1.442695, %v2922_v17  ;;  %vm3040_vm3 = vcmp.gt.f32.partialorder %v2922_v17, 0.0 }
 0x437   :  { %5718 = vpow2.f32 %v3069_v60  ;;  %v3071_v8 = vmul.f32 1.442695, %v2914_v9  ;;  %vm3038_vm4 = vcmp.gt.f32.partialorder %v2914_v9, 0.0 }
 0x438   :  { %5720 = vpow2.f32 %v3075_v31 }
 0x439   :  { %5722 = vpow2.f32 %v3071_v8 }
 0x440   :  { %v5717_v56 = vpop.eup %5716 }
 0x441   :  { %v5719_v28 = vpop.eup %5718  ;;  %v4877_v48 = vadd.f32 -1.0, %v5717_v56 }
 0x442   :  { %v5721_v30 = vpop.eup %5720  ;;  %v4875_v51 = vadd.f32 -1.0, %v5719_v28 }
 0x443   :  { %v5723_v20 = vpop.eup %5722  ;;  %v3167_v7 = vmul.f32 1.6732632, %v4877_v48  ;;  %v4878_v49 = vadd.f32 -1.0, %v5721_v30 }
 0x444   :  { %v3165_v27 = vmul.f32 1.6732632, %v4875_v51  ;;  %v4876_v24 = vadd.f32 -1.0, %v5723_v20 }
 0x445   :  { %v5112_v13 = vpop.f32.mrb[120].mxu0  ;;  %v3199_v39 = vsel %vm3039_vm0, %v2919_v18, %v3167_v7  ;;  %v3168_v15 = vmul.f32 1.6732632, %v4878_v49 }
 0x446   :  { %v2935_v62 = vadd.f32 %v5112_v13, %v8235_v45  ;;  %v2926_v50 = vpop.f32.mrb[121].mxu0  ;;  %v3231_v54 = vmul.f32 1.050701, %v3199_v39  ;;  %v3197_v4 = vsel %vm3037_vm2, %v2911_v53, %v3165_v27  ;;  %v3166_v35 = vmul.f32 1.6732632, %v4876_v24 }
 0x447   :  { %v2927_v58 = vadd.f32 %v8235_v45, %v2926_v50  ;;  %v5113_v12 = vpop.f32.mrb[122].mxu0  ;;  %v3229_v23 = vmul.f32 1.050701, %v3197_v4  ;;  %v3200_v60 = vsel %vm3040_vm3, %v2922_v17, %v3168_v15  ;;  %v2429_v39 = vadd.f32 %v8118_v42, %v8243_v0 }
 0x448   :  { %v3081_v31 = vmul.f32 1.442695, %v2935_v62  ;;  %v2929_v8 = vpop.f32.mrb[123].mxu0  ;;  %v3263_v18 = vadd.f32 %v3231_v54, %v2419_v43  ;;  %v3232_v56 = vmul.f32 1.050701, %v3200_v60  ;;  %v3198_v28 = vsel %vm3038_vm4, %v2914_v9, %v3166_v35 }
 0x449   :  { %v3230_v48 = vmul.f32 1.050701, %v3198_v28  ;;  %v3077_v30 = vmul.f32 1.442695, %v2927_v58  ;;  %v2938_v53 = vadd.f32 %v5113_v12, %v8235_v45  ;;  %v2930_v20 = vadd.f32 %v8235_v45, %v2929_v8 }
 0x44a   :  { %5724 = vpow2.f32 %v3081_v31  ;;  %v3264_v51 = vadd.f32 %v3232_v56, %v2423_v22  ;;  %v3261_v7 = vadd.f32 %v3229_v23, %v2409_v29  ;;  %vm3043_vm5 = vcmp.gt.f32.partialorder %v2935_v62, 0.0 }
 0x44b   :  { %5726 = vpow2.f32 %v3077_v30  ;;  %v3083_v17 = vmul.f32 1.442695, %v2938_v53  ;;  %v3262_v49 = vadd.f32 %v3230_v48, %v2413_v1  ;;  %v3079_v24 = vmul.f32 1.442695, %v2930_v20 }
 0x44c   :  { %v3294_v27 = vpack.c.bf16 %v3264_v51, %v3263_v18  ;;  %v2439_v1 = vadd.f32 %v8124_v44, %v8243_v0  ;;  %vm3041_vm6 = vcmp.gt.f32.partialorder %v2927_v58, 0.0  ;;  %vm3044_vm7 = vcmp.gt.f32.partialorder %v2938_v53, 0.0 }
 0x44d   :  { %5728 = vpow2.f32 %v3083_v17  ;;  %v3293_v13 = vpack.c.bf16 %v3262_v49, %v3261_v7  ;;  %vm3042_vm8 = vcmp.gt.f32.partialorder %v2930_v20, 0.0 }
 0x44e   :  { %5730 = vpow2.f32 %v3079_v24 }
 0x44f   :  { %5154 = vmatprep.mubr.bf16.mxu1 %v3293_v13  ;;  %v2443_v13 = vadd.f32 %v8127_v36, %v8243_v0 }
 0x450   :  { %5155 = vmatmul.mubr.bf16.vlgmr.msra.gmra.mrb[140].mxu1 %v3294_v27 }
 0x454   :  { %v5725_v16 = vpop.eup %5724 }
 0x455   :  { %v4881_v9 = vadd.f32 -1.0, %v5725_v16  ;;  %v5727_v43 = vpop.eup %5726 }
 0x456   :  { %v4879_v50 = vadd.f32 -1.0, %v5727_v43  ;;  %v5116_v54 = vpop.f32.mrb[124].mxu0  ;;  %v2433_v43 = vadd.f32 %v8121_v61, %v8243_v0  ;;  %v2449_v61 = vadd.f32 %v8132_v57, %v8243_v0 }
 0x457   :  { %v3171_v15 = vmul.f32 1.6732632, %v4881_v9  ;;  %v5729_v29 = vpop.eup %5728  ;;  %v2951_v4 = vadd.f32 %v5116_v54, %v8235_v45  ;;  %v2942_v35 = vpop.f32.mrb[125].mxu0 }
 0x458   :  { %v5731_v12 = vpop.eup %5730  ;;  %v3169_v60 = vmul.f32 1.6732632, %v4879_v50  ;;  %v4882_v31 = vadd.f32 -1.0, %v5729_v29  ;;  %v2943_v8 = vadd.f32 %v8235_v45, %v2942_v35  ;;  %v5117_v22 = vpop.f32.mrb[126].mxu0 }
 0x459   :  { %v3203_v23 = vsel %vm3043_vm5, %v2935_v62, %v3171_v15  ;;  %v4880_v18 = vadd.f32 -1.0, %v5731_v12  ;;  %v3089_v56 = vmul.f32 1.442695, %v2951_v4  ;;  %v2945_v30 = vpop.f32.mrb[127].mxu0  ;;  %v2954_v17 = vadd.f32 %v5117_v22, %v8235_v45  ;;  %v5392_v62 = vld [vmem:[#allocation12] sm:$0xff]  }
 0x45a   :  { %v3235_v42 = vmul.f32 1.050701, %v3203_v23  ;;  %v3201_v28 = vsel %vm3041_vm6, %v2927_v58, %v3169_v60  ;;  %v3172_v48 = vmul.f32 1.6732632, %v4882_v31  ;;  %v3085_v44 = vmul.f32 1.442695, %v2943_v8  ;;  %5186 = vmatprep.subr.bf16.mxu0 %v5392_v62 }
 0x45b   :  { %v3233_v51 = vmul.f32 1.050701, %v3201_v28  ;;  %v3170_v7 = vmul.f32 1.6732632, %v4880_v18  ;;  %5732 = vpow2.f32 %v3089_v56  ;;  %v2946_v27 = vadd.f32 %v8235_v45, %v2945_v30  ;;  %5187 = vmatpush3.bf16.msra.mxu0 %v5392_v62 }
 0x45c   :  { %v3204_v49 = vsel %vm3044_vm7, %v2938_v53, %v3172_v48  ;;  %5734 = vpow2.f32 %v3085_v44  ;;  %v3267_v24 = vadd.f32 %v3235_v42, %v2439_v1  ;;  %v3091_v9 = vmul.f32 1.442695, %v2954_v17 }
 0x45d   :  { %v3236_v16 = vmul.f32 1.050701, %v3204_v49  ;;  %v3202_v58 = vsel %vm3042_vm8, %v2930_v20, %v3170_v7  ;;  %v3087_v50 = vmul.f32 1.442695, %v2946_v27  ;;  %v3265_v54 = vadd.f32 %v3233_v51, %v2429_v39 }
 0x45e   :  { %v3234_v15 = vmul.f32 1.050701, %v3202_v58  ;;  %5736 = vpow2.f32 %v3091_v9  ;;  %v2459_v18 = vadd.f32 %v8151_v2, %v8243_v0  ;;  %vm3047_vm9 = vcmp.gt.f32.partialorder %v2951_v4, 0.0 }
 0x45f   :  { %v3268_v53 = vadd.f32 %v3236_v16, %v2443_v13  ;;  %5738 = vpow2.f32 %v3087_v50  ;;  %vm3045_vm10 = vcmp.gt.f32.partialorder %v2943_v8, 0.0  ;;  %vm3048_vm11 = vcmp.gt.f32.partialorder %v2954_v17, 0.0 }
 0x460   :  { %v3266_v29 = vadd.f32 %v3234_v15, %v2433_v43  ;;  %vm3046_vm12 = vcmp.gt.f32.partialorder %v2946_v27, 0.0 }
 0x461   :  { %v3296_v35 = vpack.c.bf16 %v3268_v53, %v3267_v24 }
 0x462   :  { %v3295_v1 = vpack.c.bf16 %v3266_v29, %v3265_v54  ;;  %v2463_v54 = vadd.f32 %v8153_v59, %v8243_v0 }
 0x464   :  { %5158 = vmatprep.mubr.bf16.mxu1 %v3295_v1 }
 0x465   :  { %v5733_v12 = vpop.eup %5732  ;;  %5159 = vmatmul.mubr.bf16.gmra.mrb[144].mxu1 %v3296_v35  ;;  %v2453_v35 = vadd.f32 %v8138_v25, %v8243_v0 }
 0x466   :  { %v5735_v36 = vpop.eup %5734  ;;  %v4885_v20 = vadd.f32 -1.0, %v5733_v12  ;;  %v5120_v60 = vpop.f32.mrb[128].mxu0 }
 0x467   :  { %v4883_v23 = vadd.f32 -1.0, %v5735_v36  ;;  %v2967_v39 = vadd.f32 %v5120_v60, %v8235_v45  ;;  %v2958_v22 = vpop.f32.mrb[129].mxu0 }
 0x468   :  { %v3175_v31 = vmul.f32 1.6732632, %v4885_v20  ;;  %v5737_v42 = vpop.eup %5736  ;;  %v2959_v28 = vadd.f32 %v8235_v45, %v2958_v22  ;;  %v5121_v48 = vpop.f32.mrb[130].mxu0 }
 0x469   :  { %v3173_v56 = vmul.f32 1.6732632, %v4883_v23  ;;  %v5739_v44 = vpop.eup %5738  ;;  %v4886_v51 = vadd.f32 -1.0, %v5737_v42  ;;  %v3097_v7 = vmul.f32 1.442695, %v2967_v39  ;;  %v2961_v62 = vpop.f32.mrb[131].mxu0  ;;  %v2970_v9 = vadd.f32 %v5121_v48, %v8235_v45 }
 0x46a   :  { %v3207_v30 = vsel %vm3047_vm9, %v2951_v4, %v3175_v31  ;;  %v4884_v24 = vadd.f32 -1.0, %v5739_v44  ;;  %v3093_v58 = vmul.f32 1.442695, %v2959_v28  ;;  %v2962_v43 = vadd.f32 %v8235_v45, %v2961_v62 }
 0x46b   :  { %v3239_v57 = vmul.f32 1.050701, %v3207_v30  ;;  %v3205_v49 = vsel %vm3045_vm10, %v2943_v8, %v3173_v56  ;;  %v3176_v16 = vmul.f32 1.6732632, %v4886_v51  ;;  %5740 = vpow2.f32 %v3097_v7 }
 0x46c   :  { %v3237_v13 = vmul.f32 1.050701, %v3205_v49  ;;  %v3174_v2 = vmul.f32 1.6732632, %v4884_v24  ;;  %5742 = vpow2.f32 %v3093_v58  ;;  %v3099_v29 = vmul.f32 1.442695, %v2970_v9 }
 0x46d   :  { %v3271_v15 = vadd.f32 %v3239_v57, %v2459_v18  ;;  %v3208_v50 = vsel %vm3048_vm11, %v2954_v17, %v3176_v16  ;;  %v3095_v12 = vmul.f32 1.442695, %v2962_v43  ;;  %vm3051_vm13 = vcmp.gt.f32.partialorder %v2967_v39, 0.0 }
 0x46e   :  { %v3269_v4 = vadd.f32 %v3237_v13, %v2449_v61  ;;  %v3240_v8 = vmul.f32 1.050701, %v3208_v50  ;;  %v3206_v53 = vsel %vm3046_vm12, %v2946_v27, %v3174_v2  ;;  %5744 = vpow2.f32 %v3099_v29 }
 0x46f   :  { %v3238_v1 = vmul.f32 1.050701, %v3206_v53  ;;  %5746 = vpow2.f32 %v3095_v12  ;;  %v2479_v56 = vadd.f32 %v8173_v32, %v8243_v0  ;;  %vm3049_vm14 = vcmp.gt.f32.partialorder %v2959_v28, 0.0 }
 0x470   :  { %v3272_v36 = vadd.f32 %v3240_v8, %v2463_v54  ;;  %v2469_v7 = vadd.f32 %v8163_v34, %v8243_v0  ;;  %vm3052_vm15 = vcmp.gt.f32.partialorder %v2970_v9, 0.0  ;;  %vm3050_vm1 = vcmp.gt.f32.partialorder %v2962_v43, 0.0 }
 0x471   :  { %v3270_v20 = vadd.f32 %v3238_v1, %v2453_v35  ;;  %v2483_v32 = vadd.f32 %v8176_v11, %v8243_v0  ;;  %v2473_v34 = vadd.f32 %v8167_v6, %v8243_v0 }
 0x472   :  { %v3298_v23 = vpack.c.bf16 %v3272_v36, %v3271_v15 }
 0x473   :  { %v3297_v17 = vpack.c.bf16 %v3270_v20, %v3269_v4 }
 0x475   :  { %v5741_v60 = vpop.eup %5740  ;;  %5162 = vmatprep.mubr.bf16.mxu1 %v3297_v17 }
 0x476   :  { %v4889_v61 = vadd.f32 -1.0, %v5741_v60  ;;  %5163 = vmatmul.mubr.bf16.gmra.mrb[148].mxu1 %v3298_v23  ;;  %v5743_v31 = vpop.eup %5742 }
 0x477   :  { %v4887_v22 = vadd.f32 -1.0, %v5743_v31 }
 0x478   :  { %v3179_v59 = vmul.f32 1.6732632, %v4889_v61  ;;  %v5745_v27 = vpop.eup %5744  ;;  %v2489_v61 = vadd.f32 %v8179_v38, %v8243_v0 }
 0x479   :  { %v3177_v18 = vmul.f32 1.6732632, %v4887_v22  ;;  %v5747_v25 = vpop.eup %5746  ;;  %v4890_v44 = vadd.f32 -1.0, %v5745_v27  ;;  %v2493_v22 = vadd.f32 %v8182_v47, %v8243_v0  ;;  %v2499_v27 = vadd.f32 %v8185_v46, %v8243_v0 }
 0x47a   :  { %v3211_v42 = vsel %vm3051_vm13, %v2967_v39, %v3179_v59  ;;  %v4888_v51 = vadd.f32 -1.0, %v5747_v25 }
 0x47b   :  { %v3243_v48 = vmul.f32 1.050701, %v3211_v42  ;;  %v3209_v30 = vsel %vm3049_vm14, %v2959_v28, %v3177_v18  ;;  %v3180_v57 = vmul.f32 1.6732632, %v4890_v44 }
 0x47c   :  { %v3241_v62 = vmul.f32 1.050701, %v3209_v30  ;;  %v3178_v24 = vmul.f32 1.6732632, %v4888_v51 }
 0x47d   :  { %v3275_v49 = vadd.f32 %v3243_v48, %v2479_v56  ;;  %v3212_v13 = vsel %vm3052_vm15, %v2970_v9, %v3180_v57 }
 0x47e   :  { %v3273_v16 = vadd.f32 %v3241_v62, %v2469_v7  ;;  %v3244_v58 = vmul.f32 1.050701, %v3212_v13  ;;  %v3210_v2 = vsel %vm3050_vm1, %v2962_v43, %v3178_v24 }
 0x47f   :  { %v3242_v50 = vmul.f32 1.050701, %v3210_v2 }
 0x480   :  { %v3276_v29 = vadd.f32 %v3244_v58, %v2483_v32 }
 0x481   :  { %v3274_v1 = vadd.f32 %v3242_v50, %v2473_v34 }
 0x482   :  { %v3300_v12 = vpack.c.bf16 %v3276_v29, %v3275_v49 }
 0x483   :  { %v5124_v39 = vpop.f32.mrb[132].mxu0  ;;  %v3299_v20 = vpack.c.bf16 %v3274_v1, %v3273_v16  ;;  %v2503_v16 = vadd.f32 %v8188_v3, %v8243_v0 }
 0x484   :  { %v2983_v28 = vadd.f32 %v5124_v39, %v8235_v45  ;;  %v2974_v15 = vpop.f32.mrb[133].mxu0 }
 0x485   :  { %v2975_v4 = vadd.f32 %v8235_v45, %v2974_v15  ;;  %v5125_v54 = vpop.f32.mrb[134].mxu0  ;;  %5166 = vmatprep.mubr.bf16.mxu1 %v3299_v20  ;;  %v2509_v20 = vadd.f32 %v8191_v10, %v8243_v0 }
 0x486   :  { %v3105_v8 = vmul.f32 1.442695, %v2983_v28  ;;  %v2986_v9 = vadd.f32 %v5125_v54, %v8235_v45  ;;  %v2977_v53 = vpop.f32.mrb[135].mxu0  ;;  %5167 = vmatmul.mubr.bf16.gmra.mrb[152].mxu1 %v3300_v12  ;;  %vm3055_vm0 = vcmp.gt.f32.partialorder %v2983_v28, 0.0 }
 0x487   :  { %v3101_v35 = vmul.f32 1.442695, %v2975_v4  ;;  %v2978_v11 = vadd.f32 %v8235_v45, %v2977_v53  ;;  %vm3053_vm2 = vcmp.gt.f32.partialorder %v2975_v4, 0.0 }
 0x488   :  { %5748 = vpow2.f32 %v3105_v8  ;;  %v3107_v43 = vmul.f32 1.442695, %v2986_v9  ;;  %vm3056_vm3 = vcmp.gt.f32.partialorder %v2986_v9, 0.0 }
 0x489   :  { %5750 = vpow2.f32 %v3101_v35  ;;  %v3103_v36 = vmul.f32 1.442695, %v2978_v11  ;;  %vm3054_vm4 = vcmp.gt.f32.partialorder %v2978_v11, 0.0 }
 0x48a   :  { %5752 = vpow2.f32 %v3107_v43 }
 0x48b   :  { %5754 = vpow2.f32 %v3103_v36 }
 0x492   :  { %v5749_v6 = vpop.eup %5748 }
 0x493   :  { %v5751_v23 = vpop.eup %5750  ;;  %v4893_v17 = vadd.f32 -1.0, %v5749_v6  ;;  %v2513_v6 = vadd.f32 %v8194_v26, %v8243_v0 }
 0x494   :  { %v5753_v60 = vpop.eup %5752  ;;  %v4891_v31 = vadd.f32 -1.0, %v5751_v23 }
 0x495   :  { %v5755_v59 = vpop.eup %5754  ;;  %v3183_v42 = vmul.f32 1.6732632, %v4893_v17  ;;  %v4894_v18 = vadd.f32 -1.0, %v5753_v60 }
 0x496   :  { %v3181_v25 = vmul.f32 1.6732632, %v4891_v31  ;;  %v4892_v56 = vadd.f32 -1.0, %v5755_v59  ;;  %v5128_v48 = vpop.f32.mrb[136].mxu0 }
 0x497   :  { %v3215_v44 = vsel %vm3055_vm0, %v2983_v28, %v3183_v42  ;;  %v3184_v30 = vmul.f32 1.6732632, %v4894_v18  ;;  %v2999_v38 = vadd.f32 %v5128_v48, %v8235_v45  ;;  %v2990_v51 = vpop.f32.mrb[137].mxu0 }
 0x498   :  { %v3247_v7 = vmul.f32 1.050701, %v3215_v44  ;;  %v3213_v62 = vsel %vm3053_vm2, %v2975_v4, %v3181_v25  ;;  %v3182_v57 = vmul.f32 1.6732632, %v4892_v56  ;;  %v2991_v47 = vadd.f32 %v8235_v45, %v2990_v51  ;;  %v5129_v49 = vpop.f32.mrb[138].mxu0 }
 0x499   :  { %v3245_v46 = vmul.f32 1.050701, %v3213_v62  ;;  %v3216_v24 = vsel %vm3056_vm3, %v2986_v9, %v3184_v30  ;;  %v3113_v13 = vmul.f32 1.442695, %v2999_v38  ;;  %v2993_v39 = vpop.f32.mrb[139].mxu0  ;;  %v3002_v15 = vadd.f32 %v5129_v49, %v8235_v45 }
 0x49a   :  { %v3248_v32 = vmul.f32 1.050701, %v3216_v24  ;;  %v3214_v58 = vsel %vm3054_vm4, %v2978_v11, %v3182_v57  ;;  %v3109_v2 = vmul.f32 1.442695, %v2991_v47  ;;  %v2994_v34 = vadd.f32 %v8235_v45, %v2993_v39 }
 0x49b   :  { %v3246_v28 = vmul.f32 1.050701, %v3214_v58  ;;  %5756 = vpow2.f32 %v3113_v13  ;;  %v3277_v50 = vadd.f32 %v3245_v46, %v2489_v61  ;;  %v3279_v4 = vadd.f32 %v3247_v7, %v2499_v27 }
 0x49c   :  { %5758 = vpow2.f32 %v3109_v2  ;;  %v3280_v54 = vadd.f32 %v3248_v32, %v2503_v16  ;;  %v3115_v8 = vmul.f32 1.442695, %v3002_v15  ;;  %v3111_v9 = vmul.f32 1.442695, %v2994_v34 }
 0x49d   :  { %v3278_v53 = vadd.f32 %v3246_v28, %v2493_v22  ;;  %vm3059_vm5 = vcmp.gt.f32.partialorder %v2999_v38, 0.0  ;;  %vm3057_vm6 = vcmp.gt.f32.partialorder %v2991_v47, 0.0  ;;  %v2519_v27 = vadd.f32 %v8197_v33, %v8243_v0 }
 0x49e   :  { %v3302_v29 = vpack.c.bf16 %v3280_v54, %v3279_v4  ;;  %5760 = vpow2.f32 %v3115_v8  ;;  %vm3060_vm7 = vcmp.gt.f32.partialorder %v3002_v15, 0.0  ;;  %vm3058_vm8 = vcmp.gt.f32.partialorder %v2994_v34, 0.0 }
 0x49f   :  { %5762 = vpow2.f32 %v3111_v9  ;;  %v3301_v3 = vpack.c.bf16 %v3278_v53, %v3277_v50 }
 0x4a1   :  { %5170 = vmatprep.mubr.bf16.mxu1 %v3301_v3 }
 0x4a2   :  { %5171 = vmatmul.mubr.bf16.gmra.mrb[156].mxu1 %v3302_v29  ;;  %v2543_v29 = vadd.f32 %v8212_v40, %v8243_v0 }
 0x4a5   :  { %v5757_v35 = vpop.eup %5756 }
 0x4a6   :  { %v5759_v11 = vpop.eup %5758  ;;  %v4897_v1 = vadd.f32 -1.0, %v5757_v35 }
 0x4a7   :  { %v4895_v43 = vadd.f32 -1.0, %v5759_v11 }
 0x4a8   :  { %v3187_v12 = vmul.f32 1.6732632, %v4897_v1  ;;  %v5761_v36 = vpop.eup %5760 }
 0x4a9   :  { %v3185_v23 = vmul.f32 1.6732632, %v4895_v43  ;;  %v5132_v17 = vpop.f32.mrb[140].mxu0  ;;  %v5763_v60 = vpop.eup %5762  ;;  %v4898_v31 = vadd.f32 -1.0, %v5761_v36 }
 0x4aa   :  { %v3219_v61 = vsel %vm3059_vm5, %v2999_v38, %v3187_v12  ;;  %v3015_v59 = vadd.f32 %v5132_v17, %v8235_v45  ;;  %v3006_v22 = vpop.f32.mrb[141].mxu0  ;;  %v4896_v18 = vadd.f32 -1.0, %v5763_v60  ;;  %vm3820_vm5 = vcmask 523264  }
 0x4ab   :  { %v3217_v42 = vsel %vm3057_vm6, %v2991_v47, %v3185_v23  ;;  %v3007_v10 = vadd.f32 %v8235_v45, %v3006_v22  ;;  %v5133_v25 = vpop.f32.mrb[142].mxu0  ;;  %v3188_v26 = vmul.f32 1.6732632, %v4898_v31  ;;  %v3251_v30 = vmul.f32 1.050701, %v3219_v61  ;;  %v5393_v22 = vld [vmem:[#allocation12 + $0x8] sm:$0xff]  }
 0x4ac   :  { %v3249_v56 = vmul.f32 1.050701, %v3217_v42  ;;  %v3018_v48 = vadd.f32 %v5133_v25, %v8235_v45  ;;  %v3009_v44 = vpop.f32.mrb[143].mxu0  ;;  %v3186_v38 = vmul.f32 1.6732632, %v4896_v18  ;;  %v2523_v47 = vadd.f32 %v8200_v55, %v8243_v0  ;;  %5188 = vmatprep.subr.bf16.mxu0 %v5393_v22 }
 0x4ad   :  { %v3121_v51 = vmul.f32 1.442695, %v3015_v59  ;;  %v3010_v7 = vadd.f32 %v8235_v45, %v3009_v44  ;;  %v3220_v62 = vsel %vm3060_vm7, %v3002_v15, %v3188_v26  ;;  %v3117_v57 = vmul.f32 1.442695, %v3007_v10  ;;  %5189 = vmatpush3.bf16.msra.mxu0 %v5393_v22 }
 0x4ae   :  { %v3123_v33 = vmul.f32 1.442695, %v3018_v48  ;;  %v3252_v49 = vmul.f32 1.050701, %v3220_v62  ;;  %v3218_v46 = vsel %vm3058_vm8, %v2994_v34, %v3186_v38  ;;  %v3281_v39 = vadd.f32 %v3249_v56, %v2509_v20 }
 0x4af   :  { %5764 = vpow2.f32 %v3121_v51  ;;  %v3250_v24 = vmul.f32 1.050701, %v3218_v46  ;;  %v3119_v13 = vmul.f32 1.442695, %v3010_v7  ;;  %v3283_v16 = vadd.f32 %v3251_v30, %v2519_v27 }
 0x4b0   :  { %5766 = vpow2.f32 %v3117_v57  ;;  %v3284_v32 = vadd.f32 %v3252_v49, %v2523_v47  ;;  %v2529_v55 = vadd.f32 %v8203_v21, %v8243_v0  ;;  %v2539_v34 = vadd.f32 %v8209_v37, %v8243_v0 }
 0x4b1   :  { %5768 = vpow2.f32 %v3123_v33  ;;  %v3282_v58 = vadd.f32 %v3250_v24, %v2513_v6  ;;  %vm3063_vm9 = vcmp.gt.f32.partialorder %v3015_v59, 0.0  ;;  %vm3061_vm10 = vcmp.gt.f32.partialorder %v3007_v10, 0.0 }
 0x4b2   :  { %5770 = vpow2.f32 %v3119_v13  ;;  %v3304_v2 = vpack.c.bf16 %v3284_v32, %v3283_v16  ;;  %vm3064_vm11 = vcmp.gt.f32.partialorder %v3018_v48, 0.0  ;;  %vm3062_vm12 = vcmp.gt.f32.partialorder %v3010_v7, 0.0 }
 0x4b3   :  { %v3303_v28 = vpack.c.bf16 %v3282_v58, %v3281_v39  ;;  %v2559_v39 = vadd.f32 %v8221_v14, %v8243_v0  ;;  %v5395_v14 = vld [vmem:[#allocation12 + $0x18] sm:$0xff]  }
 0x4b5   :  { %5174 = vmatprep.mubr.bf16.mxu1 %v3303_v28 }
 0x4b6   :  { %5175 = vmatmul.mubr.bf16.gmra.mrb[160].mxu1 %v3304_v2  ;;  %v2549_v2 = vadd.f32 %v8215_v41, %v8243_v0  ;;  %v2553_v41 = vadd.f32 %v8218_v52, %v8243_v0 }
 0x4b9   :  { %v5765_v15 = vpop.eup %5764  ;;  %v5136_v50 = vpop.f32.mrb[144].mxu0 }
 0x4ba   :  { %v5767_v4 = vpop.eup %5766  ;;  %v4901_v54 = vadd.f32 -1.0, %v5765_v15  ;;  %v3031_v8 = vadd.f32 %v5136_v50, %v8235_v45  ;;  %v3022_v9 = vpop.f32.mrb[145].mxu0 }
 0x4bb   :  { %v5769_v53 = vpop.eup %5768  ;;  %v4899_v3 = vadd.f32 -1.0, %v5767_v4  ;;  %v3023_v35 = vadd.f32 %v8235_v45, %v3022_v9  ;;  %v5137_v11 = vpop.f32.mrb[146].mxu0 }
 0x4bc   :  { %v5771_v1 = vpop.eup %5770  ;;  %v3191_v43 = vmul.f32 1.6732632, %v4901_v54  ;;  %v4902_v21 = vadd.f32 -1.0, %v5769_v53  ;;  %v3129_v12 = vmul.f32 1.442695, %v3031_v8  ;;  %v3034_v17 = vadd.f32 %v5137_v11, %v8235_v45  ;;  %v3025_v40 = vpop.f32.mrb[147].mxu0 }
 0x4bd   :  { %v3189_v36 = vmul.f32 1.6732632, %v4899_v3  ;;  %v4900_v37 = vadd.f32 -1.0, %v5771_v1  ;;  %v3125_v20 = vmul.f32 1.442695, %v3023_v35  ;;  %v3026_v26 = vadd.f32 %v8235_v45, %v3025_v40  ;;  %v5394_v53 = vld [vmem:[#allocation12 + $0x10] sm:$0xff]  }
 0x4be   :  { %v3223_v6 = vsel %vm3063_vm9, %v3015_v59, %v3191_v43  ;;  %v3192_v23 = vmul.f32 1.6732632, %v4902_v21  ;;  %5772 = vpow2.f32 %v3129_v12  ;;  %v3131_v18 = vmul.f32 1.442695, %v3034_v17  ;;  %5190 = vmatprep.subr.bf16.mxu0 %v5394_v53 }
 0x4bf   :  { %v3255_v60 = vmul.f32 1.050701, %v3223_v6  ;;  %v3221_v61 = vsel %vm3061_vm10, %v3007_v10, %v3189_v36  ;;  %v3190_v31 = vmul.f32 1.6732632, %v4900_v37  ;;  %5774 = vpow2.f32 %v3125_v20  ;;  %5191 = vmatpush3.bf16.msra.mxu0 %v5394_v53 }
 0x4c0   :  { %v3253_v27 = vmul.f32 1.050701, %v3221_v61  ;;  %v3224_v42 = vsel %vm3064_vm11, %v3018_v48, %v3192_v23  ;;  %v2533_v59 = vadd.f32 %v8206_v19, %v8243_v0  ;;  %5776 = vpow2.f32 %v3131_v18  ;;  %5192 = vmatprep.subr.bf16.mxu0 %v5395_v14 }
 0x4c1   :  { %v3256_v25 = vmul.f32 1.050701, %v3224_v42  ;;  %v3222_v56 = vsel %vm3062_vm12, %v3010_v7, %v3190_v31  ;;  %v3287_v44 = vadd.f32 %v3255_v60, %v2539_v34  ;;  %v3127_v10 = vmul.f32 1.442695, %v3026_v26 }
 0x4c2   :  { %v3254_v30 = vmul.f32 1.050701, %v3222_v56  ;;  %v3285_v38 = vadd.f32 %v3253_v27, %v2529_v55  ;;  %vm3067_vm13 = vcmp.gt.f32.partialorder %v3031_v8, 0.0  ;;  %vm3065_vm14 = vcmp.gt.f32.partialorder %v3023_v35, 0.0 }
 0x4c3   :  { %v3288_v51 = vadd.f32 %v3256_v25, %v2543_v29  ;;  %5778 = vpow2.f32 %v3127_v10  ;;  %vm3068_vm15 = vcmp.gt.f32.partialorder %v3034_v17, 0.0  ;;  %v2563_v54 = vadd.f32 %v8224_v63, %v8243_v0  ;;  %5193 = vmatpush3.bf16.msra.mxu0 %v5395_v14  ;;  %v8340_v63 = vld [vmem:[%s8705_s10] ss:$0 sm:$0xff] }
 0x4c4   :  { %v3286_v62 = vadd.f32 %v3254_v30, %v2533_v59  ;;  %vm3066_vm1 = vcmp.gt.f32.partialorder %v3026_v26, 0.0 }
 0x4c5   :  { %v3306_v48 = vpack.c.bf16 %v3288_v51, %v3287_v44 }
 0x4c6   :  { %v3305_v57 = vpack.c.bf16 %v3286_v62, %v3285_v38 }
 0x4c8   :  { %v5773_v33 = vpop.eup %5772  ;;  %5178 = vmatprep.mubr.bf16.mxu1 %v3305_v57 }
 0x4c9   :  { %v5775_v7 = vpop.eup %5774  ;;  %v4905_v47 = vadd.f32 -1.0, %v5773_v33  ;;  %5179 = vmatmul.mubr.bf16.gmra.mrb[164].mxu1 %v3306_v48 }
 0x4ca   :  { %v4903_v45 = vadd.f32 -1.0, %v5775_v7  ;;  %v5777_v46 = vpop.eup %5776 }
 0x4cb   :  { %v3195_v49 = vmul.f32 1.6732632, %v4905_v47  ;;  %v4906_v13 = vadd.f32 -1.0, %v5777_v46 }
 0x4cc   :  { %v3193_v19 = vmul.f32 1.6732632, %v4903_v45 }
 0x4cd   :  { %v3227_v24 = vsel %vm3067_vm13, %v3031_v8, %v3195_v49  ;;  %v5779_v58 = vpop.eup %5778  ;;  %v3196_v15 = vmul.f32 1.6732632, %v4906_v13 }
 0x4ce   :  { %v3259_v16 = vmul.f32 1.050701, %v3227_v24  ;;  %v3225_v32 = vsel %vm3065_vm14, %v3023_v35, %v3193_v19  ;;  %v4904_v50 = vadd.f32 -1.0, %v5779_v58 }
 0x4cf   :  { %v3257_v28 = vmul.f32 1.050701, %v3225_v32  ;;  %v3228_v55 = vsel %vm3068_vm15, %v3034_v17, %v3196_v15 }
 0x4d0   :  { %v3291_v4 = vadd.f32 %v3259_v16, %v2559_v39  ;;  %v3260_v8 = vmul.f32 1.050701, %v3228_v55  ;;  %v3194_v9 = vmul.f32 1.6732632, %v4904_v50 }
 0x4d1   :  { %v3289_v34 = vadd.f32 %v3257_v28, %v2549_v2 }
 0x4d2   :  { %v3226_v29 = vsel %vm3066_vm1, %v3026_v26, %v3194_v9  ;;  %v3292_v3 = vadd.f32 %v3260_v8, %v2563_v54 }
 0x4d3   :  { %v3258_v35 = vmul.f32 1.050701, %v3226_v29 }
 0x4d4   :  { %v3308_v11 = vpack.c.bf16 %v3292_v3, %v3291_v4 }
 0x4d5   :  { %v3290_v1 = vadd.f32 %v3258_v35, %v2553_v41 }
 0x4d7   :  { %v3307_v43 = vpack.c.bf16 %v3290_v1, %v3289_v34 }
 0x4d9   :  { %5182 = vmatprep.mubr.bf16.mxu1 %v3307_v43 }
 0x4da   :  { %5183 = vmatmul.mubr.bf16.gmra.mrb[168].mxu1 %v3308_v11 }
 0x523   :  { %v5156_v21 = vpop.f32.mrb[140].mxu1 }
 0x524   :  { %v3423_v12 = vadd.f32 %v5156_v21, %v8340_v63  ;;  %v3414_v36 = vpop.f32.mrb[141].mxu1 }
 0x525   :  { %v3415_v52 = vadd.f32 %v8340_v63, %v3414_v36  ;;  %v5157_v0 = vpop.f32.mrb[142].mxu1 }
 0x526   :  { %v3577_v37 = vmul.f32 1.442695, %v3423_v12  ;;  %v8345_v20 = vadd.f32 %v5157_v0, %v8340_v63  ;;  %v3417_v6 = vpop.f32.mrb[143].mxu1  ;;  %vm3543_vm2 = vcmp.gt.f32.partialorder %v3423_v12, 0.0 }
 0x527   :  { %v3573_v23 = vmul.f32 1.442695, %v3415_v52  ;;  %v3418_v17 = vadd.f32 %v8340_v63, %v3417_v6  ;;  %4286 = vrot.lane.b32.xlu0 %v3415_v52, %s6089_s8  ;;  %vm3541_vm0 = vcmp.gt.f32.partialorder %v3415_v52, 0.0 }
 0x528   :  { %5780 = vpow2.f32 %v3577_v37  ;;  %v3579_v40 = vmul.f32 1.442695, %v8345_v20  ;;  %vm3544_vm3 = vcmp.gt.f32.partialorder %v8345_v20, 0.0 }
 0x529   :  { %5782 = vpow2.f32 %v3573_v23  ;;  %v3575_v60 = vmul.f32 1.442695, %v3418_v17  ;;  %vm3542_vm4 = vcmp.gt.f32.partialorder %v3418_v17, 0.0 }
 0x52a   :  { %5784 = vpow2.f32 %v3579_v40 }
 0x52b   :  { %5786 = vpow2.f32 %v3575_v60  ;;  %4288 = vrot.lane.b32.xlu0 %v3418_v17, %s6089_s8 }
 0x52f   :  { %4290 = vrot.lane.b32.xlu0 %v3423_v12, %s6089_s8 }
 0x532   :  { %v5781_v61 = vpop.eup %5780 }
 0x533   :  { %v5783_v31 = vpop.eup %5782  ;;  %v4918_v22 = vadd.f32 -1.0, %v5781_v61 }
 0x534   :  { %v5785_v27 = vpop.eup %5784  ;;  %v4916_v42 = vadd.f32 -1.0, %v5783_v31 }
 0x535   :  { %v5787_v18 = vpop.eup %5786  ;;  %v3671_v25 = vmul.f32 1.6732632, %v4918_v22  ;;  %v4919_v56 = vadd.f32 -1.0, %v5785_v27 }
 0x536   :  { %v3669_v26 = vmul.f32 1.6732632, %v4916_v42  ;;  %v4917_v44 = vadd.f32 -1.0, %v5787_v18 }
 0x537   :  { %v3672_v59 = vmul.f32 1.6732632, %v4919_v56  ;;  %v3703_v51 = vsel %vm3543_vm2, %v3423_v12, %v3671_v25 }
 0x538   :  { %v3701_v30 = vsel %vm3541_vm0, %v3415_v52, %v3669_v26  ;;  %v3670_v38 = vmul.f32 1.6732632, %v4917_v44  ;;  %v5160_v10 = vpop.f32.mrb[144].mxu1  ;;  %v3735_v39 = vmul.f32 1.050701, %v3703_v51 }
 0x539   :  { %v3704_v62 = vsel %vm3544_vm3, %v8345_v20, %v3672_v59  ;;  %v8355_v48 = vadd.f32 %v5160_v10, %v8340_v63  ;;  %v3430_v57 = vpop.f32.mrb[145].mxu1  ;;  %v3733_v33 = vmul.f32 1.050701, %v3701_v30 }
 0x53a   :  { %v3736_v7 = vmul.f32 1.050701, %v3704_v62  ;;  %v3702_v47 = vsel %vm3542_vm4, %v3418_v17, %v3670_v38  ;;  %v8358_v45 = vadd.f32 %v8340_v63, %v3430_v57  ;;  %v5161_v49 = vpop.f32.mrb[146].mxu1 }
 0x53b   :  { %v3734_v46 = vmul.f32 1.050701, %v3702_v47  ;;  %v3585_v19 = vmul.f32 1.442695, %v8355_v48  ;;  %v8362_v24 = vadd.f32 %v5161_v49, %v8340_v63  ;;  %v3433_v13 = vpop.f32.mrb[147].mxu1  ;;  %vm3547_vm7 = vcmp.gt.f32.partialorder %v8355_v48, 0.0 }
 0x53c   :  { %v3581_v16 = vmul.f32 1.442695, %v8358_v45  ;;  %v8366_v32 = vadd.f32 %v8340_v63, %v3433_v13  ;;  %v3766_v28 = vpack.c.bf16 %v3736_v7, %v3735_v39  ;;  %vm3545_vm6 = vcmp.gt.f32.partialorder %v8358_v45, 0.0 }
 0x53d   :  { %5788 = vpow2.f32 %v3585_v19  ;;  %v3587_v58 = vmul.f32 1.442695, %v8362_v24  ;;  %v3765_v2 = vpack.c.bf16 %v3734_v46, %v3733_v33  ;;  %vm3548_vm8 = vcmp.gt.f32.partialorder %v8362_v24, 0.0 }
 0x53e   :  { %5790 = vpow2.f32 %v3581_v16  ;;  %v3583_v15 = vmul.f32 1.442695, %v8366_v32  ;;  %vm3546_vm9 = vcmp.gt.f32.partialorder %v8366_v32, 0.0 }
 0x53f   :  { %5792 = vpow2.f32 %v3587_v58  ;;  %5194 = vmatprep.mubr.msk.bf16.mxu0 %vm3820_vm5, %v3765_v2 }
 0x540   :  { %5794 = vpow2.f32 %v3583_v15  ;;  %5195 = vmatmul.mubr.msk.bf16.vlgmr.msra.gmra.mrb[148].mxu0 %vm3820_vm5, %v3766_v28 }
 0x547   :  { %v5789_v50 = vpop.eup %5788 }
 0x548   :  { %v5791_v4 = vpop.eup %5790  ;;  %v4922_v55 = vadd.f32 -1.0, %v5789_v50 }
 0x549   :  { %v5793_v34 = vpop.eup %5792  ;;  %v4920_v54 = vadd.f32 -1.0, %v5791_v4  ;;  %v5164_v14 = vpop.f32.mrb[148].mxu1 }
 0x54a   :  { %v5795_v8 = vpop.eup %5794  ;;  %v3675_v9 = vmul.f32 1.6732632, %v4922_v55  ;;  %v4923_v53 = vadd.f32 -1.0, %v5793_v34  ;;  %v8373_v41 = vadd.f32 %v5164_v14, %v8340_v63  ;;  %v3446_v35 = vpop.f32.mrb[149].mxu1 }
 0x54b   :  { %v3673_v29 = vmul.f32 1.6732632, %v4920_v54  ;;  %v4921_v3 = vadd.f32 -1.0, %v5795_v8  ;;  %v8377_v1 = vadd.f32 %v8340_v63, %v3446_v35  ;;  %v5165_v43 = vpop.f32.mrb[150].mxu1 }
 0x54c   :  { %v3676_v11 = vmul.f32 1.6732632, %v4923_v53  ;;  %v3449_v36 = vpop.f32.mrb[151].mxu1  ;;  %v3707_v52 = vsel %vm3547_vm7, %v8355_v48, %v3675_v9  ;;  %v3593_v37 = vmul.f32 1.442695, %v8373_v41  ;;  %v8389_v40 = vadd.f32 %v5165_v43, %v8340_v63 }
 0x54d   :  { %v3705_v21 = vsel %vm3545_vm6, %v8358_v45, %v3673_v29  ;;  %v3674_v12 = vmul.f32 1.6732632, %v4921_v3  ;;  %v3589_v17 = vmul.f32 1.442695, %v8377_v1  ;;  %v8392_v31 = vadd.f32 %v8340_v63, %v3449_v36 }
 0x54e   :  { %v3708_v0 = vsel %vm3548_vm8, %v8362_v24, %v3676_v11  ;;  %v3737_v60 = vmul.f32 1.050701, %v3705_v21  ;;  %5796 = vpow2.f32 %v3593_v37  ;;  %v3739_v22 = vmul.f32 1.050701, %v3707_v52 }
 0x54f   :  { %v3740_v6 = vmul.f32 1.050701, %v3708_v0  ;;  %v3706_v23 = vsel %vm3546_vm9, %v8366_v32, %v3674_v12  ;;  %5798 = vpow2.f32 %v3589_v17  ;;  %v3595_v27 = vmul.f32 1.442695, %v8389_v40 }
 0x550   :  { %v3738_v61 = vmul.f32 1.050701, %v3706_v23  ;;  %v3591_v42 = vmul.f32 1.442695, %v8392_v31  ;;  %vm3551_vm10 = vcmp.gt.f32.partialorder %v8373_v41, 0.0  ;;  %vm3549_vm11 = vcmp.gt.f32.partialorder %v8377_v1, 0.0 }
 0x551   :  { %5800 = vpow2.f32 %v3595_v27  ;;  %v3768_v25 = vpack.c.bf16 %v3740_v6, %v3739_v22  ;;  %vm3552_vm12 = vcmp.gt.f32.partialorder %v8389_v40, 0.0  ;;  %vm3550_vm13 = vcmp.gt.f32.partialorder %v8392_v31, 0.0 }
 0x552   :  { %v3767_v18 = vpack.c.bf16 %v3738_v61, %v3737_v60  ;;  %5802 = vpow2.f32 %v3591_v42 }
 0x554   :  { %5198 = vmatprep.mubr.msk.bf16.mxu0 %vm3820_vm5, %v3767_v18 }
 0x555   :  { %5199 = vmatmul.mubr.msk.bf16.gmra.mrb[152].mxu0 %vm3820_vm5, %v3768_v25 }
 0x558   :  { %v5797_v56 = vpop.eup %5796 }
 0x559   :  { %v5799_v26 = vpop.eup %5798  ;;  %v4926_v44 = vadd.f32 -1.0, %v5797_v56  ;;  %v5168_v30 = vpop.f32.mrb[152].mxu1 }
 0x55a   :  { %v4924_v59 = vadd.f32 -1.0, %v5799_v26  ;;  %v8399_v10 = vadd.f32 %v5168_v30, %v8340_v63  ;;  %v3462_v51 = vpop.f32.mrb[153].mxu1 }
 0x55b   :  { %v5801_v38 = vpop.eup %5800  ;;  %v3679_v57 = vmul.f32 1.6732632, %v4926_v44  ;;  %v8402_v47 = vadd.f32 %v8340_v63, %v3462_v51  ;;  %v5169_v49 = vpop.f32.mrb[154].mxu1 }
 0x55c   :  { %v5803_v62 = vpop.eup %5802  ;;  %v3677_v33 = vmul.f32 1.6732632, %v4924_v59  ;;  %v4927_v7 = vadd.f32 -1.0, %v5801_v38  ;;  %v3601_v19 = vmul.f32 1.442695, %v8399_v10  ;;  %v3465_v13 = vpop.f32.mrb[155].mxu1  ;;  %v8414_v50 = vadd.f32 %v5169_v49, %v8340_v63 }
 0x55d   :  { %v4925_v46 = vadd.f32 -1.0, %v5803_v62  ;;  %v3597_v2 = vmul.f32 1.442695, %v8402_v47  ;;  %v3711_v28 = vsel %vm3551_vm10, %v8373_v41, %v3679_v57  ;;  %v8417_v4 = vadd.f32 %v8340_v63, %v3465_v13 }
 0x55e   :  { %v3680_v39 = vmul.f32 1.6732632, %v4927_v7  ;;  %v3709_v16 = vsel %vm3549_vm11, %v8377_v1, %v3677_v33  ;;  %5804 = vpow2.f32 %v3601_v19  ;;  %v3603_v9 = vmul.f32 1.442695, %v8414_v50 }
 0x55f   :  { %v3678_v58 = vmul.f32 1.6732632, %v4925_v46  ;;  %5806 = vpow2.f32 %v3597_v2  ;;  %v3741_v54 = vmul.f32 1.050701, %v3709_v16  ;;  %v3743_v53 = vmul.f32 1.050701, %v3711_v28 }
 0x560   :  { %v3712_v15 = vsel %vm3552_vm12, %v8389_v40, %v3680_v39  ;;  %v3599_v14 = vmul.f32 1.442695, %v8417_v4  ;;  %5808 = vpow2.f32 %v3603_v9  ;;  %vm3555_vm14 = vcmp.gt.f32.partialorder %v8399_v10, 0.0 }
 0x561   :  { %v3744_v55 = vmul.f32 1.050701, %v3712_v15  ;;  %v3710_v34 = vsel %vm3550_vm13, %v8392_v31, %v3678_v58  ;;  %vm3553_vm15 = vcmp.gt.f32.partialorder %v8402_v47, 0.0  ;;  %vm3556_vm1 = vcmp.gt.f32.partialorder %v8414_v50, 0.0 }
 0x562   :  { %v3742_v8 = vmul.f32 1.050701, %v3710_v34  ;;  %5810 = vpow2.f32 %v3599_v14  ;;  %vm3554_vm0 = vcmp.gt.f32.partialorder %v8417_v4, 0.0 }
 0x563   :  { %v3770_v3 = vpack.c.bf16 %v3744_v55, %v3743_v53 }
 0x564   :  { %v3769_v29 = vpack.c.bf16 %v3742_v8, %v3741_v54 }
 0x566   :  { %5202 = vmatprep.mubr.msk.bf16.mxu0 %vm3820_vm5, %v3769_v29 }
 0x567   :  { %5203 = vmatmul.mubr.msk.bf16.gmra.mrb[156].mxu0 %vm3820_vm5, %v3770_v3 }
 0x568   :  { %v5805_v35 = vpop.eup %5804 }
 0x569   :  { %v5807_v11 = vpop.eup %5806  ;;  %v4930_v43 = vadd.f32 -1.0, %v5805_v35 }
 0x56a   :  { %v4928_v21 = vadd.f32 -1.0, %v5807_v11  ;;  %v5809_v12 = vpop.eup %5808 }
 0x56b   :  { %v3683_v0 = vmul.f32 1.6732632, %v4930_v43  ;;  %v4931_v37 = vadd.f32 -1.0, %v5809_v12 }
 0x56c   :  { %v3681_v36 = vmul.f32 1.6732632, %v4928_v21  ;;  %v5811_v52 = vpop.eup %5810 }
 0x56d   :  { %v4929_v6 = vadd.f32 -1.0, %v5811_v52  ;;  %v3684_v23 = vmul.f32 1.6732632, %v4931_v37  ;;  %v3715_v42 = vsel %vm3555_vm14, %v8399_v10, %v3683_v0 }
 0x56e   :  { %v3713_v60 = vsel %vm3553_vm15, %v8402_v47, %v3681_v36  ;;  %v3747_v33 = vmul.f32 1.050701, %v3715_v42 }
 0x56f   :  { %v3682_v61 = vmul.f32 1.6732632, %v4929_v6  ;;  %v3716_v18 = vsel %vm3556_vm1, %v8414_v50, %v3684_v23  ;;  %v3745_v38 = vmul.f32 1.050701, %v3713_v60 }
 0x570   :  { %v3748_v26 = vmul.f32 1.050701, %v3716_v18 }
 0x571   :  { %v3714_v44 = vsel %vm3554_vm0, %v8417_v4, %v3682_v61 }
 0x572   :  { %v3746_v51 = vmul.f32 1.050701, %v3714_v44  ;;  %v3772_v13 = vpack.c.bf16 %v3748_v26, %v3747_v33 }
 0x574   :  { %v3771_v46 = vpack.c.bf16 %v3746_v51, %v3745_v38 }
 0x575   :  { %v5172_v17 = vpop.f32.mrb[156].mxu1 }
 0x576   :  { %v3487_v22 = vadd.f32 %v5172_v17, %v8340_v63  ;;  %v3478_v27 = vpop.f32.mrb[157].mxu1  ;;  %5206 = vmatprep.mubr.msk.bf16.mxu0 %vm3820_vm5, %v3771_v46 }
 0x577   :  { %v3479_v25 = vadd.f32 %v8340_v63, %v3478_v27  ;;  %v5173_v56 = vpop.f32.mrb[158].mxu1  ;;  %5207 = vmatmul.mubr.msk.bf16.gmra.mrb[160].mxu0 %vm3820_vm5, %v3772_v13 }
 0x578   :  { %v3609_v59 = vmul.f32 1.442695, %v3487_v22  ;;  %v3481_v30 = vpop.f32.mrb[159].mxu1  ;;  %4322 = vrot.lane.b32.xlu0 %v3487_v22, %s6089_s8  ;;  %v3490_v57 = vadd.f32 %v5173_v56, %v8340_v63  ;;  %vm3559_vm2 = vcmp.gt.f32.partialorder %v3487_v22, 0.0 }
 0x579   :  { %v3605_v62 = vmul.f32 1.442695, %v3479_v25  ;;  %4318 = vrot.lane.b32.xlu1 %v3479_v25, %s6089_s8  ;;  %v3482_v7 = vadd.f32 %v8340_v63, %v3481_v30  ;;  %vm3557_vm3 = vcmp.gt.f32.partialorder %v3479_v25, 0.0 }
 0x57a   :  { %5812 = vpow2.f32 %v3609_v59  ;;  %v3611_v49 = vmul.f32 1.442695, %v3490_v57  ;;  %vm3560_vm4 = vcmp.gt.f32.partialorder %v3490_v57, 0.0 }
 0x57b   :  { %5814 = vpow2.f32 %v3605_v62  ;;  %v3607_v19 = vmul.f32 1.442695, %v3482_v7  ;;  %vm3558_vm6 = vcmp.gt.f32.partialorder %v3482_v7, 0.0 }
 0x57c   :  { %4294 = vrot.lane.b32.xlu0 %v8358_v45, %s6089_s8  ;;  %5816 = vpow2.f32 %v3611_v49 }
 0x57d   :  { %4320 = vrot.lane.b32.xlu1 %v3482_v7, %s6089_s8  ;;  %5818 = vpow2.f32 %v3607_v19 }
 0x581   :  { %4292 = vrot.lane.b32.xlu1 %v8345_v20, %s6089_s8 }
 0x584   :  { %v5813_v39 = vpop.eup %5812 }
 0x585   :  { %v5815_v16 = vpop.eup %5814  ;;  %v4934_v58 = vadd.f32 -1.0, %v5813_v39  ;;  %4324 = vrot.lane.b32.xlu1 %v3490_v57, %s6089_s8 }
 0x586   :  { %v4932_v2 = vadd.f32 -1.0, %v5815_v16  ;;  %v5817_v28 = vpop.eup %5816 }
 0x587   :  { %v3687_v45 = vmul.f32 1.6732632, %v4934_v58  ;;  %v5819_v15 = vpop.eup %5818  ;;  %v4935_v34 = vadd.f32 -1.0, %v5817_v28 }
 0x588   :  { %v3685_v55 = vmul.f32 1.6732632, %v4932_v2  ;;  %v4933_v54 = vadd.f32 -1.0, %v5819_v15 }
 0x589   :  { %v5176_v8 = vpop.f32.mrb[160].mxu1  ;;  %4296 = vrot.lane.b32.xlu1 %v8366_v32, %s6089_s8  ;;  %v3719_v9 = vsel %vm3559_vm2, %v3487_v22, %v3687_v45  ;;  %v3688_v20 = vmul.f32 1.6732632, %v4935_v34 }
 0x58a   :  { %v3503_v53 = vadd.f32 %v5176_v8, %v8340_v63  ;;  %v3494_v14 = vpop.f32.mrb[161].mxu1  ;;  %v3717_v29 = vsel %vm3557_vm3, %v3479_v25, %v3685_v55  ;;  %v3686_v3 = vmul.f32 1.6732632, %v4933_v54  ;;  %v3751_v52 = vmul.f32 1.050701, %v3719_v9 }
 0x58b   :  { %v3495_v35 = vadd.f32 %v8340_v63, %v3494_v14  ;;  %v5177_v11 = vpop.f32.mrb[162].mxu1  ;;  %v3720_v43 = vsel %vm3560_vm4, %v3490_v57, %v3688_v20  ;;  %v3749_v6 = vmul.f32 1.050701, %v3717_v29 }
 0x58c   :  { %v3617_v21 = vmul.f32 1.442695, %v3503_v53  ;;  %v3506_v12 = vadd.f32 %v5177_v11, %v8340_v63  ;;  %v3497_v36 = vpop.f32.mrb[163].mxu1  ;;  %v3752_v32 = vmul.f32 1.050701, %v3720_v43  ;;  %v3718_v0 = vsel %vm3558_vm6, %v3482_v7, %v3686_v3 }
 0x58d   :  { %v3613_v37 = vmul.f32 1.442695, %v3495_v35  ;;  %4326 = vrot.lane.b32.xlu0 %v3495_v35, %s6089_s8  ;;  %v3750_v23 = vmul.f32 1.050701, %v3718_v0  ;;  %v3498_v60 = vadd.f32 %v8340_v63, %v3497_v36  ;;  %vm3563_vm7 = vcmp.gt.f32.partialorder %v3503_v53, 0.0 }
 0x58e   :  { %5820 = vpow2.f32 %v3617_v21  ;;  %v3619_v17 = vmul.f32 1.442695, %v3506_v12  ;;  %v3774_v61 = vpack.c.bf16 %v3752_v32, %v3751_v52  ;;  %vm3561_vm8 = vcmp.gt.f32.partialorder %v3495_v35, 0.0 }
 0x58f   :  { %5822 = vpow2.f32 %v3613_v37  ;;  %v3773_v22 = vpack.c.bf16 %v3750_v23, %v3749_v6  ;;  %v3615_v27 = vmul.f32 1.442695, %v3498_v60  ;;  %4328 = vrot.lane.b32.xlu1 %v3498_v60, %s6089_s8  ;;  %vm3564_vm9 = vcmp.gt.f32.partialorder %v3506_v12, 0.0 }
 0x590   :  { %5824 = vpow2.f32 %v3619_v17  ;;  %vm3562_vm10 = vcmp.gt.f32.partialorder %v3498_v60, 0.0 }
 0x591   :  { %4298 = vrot.lane.b32.xlu0 %v8355_v48, %s6089_s8  ;;  %5210 = vmatprep.mubr.msk.bf16.mxu0 %vm3820_vm5, %v3773_v22  ;;  %5826 = vpow2.f32 %v3615_v27 }
 0x592   :  { %5211 = vmatmul.mubr.msk.bf16.gmra.mrb[164].mxu0 %vm3820_vm5, %v3774_v61 }
 0x593   :  { %4300 = vrot.lane.b32.xlu1 %v8362_v24, %s6089_s8 }
 0x595   :  { %4330 = vrot.lane.b32.xlu0 %v3503_v53, %s6089_s8 }
 0x597   :  { %4332 = vrot.lane.b32.xlu1 %v3506_v12, %s6089_s8 }
 0x598   :  { %v5821_v42 = vpop.eup %5820 }
 0x599   :  { %v5823_v18 = vpop.eup %5822  ;;  %v4938_v25 = vadd.f32 -1.0, %v5821_v42  ;;  %4302 = vrot.lane.b32.xlu0 %v8377_v1, %s6089_s8 }
 0x59a   :  { %v5825_v56 = vpop.eup %5824  ;;  %v4936_v48 = vadd.f32 -1.0, %v5823_v18 }
 0x59b   :  { %v3691_v26 = vmul.f32 1.6732632, %v4938_v25  ;;  %v4939_v44 = vadd.f32 -1.0, %v5825_v56  ;;  %v5827_v24 = vpop.eup %5826  ;;  %4304 = vrot.lane.b32.xlu1 %v8392_v31, %s6089_s8 }
 0x59c   :  { %v5180_v59 = vpop.f32.mrb[164].mxu1  ;;  %v3689_v30 = vmul.f32 1.6732632, %v4936_v48  ;;  %v4937_v1 = vadd.f32 -1.0, %v5827_v24 }
 0x59d   :  { %v3519_v38 = vadd.f32 %v5180_v59, %v8340_v63  ;;  %v3510_v51 = vpop.f32.mrb[165].mxu1  ;;  %v3692_v62 = vmul.f32 1.6732632, %v4939_v44  ;;  %v3723_v7 = vsel %vm3563_vm7, %v3503_v53, %v3691_v26 }
 0x59e   :  { %v3511_v57 = vadd.f32 %v8340_v63, %v3510_v51  ;;  %v5181_v33 = vpop.f32.mrb[166].mxu1  ;;  %v3721_v46 = vsel %vm3561_vm8, %v3495_v35, %v3689_v30  ;;  %v3690_v16 = vmul.f32 1.6732632, %v4937_v1  ;;  %v3755_v28 = vmul.f32 1.050701, %v3723_v7 }
 0x59f   :  { %v3513_v49 = vpop.f32.mrb[167].mxu1  ;;  %v3724_v19 = vsel %vm3564_vm9, %v3506_v12, %v3692_v62  ;;  %v3625_v13 = vmul.f32 1.442695, %v3519_v38  ;;  %v3522_v2 = vadd.f32 %v5181_v33, %v8340_v63  ;;  %v3753_v55 = vmul.f32 1.050701, %v3721_v46 }
 0x5a0   :  { %4334 = vrot.lane.b32.xlu0 %v3511_v57, %s6089_s8  ;;  %v3756_v39 = vmul.f32 1.050701, %v3724_v19  ;;  %v3621_v58 = vmul.f32 1.442695, %v3511_v57  ;;  %v3514_v31 = vadd.f32 %v8340_v63, %v3513_v49  ;;  %v3722_v45 = vsel %vm3562_vm10, %v3498_v60, %v3690_v16 }
 0x5a1   :  { %5828 = vpow2.f32 %v3625_v13  ;;  %v3627_v15 = vmul.f32 1.442695, %v3522_v2  ;;  %v3754_v34 = vmul.f32 1.050701, %v3722_v45  ;;  %vm3567_vm11 = vcmp.gt.f32.partialorder %v3519_v38, 0.0 }
 0x5a2   :  { %5830 = vpow2.f32 %v3621_v58  ;;  %v3623_v54 = vmul.f32 1.442695, %v3514_v31  ;;  %4336 = vrot.lane.b32.xlu1 %v3514_v31, %s6089_s8  ;;  %v3776_v8 = vpack.c.bf16 %v3756_v39, %v3755_v28  ;;  %vm3565_vm12 = vcmp.gt.f32.partialorder %v3511_v57, 0.0  ;;  %v8503_v45 = vld [vmem:[%s8707_s12] ss:$0 sm:$0xff] }
 0x5a3   :  { %5832 = vpow2.f32 %v3627_v15  ;;  %v3775_v9 = vpack.c.bf16 %v3754_v34, %v3753_v55  ;;  %vm3568_vm13 = vcmp.gt.f32.partialorder %v3522_v2, 0.0  ;;  %vm3566_vm14 = vcmp.gt.f32.partialorder %v3514_v31, 0.0 }
 0x5a4   :  { %4306 = vrot.lane.b32.xlu0 %v8373_v41, %s6089_s8  ;;  %5834 = vpow2.f32 %v3623_v54 }
 0x5a5   :  { %5214 = vmatprep.mubr.msk.bf16.mxu0 %vm3820_vm5, %v3775_v9 }
 0x5a6   :  { %4308 = vrot.lane.b32.xlu1 %v8389_v40, %s6089_s8  ;;  %5215 = vmatmul.mubr.msk.bf16.gmra.mrb[168].mxu0 %vm3820_vm5, %v3776_v8 }
 0x5a8   :  { %4338 = vrot.lane.b32.xlu0 %v3519_v38, %s6089_s8 }
 0x5aa   :  { %4340 = vrot.lane.b32.xlu1 %v3522_v2, %s6089_s8 }
 0x5ab   :  { %v5829_v20 = vpop.eup %5828 }
 0x5ac   :  { %4310 = vrot.lane.b32.xlu0 %v8402_v47, %s6089_s8  ;;  %v5831_v41 = vpop.eup %5830  ;;  %v4942_v53 = vadd.f32 -1.0, %v5829_v20 }
 0x5ad   :  { %v4940_v14 = vadd.f32 -1.0, %v5831_v41  ;;  %v5833_v29 = vpop.eup %5832  ;;  %v5184_v35 = vpop.f32.mrb[168].mxu1 }
 0x5ae   :  { %v3695_v3 = vmul.f32 1.6732632, %v4942_v53  ;;  %v5835_v11 = vpop.eup %5834  ;;  %v4943_v43 = vadd.f32 -1.0, %v5833_v29  ;;  %v3535_v21 = vadd.f32 %v5184_v35, %v8340_v63  ;;  %v3526_v12 = vpop.f32.mrb[169].mxu1  ;;  %4312 = vrot.lane.b32.xlu1 %v8417_v4, %s6089_s8 }
 0x5af   :  { %v3693_v40 = vmul.f32 1.6732632, %v4940_v14  ;;  %v4941_v36 = vadd.f32 -1.0, %v5835_v11  ;;  %v3527_v52 = vadd.f32 %v8340_v63, %v3526_v12  ;;  %v5185_v47 = vpop.f32.mrb[170].mxu1  ;;  %v4287_v29 = vpop.permute.xlu0 %4286 }
 0x5b0   :  { %v3727_v32 = vsel %vm3567_vm11, %v3519_v38, %v3695_v3  ;;  %v3696_v0 = vmul.f32 1.6732632, %v4943_v43  ;;  %v3529_v37 = vpop.f32.mrb[171].mxu1  ;;  %v3633_v17 = vmul.f32 1.442695, %v3535_v21  ;;  %v3538_v60 = vadd.f32 %v5185_v47, %v8340_v63 }
 0x5b1   :  { %v3725_v6 = vsel %vm3565_vm12, %v3511_v57, %v3693_v40  ;;  %v3694_v23 = vmul.f32 1.6732632, %v4941_v36  ;;  %4342 = vrot.lane.b32.xlu0 %v3527_v52, %s6089_s8  ;;  %v3629_v4 = vmul.f32 1.442695, %v3527_v52  ;;  %v3530_v22 = vadd.f32 %v8340_v63, %v3529_v37 }
 0x5b2   :  { %v3728_v61 = vsel %vm3568_vm13, %v3522_v2, %v3696_v0  ;;  %v3759_v27 = vmul.f32 1.050701, %v3727_v32  ;;  %5836 = vpow2.f32 %v3633_v17  ;;  %v3757_v25 = vmul.f32 1.050701, %v3725_v6 }
 0x5b3   :  { %v3760_v42 = vmul.f32 1.050701, %v3728_v61  ;;  %v3726_v18 = vsel %vm3566_vm14, %v3514_v31, %v3694_v23  ;;  %5838 = vpow2.f32 %v3629_v4  ;;  %v3635_v48 = vmul.f32 1.442695, %v3538_v60  ;;  %4344 = vrot.lane.b32.xlu1 %v3530_v22, %s6089_s8  ;;  %v4289_v43 = vpop.permute.xlu0 %4288 }
 0x5b4   :  { %v3758_v56 = vmul.f32 1.050701, %v3726_v18  ;;  %v3631_v26 = vmul.f32 1.442695, %v3530_v22  ;;  %vm3571_vm15 = vcmp.gt.f32.partialorder %v3535_v21, 0.0  ;;  %vm3569_vm1 = vcmp.gt.f32.partialorder %v3527_v52, 0.0 }
 0x5b5   :  { %4314 = vrot.lane.b32.xlu0 %v8399_v10, %s6089_s8  ;;  %v3778_v44 = vpack.c.bf16 %v3760_v42, %v3759_v27  ;;  %5840 = vpow2.f32 %v3635_v48  ;;  %vm3572_vm0 = vcmp.gt.f32.partialorder %v3538_v60, 0.0  ;;  %vm3570_vm2 = vcmp.gt.f32.partialorder %v3530_v22, 0.0 }
 0x5b6   :  { %v3777_v59 = vpack.c.bf16 %v3758_v56, %v3757_v25  ;;  %5842 = vpow2.f32 %v3631_v26 }
 0x5b7   :  { %4316 = vrot.lane.b32.xlu1 %v8414_v50, %s6089_s8  ;;  %v4291_v32 = vpop.permute.xlu0 %4290 }
 0x5b8   :  { %5218 = vmatprep.mubr.msk.bf16.mxu0 %vm3820_vm5, %v3777_v59 }
 0x5b9   :  { %4346 = vrot.lane.b32.xlu0 %v3535_v21, %s6089_s8  ;;  %5219 = vmatmul.mubr.msk.bf16.gmra.mrb[172].mxu0 %vm3820_vm5, %v3778_v44 }
 0x5bb   :  { %4348 = vrot.lane.b32.xlu1 %v3538_v60, %s6089_s8 }
 0x5bc   :  { %v5837_v63 = vpop.eup %5836 }
 0x5bd   :  { %v5839_v30 = vpop.eup %5838  ;;  %v4946_v38 = vadd.f32 -1.0, %v5837_v63 }
 0x5be   :  { %v4944_v51 = vadd.f32 -1.0, %v5839_v30 }
 0x5bf   :  { %v5841_v10 = vpop.eup %5840  ;;  %v3699_v24 = vmul.f32 1.6732632, %v4946_v38 }
 0x5c0   :  { %v5843_v62 = vpop.eup %5842  ;;  %v3697_v57 = vmul.f32 1.6732632, %v4944_v51  ;;  %v4947_v33 = vadd.f32 -1.0, %v5841_v10 }
 0x5c1   :  { %v4945_v7 = vadd.f32 -1.0, %v5843_v62  ;;  %v3731_v50 = vsel %vm3571_vm15, %v3535_v21, %v3699_v24 }
 0x5c2   :  { %v3700_v1 = vmul.f32 1.6732632, %v4947_v33  ;;  %v3729_v49 = vsel %vm3569_vm1, %v3527_v52, %v3697_v57  ;;  %v3763_v13 = vmul.f32 1.050701, %v3731_v50 }
 0x5c3   :  { %v3698_v46 = vmul.f32 1.6732632, %v4945_v7  ;;  %v3761_v58 = vmul.f32 1.050701, %v3729_v49 }
 0x5c4   :  { %v3732_v19 = vsel %vm3572_vm0, %v3538_v60, %v3700_v1 }
 0x5c5   :  { %v3764_v39 = vmul.f32 1.050701, %v3732_v19  ;;  %v3730_v16 = vsel %vm3570_vm2, %v3530_v22, %v3698_v46 }
 0x5c6   :  { %v3762_v2 = vmul.f32 1.050701, %v3730_v16 }
 0x5c7   :  { %v3780_v28 = vpack.c.bf16 %v3764_v39, %v3763_v13 }
 0x5c8   :  { %v3779_v31 = vpack.c.bf16 %v3762_v2, %v3761_v58 }
 0x5ca   :  { %5222 = vmatprep.mubr.msk.bf16.mxu0 %vm3820_vm5, %v3779_v31 }
 0x5cb   :  { %5223 = vmatmul.mubr.msk.bf16.gmra.mrb[176].mxu0 %vm3820_vm5, %v3780_v28 }
 0x5ea   :  { %v8515_v42 = vpop.permute.xlu0 %4322 }
 0x5eb   :  { %v8505_v15 = vpop.permute.xlu1 %4318 }
 0x5ee   :  { %v4295_v46 = vpop.permute.xlu0 %4294 }
 0x5ef   :  { %v8511_v11 = vpop.permute.xlu1 %4320 }
 0x5f3   :  { %v4293_v21 = vpop.permute.xlu1 %4292 }
 0x5f7   :  { %v8513_v37 = vpop.permute.xlu1 %4324 }
 0x5fb   :  { %v8519_v24 = vpop.permute.xlu1 %4296 }
 0x5ff   :  { %v8537_v31 = vpop.permute.xlu0 %4326 }
 0x601   :  { %v8535_v28 = vpop.permute.xlu1 %4328 }
 0x613   :  { %v5196_v55 = vpop.f32.mrb[148].mxu0 }
 0x614   :  { %v3912_v34 = vadd.f32 %v5196_v55, %v8503_v45  ;;  %v3903_v54 = vpop.f32.mrb[149].mxu0 }
 0x615   :  { %v3904_v8 = vadd.f32 %v8503_v45, %v3903_v54  ;;  %v5197_v9 = vpop.f32.mrb[150].mxu0  ;;  %v4301_v54 = vpop.permute.xlu1 %4300 }
 0x616   :  { %v4066_v20 = vmul.f32 1.442695, %v3912_v34  ;;  %v3915_v41 = vadd.f32 %v5197_v9, %v8503_v45  ;;  %v3906_v14 = vpop.f32.mrb[151].mxu0  ;;  %vm4032_vm3 = vcmp.gt.f32.partialorder %v3912_v34, 0.0  ;;  %v4299_v9 = vpop.permute.xlu0 %4298 }
 0x617   :  { %v4062_v53 = vmul.f32 1.442695, %v3904_v8  ;;  %v3907_v35 = vadd.f32 %v8503_v45, %v3906_v14  ;;  %vm4030_vm4 = vcmp.gt.f32.partialorder %v3904_v8, 0.0 }
 0x618   :  { %5844 = vpow2.f32 %v4066_v20  ;;  %v4068_v3 = vmul.f32 1.442695, %v3915_v41  ;;  %vm4033_vm6 = vcmp.gt.f32.partialorder %v3915_v41, 0.0 }
 0x619   :  { %5846 = vpow2.f32 %v4062_v53  ;;  %v4064_v40 = vmul.f32 1.442695, %v3907_v35  ;;  %vm4031_vm7 = vcmp.gt.f32.partialorder %v3907_v35, 0.0 }
 0x61a   :  { %5848 = vpow2.f32 %v4068_v3 }
 0x61b   :  { %5850 = vpow2.f32 %v4064_v40 }
 0x622   :  { %v5845_v12 = vpop.eup %5844 }
 0x623   :  { %v5847_v36 = vpop.eup %5846  ;;  %v4971_v52 = vadd.f32 -1.0, %v5845_v12 }
 0x624   :  { %v5849_v47 = vpop.eup %5848  ;;  %v4969_v0 = vadd.f32 -1.0, %v5847_v36 }
 0x625   :  { %v4160_v6 = vmul.f32 1.6732632, %v4971_v52  ;;  %v4972_v23 = vadd.f32 -1.0, %v5849_v47  ;;  %v5851_v17 = vpop.eup %5850  ;;  %v8540_v52 = vpop.permute.xlu1 %4332 }
 0x626   :  { %v4158_v60 = vmul.f32 1.6732632, %v4969_v0  ;;  %v4970_v22 = vadd.f32 -1.0, %v5851_v17 }
 0x627   :  { %v4192_v61 = vsel %vm4032_vm3, %v3912_v34, %v4160_v6  ;;  %v4161_v4 = vmul.f32 1.6732632, %v4972_v23  ;;  %v8543_v23 = vpop.permute.xlu0 %4330 }
 0x628   :  { %v5200_v27 = vpop.f32.mrb[152].mxu0  ;;  %v4224_v18 = vmul.f32 1.050701, %v4192_v61  ;;  %v4190_v25 = vsel %vm4030_vm4, %v3904_v8, %v4158_v60  ;;  %v4159_v59 = vmul.f32 1.6732632, %v4970_v22 }
 0x629   :  { %v3928_v56 = vadd.f32 %v5200_v27, %v8503_v45  ;;  %v3919_v48 = vpop.f32.mrb[153].mxu0  ;;  %v4222_v26 = vmul.f32 1.050701, %v4190_v25  ;;  %v4193_v44 = vsel %vm4033_vm6, %v3915_v41, %v4161_v4 }
 0x62a   :  { %v3920_v63 = vadd.f32 %v8503_v45, %v3919_v48  ;;  %v5201_v30 = vpop.f32.mrb[154].mxu0  ;;  %v4225_v38 = vmul.f32 1.050701, %v4193_v44  ;;  %v8521_v62 = vadd.f32 %v4291_v32, %v4224_v18  ;;  %v4191_v57 = vsel %vm4031_vm7, %v3907_v35, %v4159_v59 }
 0x62b   :  { %v4074_v51 = vmul.f32 1.442695, %v3928_v56  ;;  %v3922_v10 = vpop.f32.mrb[155].mxu0  ;;  %v4223_v50 = vmul.f32 1.050701, %v4191_v57  ;;  %v3931_v1 = vadd.f32 %v5201_v30, %v8503_v45  ;;  %v8527_v19 = vadd.f32 %v4287_v29, %v4222_v26  ;;  %v4305_v30 = vpop.permute.xlu1 %4304 }
 0x62c   :  { %v4070_v33 = vmul.f32 1.442695, %v3920_v63  ;;  %v8523_v7 = vadd.f32 %v4293_v21, %v4225_v38  ;;  %v3923_v49 = vadd.f32 %v8503_v45, %v3922_v10  ;;  %vm4036_vm8 = vcmp.gt.f32.partialorder %v3928_v56, 0.0  ;;  %v4303_v57 = vpop.permute.xlu0 %4302 }
 0x62d   :  { %5852 = vpow2.f32 %v4074_v51  ;;  %v8529_v13 = vadd.f32 %v4289_v43, %v4223_v50  ;;  %v4076_v39 = vmul.f32 1.442695, %v3931_v1  ;;  %vm4034_vm9 = vcmp.gt.f32.partialorder %v3920_v63, 0.0 }
 0x62e   :  { %5854 = vpow2.f32 %v4070_v33  ;;  %v4416_v16 = vpack.c.bf16 %v8523_v7, %v8521_v62  ;;  %v4072_v58 = vmul.f32 1.442695, %v3923_v49  ;;  %vm4037_vm10 = vcmp.gt.f32.partialorder %v3931_v1, 0.0 }
 0x62f   :  { %5856 = vpow2.f32 %v4076_v39  ;;  %v4415_v2 = vpack.c.bf16 %v8529_v13, %v8527_v19  ;;  %vm4035_vm11 = vcmp.gt.f32.partialorder %v3923_v49, 0.0 }
 0x630   :  { %5858 = vpow2.f32 %v4072_v58  ;;  %v4448_v19 = vsel %vm3820_vm5, %v4416_v16, 0 }
 0x637   :  { %v5853_v55 = vpop.eup %5852 }
 0x638   :  { %v5855_v34 = vpop.eup %5854  ;;  %v4975_v8 = vadd.f32 -1.0, %v5853_v55 }
 0x639   :  { %v4973_v20 = vadd.f32 -1.0, %v5855_v34  ;;  %v5857_v53 = vpop.eup %5856 }
 0x63a   :  { %v4164_v41 = vmul.f32 1.6732632, %v4975_v8  ;;  %v5859_v29 = vpop.eup %5858  ;;  %v4976_v35 = vadd.f32 -1.0, %v5857_v53  ;;  %v5204_v40 = vpop.f32.mrb[156].mxu0 }
 0x63b   :  { %v4162_v14 = vmul.f32 1.6732632, %v4973_v20  ;;  %v4974_v21 = vadd.f32 -1.0, %v5859_v29  ;;  %v3944_v12 = vadd.f32 %v5204_v40, %v8503_v45  ;;  %v3935_v36 = vpop.f32.mrb[157].mxu0 }
 0x63c   :  { %v4196_v3 = vsel %vm4036_vm8, %v3928_v56, %v4164_v41  ;;  %v4165_v32 = vmul.f32 1.6732632, %v4976_v35  ;;  %v3936_v0 = vadd.f32 %v8503_v45, %v3935_v36  ;;  %v5205_v6 = vpop.f32.mrb[158].mxu0 }
 0x63d   :  { %v4194_v43 = vsel %vm4034_vm9, %v3920_v63, %v4162_v14  ;;  %v4228_v47 = vmul.f32 1.050701, %v4196_v3  ;;  %v4163_v17 = vmul.f32 1.6732632, %v4974_v21  ;;  %v4082_v60 = vmul.f32 1.442695, %v3944_v12 }
 0x63e   :  { %v3938_v61 = vpop.f32.mrb[159].mxu0  ;;  %v4226_v4 = vmul.f32 1.050701, %v4194_v43  ;;  %v4197_v22 = vsel %vm4037_vm10, %v3931_v1, %v4165_v32  ;;  %v4078_v27 = vmul.f32 1.442695, %v3936_v0  ;;  %v3947_v56 = vadd.f32 %v5205_v6, %v8503_v45 }
 0x63f   :  { %v4229_v18 = vmul.f32 1.050701, %v4197_v22  ;;  %v4195_v25 = vsel %vm4035_vm11, %v3923_v49, %v4163_v17  ;;  %5860 = vpow2.f32 %v4082_v60  ;;  %v3939_v26 = vadd.f32 %v8503_v45, %v3938_v61  ;;  %v8563_v1 = vld [vmem:[%s8708_s13] sm:$0x1]  ;;  %s6093_s13 = smov [#allocation14]  }
 0x640   :  { %v4227_v48 = vmul.f32 1.050701, %v4195_v25  ;;  %5862 = vpow2.f32 %v4078_v27  ;;  %v8547_v44 = vadd.f32 %v4299_v9, %v4228_v47  ;;  %v4084_v63 = vmul.f32 1.442695, %v3947_v56  ;;  %5088 = vmatprep.mubr.msk.bf16.mxu1 %vm3820_vm5, %v8563_v1  ;;  %s4574_s22 = sshll.u32 %s6093_s13, 4  ;;  %s4575_s22 = int_to_ptr.vmem [resolvable:$true] %s4574_s22 }
 0x641   :  { %v8549_v59 = vadd.f32 %v4301_v54, %v4229_v18  ;;  %v8551_v38 = vadd.f32 %v4295_v46, %v4226_v4  ;;  %v4080_v10 = vmul.f32 1.442695, %v3939_v26  ;;  %v8569_v46 = vpop.permute.xlu0 %4334  ;;  %v4431_v54 = vld [vmem:[#allocation2] sm:$0x1]  ;;  %vm4040_vm12 = vcmp.gt.f32.partialorder %v3944_v12, 0.0  ;;  %s6049_s26 = scalar_lea.vmem %s4575_s22, 32  ;;  %p6054_p7 = scmp.lt.s32.totalorder %s4575_s22, %s4575_s22 }
 0x642   :  { %v8554_v51 = vadd.f32 %v8519_v24, %v4227_v48  ;;  %5864 = vpow2.f32 %v4084_v63  ;;  %v8567_v24 = vpop.permute.xlu1 %4336  ;;  %4434 = vperm.xlu0 %5251, %v4431_v54   ;;  %vm4038_vm13 = vcmp.gt.f32.partialorder %v3936_v0, 0.0  ;;  %vm4041_vm14 = vcmp.gt.f32.partialorder %v3947_v56, 0.0  ;;  %p6050_p6 = scmp.ne.s32.totalorder %s4575_s22, %s6049_s26  ;;  %p6055_p8 = scmp.lt.s32.totalorder %s6049_s26, %s6049_s26 }
 0x643   :  { %v4418_v33 = vpack.c.bf16 %v8549_v59, %v8547_v44  ;;  %5866 = vpow2.f32 %v4080_v10  ;;  %vm4039_vm15 = vcmp.gt.f32.partialorder %v3939_v26, 0.0 }
 0x644   :  { %v4417_v50 = vpack.c.bf16 %v8554_v51, %v8551_v38  ;;  %p6056_p9 = por %p6055_p8, %p6054_p7 }
 0x645   :  { %v4307_v40 = vpop.permute.xlu0 %4306  ;;  %v4454_v38 = vsel %vm3820_vm5, %v4418_v33, 0 }
 0x646   :  { %v4309_v53 = vpop.permute.xlu1 %4308  ;;  %p6057_p10 = pnand %p6056_p9, %p6050_p6 }
 0x649   :  { %v5861_v49 = vpop.eup %5860 }
 0x64a   :  { %v5863_v39 = vpop.eup %5862  ;;  %v4979_v58 = vadd.f32 -1.0, %v5861_v49  ;;  %v5208_v20 = vpop.f32.mrb[160].mxu0 }
 0x64b   :  { %v4977_v55 = vadd.f32 -1.0, %v5863_v39  ;;  %v3960_v3 = vadd.f32 %v5208_v20, %v8503_v45  ;;  %v3951_v35 = vpop.f32.mrb[161].mxu0  ;;  %v8574_v48 = vpop.permute.xlu1 %4340 }
 0x64c   :  { %v4168_v34 = vmul.f32 1.6732632, %v4979_v58  ;;  %v5865_v8 = vpop.eup %5864  ;;  %v3952_v36 = vadd.f32 %v8503_v45, %v3951_v35  ;;  %v5209_v47 = vpop.f32.mrb[162].mxu0 }
 0x64d   :  { %v4166_v9 = vmul.f32 1.6732632, %v4977_v55  ;;  %v5867_v41 = vpop.eup %5866  ;;  %v4980_v29 = vadd.f32 -1.0, %v5865_v8  ;;  %v3963_v6 = vadd.f32 %v5209_v47, %v8503_v45  ;;  %v3954_v17 = vpop.f32.mrb[163].mxu0  ;;  %v4090_v4 = vmul.f32 1.442695, %v3960_v3 }
 0x64e   :  { %v4200_v14 = vsel %vm4040_vm12, %v3944_v12, %v4168_v34  ;;  %v4978_v21 = vadd.f32 -1.0, %v5867_v41  ;;  %v4086_v27 = vmul.f32 1.442695, %v3952_v36  ;;  %v3955_v10 = vadd.f32 %v8503_v45, %v3954_v17  ;;  %v8577_v49 = vpop.permute.xlu0 %4338 }
 0x64f   :  { %v4198_v43 = vsel %vm4038_vm13, %v3936_v0, %v4166_v9  ;;  %v4169_v32 = vmul.f32 1.6732632, %v4980_v29  ;;  %v4232_v60 = vmul.f32 1.050701, %v4200_v14  ;;  %5868 = vpow2.f32 %v4090_v4  ;;  %v4313_v8 = vpop.permute.xlu1 %4312 }
 0x650   :  { %v4167_v61 = vmul.f32 1.6732632, %v4978_v21  ;;  %v4230_v12 = vmul.f32 1.050701, %v4198_v43  ;;  %v4092_v0 = vmul.f32 1.442695, %v3963_v6  ;;  %5870 = vpow2.f32 %v4086_v27 }
 0x651   :  { %v4201_v22 = vsel %vm4041_vm14, %v3947_v56, %v4169_v32  ;;  %v8579_v39 = vadd.f32 %v4307_v40, %v4232_v60  ;;  %vm4044_vm1 = vcmp.gt.f32.partialorder %v3960_v3, 0.0  ;;  %vm4042_vm0 = vcmp.gt.f32.partialorder %v3952_v36, 0.0 }
 0x652   :  { %v4233_v18 = vmul.f32 1.050701, %v4201_v22  ;;  %v4199_v25 = vsel %vm4039_vm15, %v3939_v26, %v4167_v61  ;;  %5872 = vpow2.f32 %v4092_v0  ;;  %v8583_v56 = vadd.f32 %v4303_v57, %v4230_v12  ;;  %v4311_v9 = vpop.permute.xlu0 %4310 }
 0x653   :  { %v4231_v63 = vmul.f32 1.050701, %v4199_v25  ;;  %v4088_v26 = vmul.f32 1.442695, %v3955_v10  ;;  %v8591_v35 = vpop.permute.xlu1 %4344  ;;  %vm4045_vm2 = vcmp.gt.f32.partialorder %v3963_v6, 0.0  ;;  %vm4043_vm3 = vcmp.gt.f32.partialorder %v3955_v10, 0.0 }
 0x654   :  { %v8581_v58 = vadd.f32 %v4309_v53, %v4233_v18 }
 0x655   :  { %v8585_v55 = vadd.f32 %v4305_v30, %v4231_v63  ;;  %5874 = vpow2.f32 %v4088_v26 }
 0x656   :  { %v4420_v34 = vpack.c.bf16 %v8581_v58, %v8579_v39  ;;  %v8593_v40 = vpop.permute.xlu0 %4342 }
 0x657   :  { %v4419_v54 = vpack.c.bf16 %v8585_v55, %v8583_v56 }
 0x658   :  { %v4460_v55 = vsel %vm3820_vm5, %v4420_v34, 0 }
 0x659   :  { %v5869_v20 = vpop.eup %5868 }
 0x65a   :  { %v5871_v41 = vpop.eup %5870  ;;  %v4983_v14 = vadd.f32 -1.0, %v5869_v20  ;;  %v4317_v20 = vpop.permute.xlu1 %4316 }
 0x65b   :  { %v4981_v29 = vadd.f32 -1.0, %v5871_v41 }
 0x65c   :  { %v5873_v53 = vpop.eup %5872  ;;  %v4172_v57 = vmul.f32 1.6732632, %v4983_v14 }
 0x65d   :  { %v4984_v30 = vadd.f32 -1.0, %v5873_v53  ;;  %v4170_v43 = vmul.f32 1.6732632, %v4981_v29  ;;  %v4315_v53 = vpop.permute.xlu0 %4314 }
 0x65e   :  { %v4204_v47 = vsel %vm4044_vm1, %v3960_v3, %v4172_v57 }
 0x65f   :  { %v5875_v21 = vpop.eup %5874  ;;  %v4173_v32 = vmul.f32 1.6732632, %v4984_v30  ;;  %v4202_v60 = vsel %vm4042_vm0, %v3952_v36, %v4170_v43  ;;  %v4236_v22 = vmul.f32 1.050701, %v4204_v47 }
 0x660   :  { %v4982_v61 = vadd.f32 -1.0, %v5875_v21  ;;  %v4234_v3 = vmul.f32 1.050701, %v4202_v60 }
 0x661   :  { %v4205_v27 = vsel %vm4045_vm2, %v3963_v6, %v4173_v32  ;;  %v8601_v6 = vadd.f32 %v4315_v53, %v4236_v22 }
 0x662   :  { %v4237_v0 = vmul.f32 1.050701, %v4205_v27  ;;  %v4171_v63 = vmul.f32 1.6732632, %v4982_v61  ;;  %v8603_v47 = vadd.f32 %v4311_v9, %v4234_v3 }
 0x664   :  { %v8597_v36 = vadd.f32 %v4317_v20, %v4237_v0  ;;  %v4203_v29 = vsel %vm4043_vm3, %v3955_v10, %v4171_v63 }
 0x665   :  { %v5212_v17 = vpop.f32.mrb[164].mxu0  ;;  %v4235_v43 = vmul.f32 1.050701, %v4203_v29 }
 0x666   :  { %v3976_v4 = vadd.f32 %v5212_v17, %v8503_v45  ;;  %v3967_v12 = vpop.f32.mrb[165].mxu0  ;;  %v4422_v60 = vpack.c.bf16 %v8597_v36, %v8601_v6 }
 0x667   :  { %v3968_v18 = vadd.f32 %v8503_v45, %v3967_v12  ;;  %v5213_v25 = vpop.f32.mrb[166].mxu0  ;;  %v8605_v32 = vadd.f32 %v4313_v8, %v4235_v43 }
 0x668   :  { %v3970_v26 = vpop.f32.mrb[167].mxu0  ;;  %v4098_v41 = vmul.f32 1.442695, %v3976_v4  ;;  %v3979_v57 = vadd.f32 %v5213_v25, %v8503_v45  ;;  %vm4048_vm4 = vcmp.gt.f32.partialorder %v3976_v4, 0.0 }
 0x669   :  { %v4094_v14 = vmul.f32 1.442695, %v3968_v18  ;;  %v3971_v30 = vadd.f32 %v8503_v45, %v3970_v26  ;;  %v4421_v10 = vpack.c.bf16 %v8605_v32, %v8603_v47  ;;  %vm4046_vm6 = vcmp.gt.f32.partialorder %v3968_v18, 0.0 }
 0x66a   :  { %5876 = vpow2.f32 %v4098_v41  ;;  %v4100_v21 = vmul.f32 1.442695, %v3979_v57  ;;  %vm4049_vm7 = vcmp.gt.f32.partialorder %v3979_v57, 0.0 }
 0x66b   :  { %5878 = vpow2.f32 %v4094_v14  ;;  %v4096_v17 = vmul.f32 1.442695, %v3971_v30  ;;  %vm4047_vm8 = vcmp.gt.f32.partialorder %v3971_v30, 0.0 }
 0x66c   :  { %5880 = vpow2.f32 %v4100_v21 }
 0x66d   :  { %5882 = vpow2.f32 %v4096_v17 }
 0x674   :  { %v5877_v61 = vpop.eup %5876 }
 0x675   :  { %v5879_v12 = vpop.eup %5878  ;;  %v4987_v22 = vadd.f32 -1.0, %v5877_v61 }
 0x676   :  { %v4985_v27 = vadd.f32 -1.0, %v5879_v12  ;;  %v5881_v25 = vpop.eup %5880 }
 0x677   :  { %v4176_v0 = vmul.f32 1.6732632, %v4987_v22  ;;  %v5883_v63 = vpop.eup %5882  ;;  %v4988_v8 = vadd.f32 -1.0, %v5881_v25 }
 0x678   :  { %v4174_v9 = vmul.f32 1.6732632, %v4985_v27  ;;  %v4986_v20 = vadd.f32 -1.0, %v5883_v63 }
 0x679   :  { %v4208_v26 = vsel %vm4048_vm4, %v3976_v4, %v4176_v0  ;;  %v4177_v41 = vmul.f32 1.6732632, %v4988_v8  ;;  %v5216_v14 = vpop.f32.mrb[168].mxu0 }
 0x67a   :  { %v4206_v3 = vsel %vm4046_vm6, %v3968_v18, %v4174_v9  ;;  %v4240_v53 = vmul.f32 1.050701, %v4208_v26  ;;  %v4175_v29 = vmul.f32 1.6732632, %v4986_v20  ;;  %v3992_v43 = vadd.f32 %v5216_v14, %v8503_v45  ;;  %v3983_v21 = vpop.f32.mrb[169].mxu0 }
 0x67b   :  { %v4238_v17 = vmul.f32 1.050701, %v4206_v3  ;;  %v4209_v61 = vsel %vm4049_vm7, %v3979_v57, %v4177_v41  ;;  %v3984_v12 = vadd.f32 %v8503_v45, %v3983_v21  ;;  %v5217_v22 = vpop.f32.mrb[170].mxu0 }
 0x67c   :  { %v4241_v27 = vmul.f32 1.050701, %v4209_v61  ;;  %v4207_v25 = vsel %vm4047_vm8, %v3971_v30, %v4175_v29  ;;  %v3986_v4 = vpop.f32.mrb[171].mxu0  ;;  %v4106_v63 = vmul.f32 1.442695, %v3992_v43  ;;  %v3995_v18 = vadd.f32 %v5217_v22, %v8503_v45 }
 0x67d   :  { %v4239_v0 = vmul.f32 1.050701, %v4207_v25  ;;  %v4400_v9 = vadd.f32 %v8515_v42, %v4240_v53  ;;  %v4102_v26 = vmul.f32 1.442695, %v3984_v12  ;;  %v3987_v20 = vadd.f32 %v8503_v45, %v3986_v4 }
 0x67e   :  { %v4401_v8 = vadd.f32 %v8513_v37, %v4241_v27  ;;  %v4398_v57 = vadd.f32 %v8505_v15, %v4238_v17  ;;  %5884 = vpow2.f32 %v4106_v63  ;;  %v4108_v41 = vmul.f32 1.442695, %v3995_v18 }
 0x67f   :  { %v4399_v3 = vadd.f32 %v8511_v11, %v4239_v0  ;;  %5886 = vpow2.f32 %v4102_v26  ;;  %v4104_v30 = vmul.f32 1.442695, %v3987_v20  ;;  %v4445_v37 = vsel %vm3820_vm5, %v4415_v2, 0 }
 0x680   :  { %v4424_v14 = vpack.c.bf16 %v4401_v8, %v4400_v9  ;;  %5888 = vpow2.f32 %v4108_v41  ;;  %vm4052_vm9 = vcmp.gt.f32.partialorder %v3992_v43, 0.0  ;;  %vm4050_vm10 = vcmp.gt.f32.partialorder %v3984_v12, 0.0 }
 0x681   :  { %v4423_v29 = vpack.c.bf16 %v4399_v3, %v4398_v57  ;;  %5890 = vpow2.f32 %v4104_v30  ;;  %vm4053_vm11 = vcmp.gt.f32.partialorder %v3995_v18, 0.0  ;;  %vm4051_vm12 = vcmp.gt.f32.partialorder %v3987_v20, 0.0 }
 0x683   :  { %5230 = vmatprep.subr.msk.bf16.mxu1 %vm3820_vm5, %v4423_v29 }
 0x684   :  { %5073 = vmatpush3.bf16.xpose.msra.mxu1 %v4445_v37 }
 0x685   :  { %5231 = vmatprep.subr.msk.bf16.mxu1 %vm3820_vm5, %v4424_v14 }
 0x688   :  { %v5885_v15 = vpop.eup %5884 }
 0x689   :  { %v5887_v11 = vpop.eup %5886  ;;  %v4991_v42 = vadd.f32 -1.0, %v5885_v15 }
 0x68a   :  { %v5889_v21 = vpop.eup %5888  ;;  %v4989_v17 = vadd.f32 -1.0, %v5887_v11 }
 0x68b   :  { %v5891_v13 = vpop.eup %5890  ;;  %v4180_v2 = vmul.f32 1.6732632, %v4991_v42  ;;  %v4992_v27 = vadd.f32 -1.0, %v5889_v21 }
 0x68c   :  { %v5220_v53 = vpop.f32.mrb[172].mxu0  ;;  %5075 = vmatpush3.bf16.xpose.msra.mxu1 %v4448_v19  ;;  %v4178_v0 = vmul.f32 1.6732632, %v4989_v17  ;;  %v4990_v63 = vadd.f32 -1.0, %v5891_v13 }
 0x68d   :  { %v4008_v61 = vadd.f32 %v5220_v53, %v8503_v45  ;;  %v3999_v22 = vpop.f32.mrb[173].mxu0  ;;  %v4212_v8 = vsel %vm4052_vm9, %v3992_v43, %v4180_v2  ;;  %v4181_v26 = vmul.f32 1.6732632, %v4992_v27 }
 0x68e   :  { %v4000_v25 = vadd.f32 %v8503_v45, %v3999_v22  ;;  %v5221_v4 = vpop.f32.mrb[174].mxu0  ;;  %v4244_v7 = vmul.f32 1.050701, %v4212_v8  ;;  %v4210_v16 = vsel %vm4050_vm10, %v3984_v12, %v4178_v0  ;;  %v4179_v3 = vmul.f32 1.6732632, %v4990_v63 }
 0x68f   :  { %v4114_v9 = vmul.f32 1.442695, %v4008_v61  ;;  %v4002_v62 = vpop.f32.mrb[175].mxu0  ;;  %v4242_v41 = vmul.f32 1.050701, %v4210_v16  ;;  %v4213_v30 = vsel %vm4053_vm11, %v3995_v18, %v4181_v26  ;;  %v4011_v14 = vadd.f32 %v5221_v4, %v8503_v45 }
 0x690   :  { %v4110_v57 = vmul.f32 1.442695, %v4000_v25  ;;  %v4245_v29 = vmul.f32 1.050701, %v4213_v30  ;;  %v4211_v37 = vsel %vm4051_vm12, %v3987_v20, %v4179_v3  ;;  %v4003_v15 = vadd.f32 %v8503_v45, %v4002_v62 }
 0x691   :  { %5892 = vpow2.f32 %v4114_v9  ;;  %v4243_v11 = vmul.f32 1.050701, %v4211_v37  ;;  %v4116_v42 = vmul.f32 1.442695, %v4011_v14  ;;  %v4404_v43 = vadd.f32 %v8543_v23, %v4244_v7 }
 0x692   :  { %5894 = vpow2.f32 %v4110_v57  ;;  %v4405_v53 = vadd.f32 %v8540_v52, %v4245_v29  ;;  %v4112_v21 = vmul.f32 1.442695, %v4003_v15  ;;  %v4402_v12 = vadd.f32 %v8537_v31, %v4242_v41 }
 0x693   :  { %v4403_v17 = vadd.f32 %v8535_v28, %v4243_v11  ;;  %5896 = vpow2.f32 %v4116_v42  ;;  %v4451_v20 = vsel %vm3820_vm5, %v4417_v50, 0  ;;  %vm4056_vm13 = vcmp.gt.f32.partialorder %v4008_v61, 0.0 }
 0x694   :  { %5898 = vpow2.f32 %v4112_v21  ;;  %v4426_v18 = vpack.c.bf16 %v4405_v53, %v4404_v43  ;;  %vm4054_vm14 = vcmp.gt.f32.partialorder %v4000_v25, 0.0  ;;  %vm4057_vm15 = vcmp.gt.f32.partialorder %v4011_v14, 0.0 }
 0x695   :  { %v4425_v22 = vpack.c.bf16 %v4403_v17, %v4402_v12  ;;  %vm4055_vm1 = vcmp.gt.f32.partialorder %v4003_v15, 0.0 }
 0x697   :  { %5232 = vmatprep.subr.msk.bf16.mxu1 %vm3820_vm5, %v4425_v22 }
 0x698   :  { %5077 = vmatpush3.bf16.xpose.msra.mxu1 %v4451_v20 }
 0x699   :  { %5233 = vmatprep.subr.msk.bf16.mxu1 %vm3820_vm5, %v4426_v18 }
 0x69b   :  { %v5893_v19 = vpop.eup %5892 }
 0x69c   :  { %v5895_v23 = vpop.eup %5894  ;;  %v4995_v52 = vadd.f32 -1.0, %v5893_v19 }
 0x69d   :  { %v4993_v31 = vadd.f32 -1.0, %v5895_v23  ;;  %v5897_v27 = vpop.eup %5896 }
 0x69e   :  { %v4184_v13 = vmul.f32 1.6732632, %v4995_v52  ;;  %v5224_v2 = vpop.f32.mrb[176].mxu0  ;;  %v5899_v51 = vpop.eup %5898  ;;  %v4996_v63 = vadd.f32 -1.0, %v5897_v27 }
 0x69f   :  { %v4182_v28 = vmul.f32 1.6732632, %v4993_v31  ;;  %v4024_v4 = vadd.f32 %v5224_v2, %v8503_v45  ;;  %v4015_v0 = vpop.f32.mrb[177].mxu0  ;;  %v4994_v57 = vadd.f32 -1.0, %v5899_v51 }
 0x6a0   :  { %v4216_v50 = vsel %vm4056_vm13, %v4008_v61, %v4184_v13  ;;  %v4016_v9 = vadd.f32 %v8503_v45, %v4015_v0  ;;  %v5225_v8 = vpop.f32.mrb[178].mxu0  ;;  %v4185_v7 = vmul.f32 1.6732632, %v4996_v63  ;;  %5079 = vmatpush3.bf16.xpose.msra.mxu1 %v4454_v38  ;;  %v4349_v38 = vpop.permute.xlu1 %4348 }
 0x6a1   :  { %v4214_v26 = vsel %vm4054_vm14, %v4000_v25, %v4182_v28  ;;  %v4122_v62 = vmul.f32 1.442695, %v4024_v4  ;;  %v4018_v3 = vpop.f32.mrb[179].mxu0  ;;  %v4248_v41 = vmul.f32 1.050701, %v4216_v50  ;;  %v4027_v59 = vadd.f32 %v5225_v8, %v8503_v45 }
 0x6a2   :  { %v4118_v16 = vmul.f32 1.442695, %v4016_v9  ;;  %v4183_v44 = vmul.f32 1.6732632, %v4994_v57  ;;  %v4246_v33 = vmul.f32 1.050701, %v4214_v26  ;;  %v4217_v61 = vsel %vm4057_vm15, %v4011_v14, %v4185_v7 }
 0x6a3   :  { %5900 = vpow2.f32 %v4122_v62  ;;  %v4019_v30 = vadd.f32 %v8503_v45, %v4018_v3  ;;  %v4249_v29 = vmul.f32 1.050701, %v4217_v61  ;;  %v4124_v37 = vmul.f32 1.442695, %v4027_v59 }
 0x6a4   :  { %5902 = vpow2.f32 %v4118_v16  ;;  %v4215_v25 = vsel %vm4055_vm1, %v4003_v15, %v4183_v44  ;;  %v4408_v43 = vadd.f32 %v8577_v49, %v4248_v41  ;;  %v4406_v21 = vadd.f32 %v8569_v46, %v4246_v33  ;;  %v8775_v33 = vld [vmem:[#allocation20_spill] sm:$0xff] }
 0x6a5   :  { %v4247_v11 = vmul.f32 1.050701, %v4215_v25  ;;  %v4120_v42 = vmul.f32 1.442695, %v4019_v30  ;;  %v4409_v53 = vadd.f32 %v8574_v48, %v4249_v29  ;;  %5904 = vpow2.f32 %v4124_v37 }
 0x6a6   :  { %v4457_v45 = vsel %vm3820_vm5, %v4419_v54, 0  ;;  %vm4060_vm0 = vcmp.gt.f32.partialorder %v4024_v4, 0.0  ;;  %vm4058_vm2 = vcmp.gt.f32.partialorder %v4016_v9, 0.0  ;;  %vm4061_vm3 = vcmp.gt.f32.partialorder %v4027_v59, 0.0 }
 0x6a7   :  { %v4407_v12 = vadd.f32 %v8567_v24, %v4247_v11  ;;  %5906 = vpow2.f32 %v4120_v42  ;;  %v4428_v17 = vpack.c.bf16 %v4409_v53, %v4408_v43  ;;  %vm4059_vm4 = vcmp.gt.f32.partialorder %v4019_v30, 0.0 }
 0x6a8   :  { %v4463_v8 = vsel %vm3820_vm5, %v4421_v10, 0  ;;  %v4466_v26 = vsel %vm3820_vm5, %v4422_v60, 0  ;;  %v8776_v37 = vlaneseq }
 0x6a9   :  { %v4427_v14 = vpack.c.bf16 %v4407_v12, %v4406_v21 }
 0x6ab   :  { %5234 = vmatprep.subr.msk.bf16.mxu1 %vm3820_vm5, %v4427_v14 }
 0x6ac   :  { %5081 = vmatpush3.bf16.xpose.msra.mxu1 %v4457_v45 }
 0x6ad   :  { %v5901_v15 = vpop.eup %5900  ;;  %5235 = vmatprep.subr.msk.bf16.mxu1 %vm3820_vm5, %v4428_v17 }
 0x6ae   :  { %v5903_v49 = vpop.eup %5902  ;;  %v4999_v18 = vadd.f32 -1.0, %v5901_v15 }
 0x6af   :  { %v4997_v48 = vadd.f32 -1.0, %v5903_v49  ;;  %v5905_v22 = vpop.eup %5904 }
 0x6b0   :  { %v4188_v46 = vmul.f32 1.6732632, %v4999_v18  ;;  %v5000_v23 = vadd.f32 -1.0, %v5905_v22 }
 0x6b1   :  { %v4186_v24 = vmul.f32 1.6732632, %v4997_v48  ;;  %v5907_v20 = vpop.eup %5906 }
 0x6b2   :  { %v4220_v19 = vsel %vm4060_vm0, %v4024_v4, %v4188_v46  ;;  %v4998_v31 = vadd.f32 -1.0, %v5907_v20  ;;  %v4189_v56 = vmul.f32 1.6732632, %v5000_v23  ;;  %v4347_v4 = vpop.permute.xlu0 %4346 }
 0x6b3   :  { %v4218_v52 = vsel %vm4058_vm2, %v4016_v9, %v4186_v24  ;;  %v4252_v54 = vmul.f32 1.050701, %v4220_v19 }
 0x6b4   :  { %v4187_v13 = vmul.f32 1.6732632, %v4998_v31  ;;  %5083 = vmatpush3.bf16.xpose.msra.mxu1 %v4460_v55  ;;  %v4250_v28 = vmul.f32 1.050701, %v4218_v52  ;;  %v4221_v2 = vsel %vm4061_vm3, %v4027_v59, %v4189_v56 }
 0x6b5   :  { %v4253_v27 = vmul.f32 1.050701, %v4221_v2  ;;  %v4412_v50 = vadd.f32 %v4347_v4, %v4252_v54 }
 0x6b6   :  { %v4219_v0 = vsel %vm4059_vm4, %v4019_v30, %v4187_v13  ;;  %v4410_v9 = vadd.f32 %v8593_v40, %v4250_v28 }
 0x6b7   :  { %v4251_v51 = vmul.f32 1.050701, %v4219_v0  ;;  %v4413_v63 = vadd.f32 %v4349_v38, %v4253_v27 }
 0x6b9   :  { %v4411_v39 = vadd.f32 %v8591_v35, %v4251_v51  ;;  %v4430_v58 = vpack.c.bf16 %v4413_v63, %v4412_v50 }
 0x6bb   :  { %v4429_v34 = vpack.c.bf16 %v4411_v39, %v4410_v9 }
 0x6bd   :  { %5236 = vmatprep.subr.msk.bf16.mxu1 %vm3820_vm5, %v4429_v34 }
 0x6be   :  { %5085 = vmatpush3.bf16.xpose.msra.mxu1 %v4463_v8 }
 0x6bf   :  { %5237 = vmatprep.subr.msk.bf16.mxu1 %vm3820_vm5, %v4430_v58 }
 0x6c1   :  { %v4435_v35 = vpop.permute.xlu0 %4434 }
 0x6c2   :  { %v4440_v40 = vrot.slane %v4435_v35, %v8773_v5 }
 0x6c6   :  { %5087 = vmatpush3.bf16.xpose.msra.mxu1 %v4466_v26 }
 0x6cd   :  { %5089 = vmatmul.mubr.msk.bf16.vlgmr.msra.gmra.mrb[172].mxu1 %vm3820_vm5, %v8563_v1  ;;  %v6092_v1 = vmov 1966171168   ;;  %vm4565_vm5 = vcmp.lt.s32.totalorder %v8776_v37, 256 }
 0x6ce   :  { %v4549_v44 = vunpack.c.l.s4 %v6092_v1 }
 0x6d0   :  { %v4550_v59 = vunpack.c.0.s8 %v4549_v44 }
 0x6d2   :  { %v4553_v61 = vsub.s32 %v4550_v59, %v8775_v33 }
 0x7a0   :  { %v4526_v57 = vpop.f32.mrb[172].mxu1 }
 0x7a1   :  { %v4527_v62 = vadd.f32 %v4526_v57, %v4440_v40  ;;  %v4528_v47 = vpop.f32.mrb[173].mxu1 }
 0x7a2   :  { %v4529_v32 = vadd.f32 %v4528_v47, %v4440_v40  ;;  %v4530_v10 = vpop.f32.mrb[174].mxu1 }
 0x7a3   :  { %v5002_v7 = vmul.f32 -1.442695, %v4527_v62  ;;  %v4531_v16 = vpop.f32.mrb[175].mxu1 }
 0x7a4   :  { %v5003_v3 = vmul.f32 -1.442695, %v4529_v32 }
 0x7a5   :  { %5908 = vpow2.f32 %v5002_v7 }
 0x7a6   :  { %5910 = vpow2.f32 %v5003_v3 }
 0x7af   :  { %v5909_v36 = vpop.eup %5908 }
 0x7b0   :  { %v5911_v6 = vpop.eup %5910  ;;  %v4539_v60 = vadd.f32 1.0, %v5909_v36 }
 0x7b1   :  { %v4540_v41 = vadd.f32 1.0, %v5911_v6 }
 0x7b2   :  { %5912 = vrcp.f32 %v4539_v60 }
 0x7b3   :  { %5914 = vrcp.f32 %v4540_v41 }
 0x7bc   :  { %v5913_v5 = vpop.eup %5912 }
 0x7bd   :  { %v5915_v30 = vpop.eup %5914 }
 0x7be   :  { %v4547_v29 = vcombine.low %v5913_v5, %v5915_v30 }
 0x7c0   :  { %v4554_v25 = vrot.slane %v4547_v29, %v4553_v61 }
 0x7c2   :  { %v4561_v11 = vrot.slane %v4554_v25, %v4553_v61 }
 0x7c4   :  { %4567 = vst.msk [vmem:[#allocation14] sm:$0x3] %vm4565_vm5, %v4561_v11 }
 0x7c5   :  { %6060 = shalt.err (!%p6057_p10)
}
 0x7c6   :  { %s6061_s21 = scalar_lea.hbm %s8710_s15, 32 }
 0x7c7   :  { %p6062_p11 = scmp.ne.s32.totalorder %s8710_s15, %s6061_s21  ;;  %p6065_p12 = scmp.lt.u32.totalorder %s6061_s21, %s8710_s15 }
 0x7c9   :  { %p6067_p13 = pnand %p6065_p12, %p6062_p11 }
 0x7cb   :  { %6070 = shalt.err (!%p6067_p13)
}
 0x7cc   :  { %4577 = dma.vmem_to_hbm [thread:$0]  %s4575_s22, 32, %s8710_s15, [#allocation5]  }
 0x7cd   :  { %6079 = dma.done.wait [#allocation5], 32  }
 0x7ce   :  { %6080 = vsyncadd [#allocation5], 4294967264 }
 0x7cf   :  { %4581 = vsyncpa [#allocation4], 1 }
 0x7d0   :  { %4582 = vsyncpa [#allocation7], 1 }
 0x7d1   :  { %4583 = vsyncpa [#allocation10], 1 }
 0x7d2   :  { %4584 = vsyncpa [#allocation13], 1 }
 0x7d3   :  { %4585 = vsyncpa [#allocation5], 1 }

</bundles_post_ra>
